<compile_context>
chip_gen: v7x
topology: tpu7x:2x2x1
jax: 0.10.0
libtpu: 0.0.40
codegen_flags: <defaults>
</compile_context>

<pallas_src>
import jax
import jax.numpy as jnp
from jax import lax
from jax.experimental import pallas as pl
from jax.experimental.pallas import tpu as pltpu

# Safe on v5e/v6e/v7x (>= every default scoped limit).  For large real shapes
# on v5e/v6e (128 MiB physical VMEM) this can be raised to 64-96 MiB.
_VMEM_LIMIT = 32 * 1024 * 1024


# ---------------- Pallas kernels ----------------

def _pointwise_kernel(x_ref, s1_ref, b1_ref, w1_ref, s2_ref, b2_ref, z_ref):
    """z = relu(bn2( relu(bn1(x)) @ w1 ))  on a (tile, cin) row slab."""
    a = jnp.maximum(x_ref[...] * s1_ref[...] + b1_ref[...], 0.0)          # BN1+ReLU
    h = jnp.dot(a, w1_ref[...], preferred_element_type=jnp.float32)       # 1x1x1 conv
    z_ref[...] = jnp.maximum(h * s2_ref[...] + b2_ref[...], 0.0)          # BN2+ReLU


def _make_conv_tail_kernel(Wp, R2):
    """3x3x3 conv as 27 contiguous row-shifted matmuls on flattened padded
    planes, then BN3 -> ReLU -> 1x1x1 conv.  One (n, d) output plane / step."""

    def kernel(zA_ref, zB_ref, zC_ref, w2_ref, s3_ref, b3_ref, w3_ref, o_ref):
        cmid = w2_ref.shape[2]
        acc = jnp.zeros((R2, cmid), jnp.float32)
        for kd, zref in enumerate((zA_ref, zB_ref, zC_ref)):              # static unroll
            for kh in range(3):
                for kw in range(3):
                    s = kh * Wp + kw                                      # static offset
                    tap = zref[0, 0, s:s + R2, :]                         # (R2, cmid)
                    acc += jnp.dot(tap, w2_ref[kd * 9 + kh * 3 + kw],
                                   preferred_element_type=jnp.float32)
        b = jnp.maximum(acc * s3_ref[...] + b3_ref[...], 0.0)             # BN3+ReLU
        y = jnp.dot(b, w3_ref[...], preferred_element_type=jnp.float32)   # 1x1x1 conv
        o_ref[...] = y[None, None, :, :]

    return kernel


# ---------------- wrapper ----------------

def _bn_fuse(bn, eps=1e-5):
    gamma, beta, mean, var = bn
    scale = gamma / jnp.sqrt(var + eps)
    shift = beta - mean * scale
    return scale.reshape(1, -1), shift.reshape(1, -1)


def _pick_tile(T, target=512):
    """Largest divisor of T that is <= target and a multiple of 8 (else T)."""
    if T <= target:
        return T
    for t in range(target, 7, -1):
        if T % t == 0 and t % 8 == 0:
            return t
    return T


def res_block_forward(x_ncdhw, params):
    """x_ncdhw: (N, C, D, H, W) float32; identity shortcut (in_c == out_c)."""
    N, C, D, H, W = x_ncdhw.shape
    cin = C
    w1 = params['w1']
    cmid = w1.shape[1]
    cout = params['w3'].shape[1]
    assert cin == cout, "identity shortcut requires in_c == out_c"

    x = jnp.transpose(x_ncdhw, (0, 2, 3, 4, 1))                           # NDHWC
    T = N * D * H * W
    x2d = x.reshape(T, cin)

    s1, b1 = _bn_fuse(params['bn1'])
    s2, b2 = _bn_fuse(params['bn2'])
    s3, b3 = _bn_fuse(params['bn3'])

    tile = _pick_tile(T)

    # --- kernel 1: BN1-ReLU-Conv(1x1x1)-BN2-ReLU, (T, cin) -> (T, cmid) ---
    z2d = pl.pallas_call(
        _pointwise_kernel,
        out_shape=jax.ShapeDtypeStruct((T, cmid), jnp.float32),
        grid=(T // tile,),
        in_specs=[
            pl.BlockSpec((tile, cin), lambda i: (i, 0)),
            pl.BlockSpec((1, cin), lambda i: (0, 0)),
            pl.BlockSpec((1, cin), lambda i: (0, 0)),
            pl.BlockSpec((cin, cmid), lambda i: (0, 0)),
            pl.BlockSpec((1, cmid), lambda i: (0, 0)),
            pl.BlockSpec((1, cmid), lambda i: (0, 0)),
        ],
        out_specs=pl.BlockSpec((tile, cmid), lambda i: (i, 0)),
        compiler_params=pltpu.CompilerParams(
            dimension_semantics=("parallel",),
            vmem_limit_bytes=_VMEM_LIMIT),
    )(x2d, s1, b1, w1, s2, b2)

    # --- glue: zero-pad z by 1 voxel on D/H/W, flatten each depth plane to
    #     (H+2)*(W+2) rows (+2 spare zero rows so every tap slice stays in
    #     bounds).  Cost ~ one copy of z; replaces the old 27x patches tensor.
    Hp, Wp = H + 2, W + 2
    R = Hp * Wp                # rows per padded plane
    R2 = H * Wp                # rows computed per output plane (junk at w >= W)
    z = z2d.reshape(N, D, H, W, cmid)
    zpad = jnp.pad(z, ((0, 0), (1, 1), (1, 1), (1, 1), (0, 0)))
    zflat = jnp.pad(zpad.reshape(N, D + 2, R, cmid),
                    ((0, 0), (0, 0), (0, 2), (0, 0)))                     # (N, D+2, R+2, cmid)

    w2f = params['w2'].reshape(27, cmid, cmid)                            # (kd,kh,kw,ci,co) flat

    def _plane_spec(off):
        return pl.BlockSpec((1, 1, R + 2, cmid),
                            lambda n, d: (n, d + off, 0, 0))

    # --- kernel 2: Conv(3x3x3) + BN3-ReLU-Conv(1x1x1), one (n, d) plane/step ---
    yflat = pl.pallas_call(
        _make_conv_tail_kernel(Wp, R2),
        out_shape=jax.ShapeDtypeStruct((N, D, R2, cout), jnp.float32),
        grid=(N, D),
        in_specs=[
            _plane_spec(0), _plane_spec(1), _plane_spec(2),
            pl.BlockSpec((27, cmid, cmid), lambda n, d: (0, 0, 0)),
            pl.BlockSpec((1, cmid), lambda n, d: (0, 0)),
            pl.BlockSpec((1, cmid), lambda n, d: (0, 0)),
            pl.BlockSpec((cmid, cout), lambda n, d: (0, 0)),
        ],
        out_specs=pl.BlockSpec((1, 1, R2, cout), lambda n, d: (n, d, 0, 0)),
        compiler_params=pltpu.CompilerParams(
            dimension_semantics=("parallel", "parallel"),
            vmem_limit_bytes=_VMEM_LIMIT),
    )(zflat, zflat, zflat, w2f, s3, b3, params['w3'])

    # --- fused XLA epilogue: drop W-padding junk rows, residual add, NCDHW ---
    y = yflat.reshape(N, D, H, Wp, cout)[:, :, :, :W, :]
    return jnp.transpose(y + x, (0, 4, 1, 2, 3))


# ---------------- pure-JAX reference (for verification) ----------------

def res_block_reference(x_ncdhw, params):
    x = jnp.transpose(x_ncdhw, (0, 2, 3, 4, 1))
    dn = ('NDHWC', 'DHWIO', 'NDHWC')
    hp = lax.Precision.HIGHEST

    def bn(v, p):
        gamma, beta, mean, var = p
        return gamma * (v - mean) / jnp.sqrt(var + 1e-5) + beta

    cin, cmid = params['w1'].shape
    cout = params['w3'].shape[1]
    a = jax.nn.relu(bn(x, params['bn1']))
    h1 = lax.conv_general_dilated(a, params['w1'].reshape(1, 1, 1, cin, cmid),
                                  (1, 1, 1), 'VALID', dimension_numbers=dn, precision=hp)
    b = jax.nn.relu(bn(h1, params['bn2']))
    h2 = lax.conv_general_dilated(b, params['w2'], (1, 1, 1),
                                  [(1, 1)] * 3, dimension_numbers=dn, precision=hp)
    c = jax.nn.relu(bn(h2, params['bn3']))
    h3 = lax.conv_general_dilated(c, params['w3'].reshape(1, 1, 1, cmid, cout),
                                  (1, 1, 1), 'VALID', dimension_numbers=dn, precision=hp)
    return jnp.transpose(h3 + x, (0, 4, 1, 2, 3))


# ---------------- deterministic params ----------------

def init_params(key, in_c, out_c):
    mid_c = out_c // 4
    ks = jax.random.split(key, 6)

    def bn_params(k, c):
        k1, k2, k3, k4 = jax.random.split(k, 4)
        return (1.0 + 0.1 * jax.random.normal(k1, (c,), jnp.float32),
                0.1 * jax.random.normal(k2, (c,), jnp.float32),
                0.1 * jax.random.normal(k3, (c,), jnp.float32),
                jax.random.uniform(k4, (c,), jnp.float32, 0.5, 1.5))

    return {
        'bn1': bn_params(ks[0], in_c),
        'w1': 0.2 * jax.random.normal(ks[1], (in_c, mid_c), jnp.float32),
        'bn2': bn_params(ks[2], mid_c),
        'w2': 0.2 * jax.random.normal(ks[3], (3, 3, 3, mid_c, mid_c), jnp.float32),
        'bn3': bn_params(ks[4], mid_c),
        'w3': 0.2 * jax.random.normal(ks[5], (mid_c, out_c), jnp.float32),
    }


if __name__ == "__main__":
    key = jax.random.PRNGKey(0)
    kx, kp = jax.random.split(key)
    N, C, D, H, W = 2, 64, 8, 8, 8          # in_c == out_c (identity shortcut), mid_c = 16
    x = jax.random.normal(kx, (N, C, D, H, W), jnp.float32)
    params = init_params(kp, in_c=C, out_c=C)

    y = jax.jit(res_block_forward)(x, params)
    jax.block_until_ready(y)

    y_ref = res_block_reference(x, params)
    assert y.shape == (N, C, D, H, W)
    err = float(jnp.max(jnp.abs(y - y_ref)))
    assert jnp.allclose(y, y_ref, atol=2e-3, rtol=2e-3), f"max abs err = {err}"
    print("KERNEL_OK")
</pallas_src>

<mosaic_0001>
module attributes {stable_mosaic.version = 11 : i64} {
  func.func @_pointwise_kernel(%arg0: i32, %arg1: memref<512x64xf32, #tpu.memory_space<vmem>>, %arg2: memref<1x64xf32, #tpu.memory_space<vmem>>, %arg3: memref<1x64xf32, #tpu.memory_space<vmem>>, %arg4: memref<64x16xf32, #tpu.memory_space<vmem>>, %arg5: memref<1x16xf32, #tpu.memory_space<vmem>>, %arg6: memref<1x16xf32, #tpu.memory_space<vmem>>, %arg7: memref<512x16xf32, #tpu.memory_space<vmem>>) attributes {dimension_semantics = [#tpu.dimension_semantics<parallel>], iteration_bounds = array<i64: 2>, scalar_prefetch = 0 : i64, scratch_operands = 0 : i64, tpu.core_type = #tpu.core_type<tc>, window_params = [{transform_indices = @transform_0, window_bounds = array<i64: 512, 64>}, {pipeline_mode = #tpu.pipeline_mode<synchronous>, transform_indices = @transform_1, window_bounds = array<i64: 1, 64>}, {pipeline_mode = #tpu.pipeline_mode<synchronous>, transform_indices = @transform_2, window_bounds = array<i64: 1, 64>}, {pipeline_mode = #tpu.pipeline_mode<synchronous>, transform_indices = @transform_3, window_bounds = array<i64: 64, 16>}, {pipeline_mode = #tpu.pipeline_mode<synchronous>, transform_indices = @transform_4, window_bounds = array<i64: 1, 16>}, {pipeline_mode = #tpu.pipeline_mode<synchronous>, transform_indices = @transform_5, window_bounds = array<i64: 1, 16>}, {transform_indices = @transform_6, window_bounds = array<i64: 512, 16>}]} {
    %c0 = arith.constant 0 : index
    %c0_0 = arith.constant 0 : index
    %0 = vector.load %arg1[%c0, %c0_0] : memref<512x64xf32, #tpu.memory_space<vmem>>, vector<512x64xf32>
    %c0_1 = arith.constant 0 : index
    %c0_2 = arith.constant 0 : index
    %1 = vector.load %arg2[%c0_1, %c0_2] : memref<1x64xf32, #tpu.memory_space<vmem>>, vector<1x64xf32>
    %2 = vector.broadcast %1 : vector<1x64xf32> to vector<512x64xf32>
    %3 = arith.mulf %0, %2 : vector<512x64xf32>
    %c0_3 = arith.constant 0 : index
    %c0_4 = arith.constant 0 : index
    %4 = vector.load %arg3[%c0_3, %c0_4] : memref<1x64xf32, #tpu.memory_space<vmem>>, vector<1x64xf32>
    %5 = vector.broadcast %4 : vector<1x64xf32> to vector<512x64xf32>
    %6 = arith.addf %3, %5 : vector<512x64xf32>
    %cst = arith.constant 0.000000e+00 : f32
    %7 = vector.broadcast %cst : f32 to vector<512x64xf32>
    %8 = arith.maximumf %6, %7 : vector<512x64xf32>
    %c0_5 = arith.constant 0 : index
    %c0_6 = arith.constant 0 : index
    %9 = vector.load %arg4[%c0_5, %c0_6] : memref<64x16xf32, #tpu.memory_space<vmem>>, vector<64x16xf32>
    %cst_7 = arith.constant dense<0.000000e+00> : vector<512x16xf32>
    %10 = tpu.matmul %8, %9, %cst_7 {dimension_numbers = #tpu.dot_dimension_numbers<[1], [0], [0], [1], [0, 0, 1, 1], [], []>} : vector<512x64xf32>, vector<64x16xf32>, vector<512x16xf32> -> vector<512x16xf32>
    %c0_8 = arith.constant 0 : index
    %c0_9 = arith.constant 0 : index
    %11 = vector.load %arg5[%c0_8, %c0_9] : memref<1x16xf32, #tpu.memory_space<vmem>>, vector<1x16xf32>
    %12 = vector.broadcast %11 : vector<1x16xf32> to vector<512x16xf32>
    %13 = arith.mulf %10, %12 : vector<512x16xf32>
    %c0_10 = arith.constant 0 : index
    %c0_11 = arith.constant 0 : index
    %14 = vector.load %arg6[%c0_10, %c0_11] : memref<1x16xf32, #tpu.memory_space<vmem>>, vector<1x16xf32>
    %15 = vector.broadcast %14 : vector<1x16xf32> to vector<512x16xf32>
    %16 = arith.addf %13, %15 : vector<512x16xf32>
    %cst_12 = arith.constant 0.000000e+00 : f32
    %17 = vector.broadcast %cst_12 : f32 to vector<512x16xf32>
    %18 = arith.maximumf %16, %17 : vector<512x16xf32>
    %c0_13 = arith.constant 0 : index
    %c0_14 = arith.constant 0 : index
    %19 = vector.load %arg7[%c0_13, %c0_14] : memref<512x16xf32, #tpu.memory_space<vmem>>, vector<512x16xf32>
    tpu.vector_store %arg7[%c0_13, %c0_14], %18 {strides = array<i32>} : memref<512x16xf32, #tpu.memory_space<vmem>>, vector<512x16xf32>,
    return
  }
  func.func @transform_0(%arg0: i32) -> (i32, i32) {
    %c0_i32 = arith.constant 0 : i32
    %c0_i32_0 = arith.constant 0 : i32
    return %arg0, %c0_i32 : i32, i32
  }
  func.func @transform_1(%arg0: i32) -> (i32, i32) {
    %c0_i32 = arith.constant 0 : i32
    %c0_i32_0 = arith.constant 0 : i32
    %c0_i32_1 = arith.constant 0 : i32
    return %c0_i32, %c0_i32_0 : i32, i32
  }
  func.func @transform_2(%arg0: i32) -> (i32, i32) {
    %c0_i32 = arith.constant 0 : i32
    %c0_i32_0 = arith.constant 0 : i32
    %c0_i32_1 = arith.constant 0 : i32
    return %c0_i32, %c0_i32_0 : i32, i32
  }
  func.func @transform_3(%arg0: i32) -> (i32, i32) {
    %c0_i32 = arith.constant 0 : i32
    %c0_i32_0 = arith.constant 0 : i32
    %c0_i32_1 = arith.constant 0 : i32
    return %c0_i32, %c0_i32_0 : i32, i32
  }
  func.func @transform_4(%arg0: i32) -> (i32, i32) {
    %c0_i32 = arith.constant 0 : i32
    %c0_i32_0 = arith.constant 0 : i32
    %c0_i32_1 = arith.constant 0 : i32
    return %c0_i32, %c0_i32_0 : i32, i32
  }
  func.func @transform_5(%arg0: i32) -> (i32, i32) {
    %c0_i32 = arith.constant 0 : i32
    %c0_i32_0 = arith.constant 0 : i32
    %c0_i32_1 = arith.constant 0 : i32
    return %c0_i32, %c0_i32_0 : i32, i32
  }
  func.func @transform_6(%arg0: i32) -> (i32, i32) {
    %c0_i32 = arith.constant 0 : i32
    %c0_i32_0 = arith.constant 0 : i32
    return %arg0, %c0_i32 : i32, i32
  }
}

module attributes {stable_mosaic.version = 11 : i64} {
  func.func @kernel(%arg0: i32, %arg1: i32, %arg2: memref<1x1x102x16xf32, #tpu.memory_space<vmem>>, %arg3: memref<1x1x102x16xf32, #tpu.memory_space<vmem>>, %arg4: memref<1x1x102x16xf32, #tpu.memory_space<vmem>>, %arg5: memref<27x16x16xf32, #tpu.memory_space<vmem>>, %arg6: memref<1x16xf32, #tpu.memory_space<vmem>>, %arg7: memref<1x16xf32, #tpu.memory_space<vmem>>, %arg8: memref<16x64xf32, #tpu.memory_space<vmem>>, %arg9: memref<1x1x80x64xf32, #tpu.memory_space<vmem>>) attributes {dimension_semantics = [#tpu.dimension_semantics<parallel>, #tpu.dimension_semantics<parallel>], iteration_bounds = array<i64: 2, 8>, scalar_prefetch = 0 : i64, scratch_operands = 0 : i64, tpu.core_type = #tpu.core_type<tc>, window_params = [{transform_indices = @transform_0, window_bounds = array<i64: 1, 1, 102, 16>}, {transform_indices = @transform_1, window_bounds = array<i64: 1, 1, 102, 16>}, {transform_indices = @transform_2, window_bounds = array<i64: 1, 1, 102, 16>}, {pipeline_mode = #tpu.pipeline_mode<synchronous>, transform_indices = @transform_3, window_bounds = array<i64: 27, 16, 16>}, {pipeline_mode = #tpu.pipeline_mode<synchronous>, transform_indices = @transform_4, window_bounds = array<i64: 1, 16>}, {pipeline_mode = #tpu.pipeline_mode<synchronous>, transform_indices = @transform_5, window_bounds = array<i64: 1, 16>}, {pipeline_mode = #tpu.pipeline_mode<synchronous>, transform_indices = @transform_6, window_bounds = array<i64: 16, 64>}, {transform_indices = @transform_7, window_bounds = array<i64: 1, 1, 80, 64>}]} {
    %cst = arith.constant 0.000000e+00 : f32
    %0 = vector.broadcast %cst : f32 to vector<80x16xf32>
    %c0 = arith.constant 0 : index
    %c0_0 = arith.constant 0 : index
    %c0_1 = arith.constant 0 : index
    %c0_2 = arith.constant 0 : index
    %1 = vector.load %arg2[%c0, %c0_0, %c0_1, %c0_2] : memref<1x1x102x16xf32, #tpu.memory_space<vmem>>, vector<1x1x80x16xf32>
    %2 = vector.shape_cast %1 : vector<1x1x80x16xf32> to vector<80x16xf32>
    %c0_3 = arith.constant 0 : index
    %c0_4 = arith.constant 0 : index
    %c0_5 = arith.constant 0 : index
    %3 = vector.load %arg5[%c0_3, %c0_4, %c0_5] : memref<27x16x16xf32, #tpu.memory_space<vmem>>, vector<1x16x16xf32>
    %4 = vector.shape_cast %3 : vector<1x16x16xf32> to vector<16x16xf32>
    %cst_6 = arith.constant dense<0.000000e+00> : vector<80x16xf32>
    %5 = tpu.matmul %2, %4, %cst_6 {dimension_numbers = #tpu.dot_dimension_numbers<[1], [0], [0], [1], [0, 0, 1, 1], [], []>} : vector<80x16xf32>, vector<16x16xf32>, vector<80x16xf32> -> vector<80x16xf32>
    %6 = arith.addf %0, %5 : vector<80x16xf32>
    %c0_7 = arith.constant 0 : index
    %c0_8 = arith.constant 0 : index
    %c1 = arith.constant 1 : index
    %c0_9 = arith.constant 0 : index
    %7 = vector.load %arg2[%c0_7, %c0_8, %c1, %c0_9] : memref<1x1x102x16xf32, #tpu.memory_space<vmem>>, vector<1x1x80x16xf32>
    %8 = vector.shape_cast %7 : vector<1x1x80x16xf32> to vector<80x16xf32>
    %c1_10 = arith.constant 1 : index
    %c0_11 = arith.constant 0 : index
    %c0_12 = arith.constant 0 : index
    %9 = vector.load %arg5[%c1_10, %c0_11, %c0_12] : memref<27x16x16xf32, #tpu.memory_space<vmem>>, vector<1x16x16xf32>
    %10 = vector.shape_cast %9 : vector<1x16x16xf32> to vector<16x16xf32>
    %cst_13 = arith.constant dense<0.000000e+00> : vector<80x16xf32>
    %11 = tpu.matmul %8, %10, %cst_13 {dimension_numbers = #tpu.dot_dimension_numbers<[1], [0], [0], [1], [0, 0, 1, 1], [], []>} : vector<80x16xf32>, vector<16x16xf32>, vector<80x16xf32> -> vector<80x16xf32>
    %12 = arith.addf %6, %11 : vector<80x16xf32>
    %c0_14 = arith.constant 0 : index
    %c0_15 = arith.constant 0 : index
    %c2 = arith.constant 2 : index
    %c0_16 = arith.constant 0 : index
    %13 = vector.load %arg2[%c0_14, %c0_15, %c2, %c0_16] : memref<1x1x102x16xf32, #tpu.memory_space<vmem>>, vector<1x1x80x16xf32>
    %14 = vector.shape_cast %13 : vector<1x1x80x16xf32> to vector<80x16xf32>
    %c2_17 = arith.constant 2 : index
    %c0_18 = arith.constant 0 : index
    %c0_19 = arith.constant 0 : index
    %15 = vector.load %arg5[%c2_17, %c0_18, %c0_19] : memref<27x16x16xf32, #tpu.memory_space<vmem>>, vector<1x16x16xf32>
    %16 = vector.shape_cast %15 : vector<1x16x16xf32> to vector<16x16xf32>
    %cst_20 = arith.constant dense<0.000000e+00> : vector<80x16xf32>
    %17 = tpu.matmul %14, %16, %cst_20 {dimension_numbers = #tpu.dot_dimension_numbers<[1], [0], [0], [1], [0, 0, 1, 1], [], []>} : vector<80x16xf32>, vector<16x16xf32>, vector<80x16xf32> -> vector<80x16xf32>
    %18 = arith.addf %12, %17 : vector<80x16xf32>
    %c0_21 = arith.constant 0 : index
    %c0_22 = arith.constant 0 : index
    %c10 = arith.constant 10 : index
    %c0_23 = arith.constant 0 : index
    %19 = vector.load %arg2[%c0_21, %c0_22, %c10, %c0_23] : memref<1x1x102x16xf32, #tpu.memory_space<vmem>>, vector<1x1x80x16xf32>
    %20 = vector.shape_cast %19 : vector<1x1x80x16xf32> to vector<80x16xf32>
    %c3 = arith.constant 3 : index
    %c0_24 = arith.constant 0 : index
    %c0_25 = arith.constant 0 : index
    %21 = vector.load %arg5[%c3, %c0_24, %c0_25] : memref<27x16x16xf32, #tpu.memory_space<vmem>>, vector<1x16x16xf32>
    %22 = vector.shape_cast %21 : vector<1x16x16xf32> to vector<16x16xf32>
    %cst_26 = arith.constant dense<0.000000e+00> : vector<80x16xf32>
    %23 = tpu.matmul %20, %22, %cst_26 {dimension_numbers = #tpu.dot_dimension_numbers<[1], [0], [0], [1], [0, 0, 1, 1], [], []>} : vector<80x16xf32>, vector<16x16xf32>, vector<80x16xf32> -> vector<80x16xf32>
    %24 = arith.addf %18, %23 : vector<80x16xf32>
    %c0_27 = arith.constant 0 : index
    %c0_28 = arith.constant 0 : index
    %c11 = arith.constant 11 : index
    %c0_29 = arith.constant 0 : index
    %25 = vector.load %arg2[%c0_27, %c0_28, %c11, %c0_29] : memref<1x1x102x16xf32, #tpu.memory_space<vmem>>, vector<1x1x80x16xf32>
    %26 = vector.shape_cast %25 : vector<1x1x80x16xf32> to vector<80x16xf32>
    %c4 = arith.constant 4 : index
    %c0_30 = arith.constant 0 : index
    %c0_31 = arith.constant 0 : index
    %27 = vector.load %arg5[%c4, %c0_30, %c0_31] : memref<27x16x16xf32, #tpu.memory_space<vmem>>, vector<1x16x16xf32>
    %28 = vector.shape_cast %27 : vector<1x16x16xf32> to vector<16x16xf32>
    %cst_32 = arith.constant dense<0.000000e+00> : vector<80x16xf32>
    %29 = tpu.matmul %26, %28, %cst_32 {dimension_numbers = #tpu.dot_dimension_numbers<[1], [0], [0], [1], [0, 0, 1, 1], [], []>} : vector<80x16xf32>, vector<16x16xf32>, vector<80x16xf32> -> vector<80x16xf32>
    %30 = arith.addf %24, %29 : vector<80x16xf32>
    %c0_33 = arith.constant 0 : index
    %c0_34 = arith.constant 0 : index
    %c12 = arith.constant 12 : index
    %c0_35 = arith.constant 0 : index
    %31 = vector.load %arg2[%c0_33, %c0_34, %c12, %c0_35] : memref<1x1x102x16xf32, #tpu.memory_space<vmem>>, vector<1x1x80x16xf32>
    %32 = vector.shape_cast %31 : vector<1x1x80x16xf32> to vector<80x16xf32>
    %c5 = arith.constant 5 : index
    %c0_36 = arith.constant 0 : index
    %c0_37 = arith.constant 0 : index
    %33 = vector.load %arg5[%c5, %c0_36, %c0_37] : memref<27x16x16xf32, #tpu.memory_space<vmem>>, vector<1x16x16xf32>
    %34 = vector.shape_cast %33 : vector<1x16x16xf32> to vector<16x16xf32>
    %cst_38 = arith.constant dense<0.000000e+00> : vector<80x16xf32>
    %35 = tpu.matmul %32, %34, %cst_38 {dimension_numbers = #tpu.dot_dimension_numbers<[1], [0], [0], [1], [0, 0, 1, 1], [], []>} : vector<80x16xf32>, vector<16x16xf32>, vector<80x16xf32> -> vector<80x16xf32>
    %36 = arith.addf %30, %35 : vector<80x16xf32>
    %c0_39 = arith.constant 0 : index
    %c0_40 = arith.constant 0 : index
    %c20 = arith.constant 20 : index
    %c0_41 = arith.constant 0 : index
    %37 = vector.load %arg2[%c0_39, %c0_40, %c20, %c0_41] : memref<1x1x102x16xf32, #tpu.memory_space<vmem>>, vector<1x1x80x16xf32>
    %38 = vector.shape_cast %37 : vector<1x1x80x16xf32> to vector<80x16xf32>
    %c6 = arith.constant 6 : index
    %c0_42 = arith.constant 0 : index
    %c0_43 = arith.constant 0 : index
    %39 = vector.load %arg5[%c6, %c0_42, %c0_43] : memref<27x16x16xf32, #tpu.memory_space<vmem>>, vector<1x16x16xf32>
    %40 = vector.shape_cast %39 : vector<1x16x16xf32> to vector<16x16xf32>
    %cst_44 = arith.constant dense<0.000000e+00> : vector<80x16xf32>
    %41 = tpu.matmul %38, %40, %cst_44 {dimension_numbers = #tpu.dot_dimension_numbers<[1], [0], [0], [1], [0, 0, 1, 1], [], []>} : vector<80x16xf32>, vector<16x16xf32>, vector<80x16xf32> -> vector<80x16xf32>
    %42 = arith.addf %36, %41 : vector<80x16xf32>
    %c0_45 = arith.constant 0 : index
    %c0_46 = arith.constant 0 : index
    %c21 = arith.constant 21 : index
    %c0_47 = arith.constant 0 : index
    %43 = vector.load %arg2[%c0_45, %c0_46, %c21, %c0_47] : memref<1x1x102x16xf32, #tpu.memory_space<vmem>>, vector<1x1x80x16xf32>
    %44 = vector.shape_cast %43 : vector<1x1x80x16xf32> to vector<80x16xf32>
    %c7 = arith.constant 7 : index
    %c0_48 = arith.constant 0 : index
    %c0_49 = arith.constant 0 : index
    %45 = vector.load %arg5[%c7, %c0_48, %c0_49] : memref<27x16x16xf32, #tpu.memory_space<vmem>>, vector<1x16x16xf32>
    %46 = vector.shape_cast %45 : vector<1x16x16xf32> to vector<16x16xf32>
    %cst_50 = arith.constant dense<0.000000e+00> : vector<80x16xf32>
    %47 = tpu.matmul %44, %46, %cst_50 {dimension_numbers = #tpu.dot_dimension_numbers<[1], [0], [0], [1], [0, 0, 1, 1], [], []>} : vector<80x16xf32>, vector<16x16xf32>, vector<80x16xf32> -> vector<80x16xf32>
    %48 = arith.addf %42, %47 : vector<80x16xf32>
    %c0_51 = arith.constant 0 : index
    %c0_52 = arith.constant 0 : index
    %c22 = arith.constant 22 : index
    %c0_53 = arith.constant 0 : index
    %49 = vector.load %arg2[%c0_51, %c0_52, %c22, %c0_53] : memref<1x1x102x16xf32, #tpu.memory_space<vmem>>, vector<1x1x80x16xf32>
    %50 = vector.shape_cast %49 : vector<1x1x80x16xf32> to vector<80x16xf32>
    %c8 = arith.constant 8 : index
    %c0_54 = arith.constant 0 : index
    %c0_55 = arith.constant 0 : index
    %51 = vector.load %arg5[%c8, %c0_54, %c0_55] : memref<27x16x16xf32, #tpu.memory_space<vmem>>, vector<1x16x16xf32>
    %52 = vector.shape_cast %51 : vector<1x16x16xf32> to vector<16x16xf32>
    %cst_56 = arith.constant dense<0.000000e+00> : vector<80x16xf32>
    %53 = tpu.matmul %50, %52, %cst_56 {dimension_numbers = #tpu.dot_dimension_numbers<[1], [0], [0], [1], [0, 0, 1, 1], [], []>} : vector<80x16xf32>, vector<16x16xf32>, vector<80x16xf32> -> vector<80x16xf32>
    %54 = arith.addf %48, %53 : vector<80x16xf32>
    %c0_57 = arith.constant 0 : index
    %c0_58 = arith.constant 0 : index
    %c0_59 = arith.constant 0 : index
    %c0_60 = arith.constant 0 : index
    %55 = vector.load %arg3[%c0_57, %c0_58, %c0_59, %c0_60] : memref<1x1x102x16xf32, #tpu.memory_space<vmem>>, vector<1x1x80x16xf32>
    %56 = vector.shape_cast %55 : vector<1x1x80x16xf32> to vector<80x16xf32>
    %c9 = arith.constant 9 : index
    %c0_61 = arith.constant 0 : index
    %c0_62 = arith.constant 0 : index
    %57 = vector.load %arg5[%c9, %c0_61, %c0_62] : memref<27x16x16xf32, #tpu.memory_space<vmem>>, vector<1x16x16xf32>
    %58 = vector.shape_cast %57 : vector<1x16x16xf32> to vector<16x16xf32>
    %cst_63 = arith.constant dense<0.000000e+00> : vector<80x16xf32>
    %59 = tpu.matmul %56, %58, %cst_63 {dimension_numbers = #tpu.dot_dimension_numbers<[1], [0], [0], [1], [0, 0, 1, 1], [], []>} : vector<80x16xf32>, vector<16x16xf32>, vector<80x16xf32> -> vector<80x16xf32>
    %60 = arith.addf %54, %59 : vector<80x16xf32>
    %c0_64 = arith.constant 0 : index
    %c0_65 = arith.constant 0 : index
    %c1_66 = arith.constant 1 : index
    %c0_67 = arith.constant 0 : index
    %61 = vector.load %arg3[%c0_64, %c0_65, %c1_66, %c0_67] : memref<1x1x102x16xf32, #tpu.memory_space<vmem>>, vector<1x1x80x16xf32>
    %62 = vector.shape_cast %61 : vector<1x1x80x16xf32> to vector<80x16xf32>
    %c10_68 = arith.constant 10 : index
    %c0_69 = arith.constant 0 : index
    %c0_70 = arith.constant 0 : index
    %63 = vector.load %arg5[%c10_68, %c0_69, %c0_70] : memref<27x16x16xf32, #tpu.memory_space<vmem>>, vector<1x16x16xf32>
    %64 = vector.shape_cast %63 : vector<1x16x16xf32> to vector<16x16xf32>
    %cst_71 = arith.constant dense<0.000000e+00> : vector<80x16xf32>
    %65 = tpu.matmul %62, %64, %cst_71 {dimension_numbers = #tpu.dot_dimension_numbers<[1], [0], [0], [1], [0, 0, 1, 1], [], []>} : vector<80x16xf32>, vector<16x16xf32>, vector<80x16xf32> -> vector<80x16xf32>
    %66 = arith.addf %60, %65 : vector<80x16xf32>
    %c0_72 = arith.constant 0 : index
    %c0_73 = arith.constant 0 : index
    %c2_74 = arith.constant 2 : index
    %c0_75 = arith.constant 0 : index
    %67 = vector.load %arg3[%c0_72, %c0_73, %c2_74, %c0_75] : memref<1x1x102x16xf32, #tpu.memory_space<vmem>>, vector<1x1x80x16xf32>
    %68 = vector.shape_cast %67 : vector<1x1x80x16xf32> to vector<80x16xf32>
    %c11_76 = arith.constant 11 : index
    %c0_77 = arith.constant 0 : index
    %c0_78 = arith.constant 0 : index
    %69 = vector.load %arg5[%c11_76, %c0_77, %c0_78] : memref<27x16x16xf32, #tpu.memory_space<vmem>>, vector<1x16x16xf32>
    %70 = vector.shape_cast %69 : vector<1x16x16xf32> to vector<16x16xf32>
    %cst_79 = arith.constant dense<0.000000e+00> : vector<80x16xf32>
    %71 = tpu.matmul %68, %70, %cst_79 {dimension_numbers = #tpu.dot_dimension_numbers<[1], [0], [0], [1], [0, 0, 1, 1], [], []>} : vector<80x16xf32>, vector<16x16xf32>, vector<80x16xf32> -> vector<80x16xf32>
    %72 = arith.addf %66, %71 : vector<80x16xf32>
    %c0_80 = arith.constant 0 : index
    %c0_81 = arith.constant 0 : index
    %c10_82 = arith.constant 10 : index
    %c0_83 = arith.constant 0 : index
    %73 = vector.load %arg3[%c0_80, %c0_81, %c10_82, %c0_83] : memref<1x1x102x16xf32, #tpu.memory_space<vmem>>, vector<1x1x80x16xf32>
    %74 = vector.shape_cast %73 : vector<1x1x80x16xf32> to vector<80x16xf32>
    %c12_84 = arith.constant 12 : index
    %c0_85 = arith.constant 0 : index
    %c0_86 = arith.constant 0 : index
    %75 = vector.load %arg5[%c12_84, %c0_85, %c0_86] : memref<27x16x16xf32, #tpu.memory_space<vmem>>, vector<1x16x16xf32>
    %76 = vector.shape_cast %75 : vector<1x16x16xf32> to vector<16x16xf32>
    %cst_87 = arith.constant dense<0.000000e+00> : vector<80x16xf32>
    %77 = tpu.matmul %74, %76, %cst_87 {dimension_numbers = #tpu.dot_dimension_numbers<[1], [0], [0], [1], [0, 0, 1, 1], [], []>} : vector<80x16xf32>, vector<16x16xf32>, vector<80x16xf32> -> vector<80x16xf32>
    %78 = arith.addf %72, %77 : vector<80x16xf32>
    %c0_88 = arith.constant 0 : index
    %c0_89 = arith.constant 0 : index
    %c11_90 = arith.constant 11 : index
    %c0_91 = arith.constant 0 : index
    %79 = vector.load %arg3[%c0_88, %c0_89, %c11_90, %c0_91] : memref<1x1x102x16xf32, #tpu.memory_space<vmem>>, vector<1x1x80x16xf32>
    %80 = vector.shape_cast %79 : vector<1x1x80x16xf32> to vector<80x16xf32>
    %c13 = arith.constant 13 : index
    %c0_92 = arith.constant 0 : index
    %c0_93 = arith.constant 0 : index
    %81 = vector.load %arg5[%c13, %c0_92, %c0_93] : memref<27x16x16xf32, #tpu.memory_space<vmem>>, vector<1x16x16xf32>
    %82 = vector.shape_cast %81 : vector<1x16x16xf32> to vector<16x16xf32>
    %cst_94 = arith.constant dense<0.000000e+00> : vector<80x16xf32>
    %83 = tpu.matmul %80, %82, %cst_94 {dimension_numbers = #tpu.dot_dimension_numbers<[1], [0], [0], [1], [0, 0, 1, 1], [], []>} : vector<80x16xf32>, vector<16x16xf32>, vector<80x16xf32> -> vector<80x16xf32>
    %84 = arith.addf %78, %83 : vector<80x16xf32>
    %c0_95 = arith.constant 0 : index
    %c0_96 = arith.constant 0 : index
    %c12_97 = arith.constant 12 : index
    %c0_98 = arith.constant 0 : index
    %85 = vector.load %arg3[%c0_95, %c0_96, %c12_97, %c0_98] : memref<1x1x102x16xf32, #tpu.memory_space<vmem>>, vector<1x1x80x16xf32>
    %86 = vector.shape_cast %85 : vector<1x1x80x16xf32> to vector<80x16xf32>
    %c14 = arith.constant 14 : index
    %c0_99 = arith.constant 0 : index
    %c0_100 = arith.constant 0 : index
    %87 = vector.load %arg5[%c14, %c0_99, %c0_100] : memref<27x16x16xf32, #tpu.memory_space<vmem>>, vector<1x16x16xf32>
    %88 = vector.shape_cast %87 : vector<1x16x16xf32> to vector<16x16xf32>
    %cst_101 = arith.constant dense<0.000000e+00> : vector<80x16xf32>
    %89 = tpu.matmul %86, %88, %cst_101 {dimension_numbers = #tpu.dot_dimension_numbers<[1], [0], [0], [1], [0, 0, 1, 1], [], []>} : vector<80x16xf32>, vector<16x16xf32>, vector<80x16xf32> -> vector<80x16xf32>
    %90 = arith.addf %84, %89 : vector<80x16xf32>
    %c0_102 = arith.constant 0 : index
    %c0_103 = arith.constant 0 : index
    %c20_104 = arith.constant 20 : index
    %c0_105 = arith.constant 0 : index
    %91 = vector.load %arg3[%c0_102, %c0_103, %c20_104, %c0_105] : memref<1x1x102x16xf32, #tpu.memory_space<vmem>>, vector<1x1x80x16xf32>
    %92 = vector.shape_cast %91 : vector<1x1x80x16xf32> to vector<80x16xf32>
    %c15 = arith.constant 15 : index
    %c0_106 = arith.constant 0 : index
    %c0_107 = arith.constant 0 : index
    %93 = vector.load %arg5[%c15, %c0_106, %c0_107] : memref<27x16x16xf32, #tpu.memory_space<vmem>>, vector<1x16x16xf32>
    %94 = vector.shape_cast %93 : vector<1x16x16xf32> to vector<16x16xf32>
    %cst_108 = arith.constant dense<0.000000e+00> : vector<80x16xf32>
    %95 = tpu.matmul %92, %94, %cst_108 {dimension_numbers = #tpu.dot_dimension_numbers<[1], [0], [0], [1], [0, 0, 1, 1], [], []>} : vector<80x16xf32>, vector<16x16xf32>, vector<80x16xf32> -> vector<80x16xf32>
    %96 = arith.addf %90, %95 : vector<80x16xf32>
    %c0_109 = arith.constant 0 : index
    %c0_110 = arith.constant 0 : index
    %c21_111 = arith.constant 21 : index
    %c0_112 = arith.constant 0 : index
    %97 = vector.load %arg3[%c0_109, %c0_110, %c21_111, %c0_112] : memref<1x1x102x16xf32, #tpu.memory_space<vmem>>, vector<1x1x80x16xf32>
    %98 = vector.shape_cast %97 : vector<1x1x80x16xf32> to vector<80x16xf32>
    %c16 = arith.constant 16 : index
    %c0_113 = arith.constant 0 : index
    %c0_114 = arith.constant 0 : index
    %99 = vector.load %arg5[%c16, %c0_113, %c0_114] : memref<27x16x16xf32, #tpu.memory_space<vmem>>, vector<1x16x16xf32>
    %100 = vector.shape_cast %99 : vector<1x16x16xf32> to vector<16x16xf32>
    %cst_115 = arith.constant dense<0.000000e+00> : vector<80x16xf32>
    %101 = tpu.matmul %98, %100, %cst_115 {dimension_numbers = #tpu.dot_dimension_numbers<[1], [0], [0], [1], [0, 0, 1, 1], [], []>} : vector<80x16xf32>, vector<16x16xf32>, vector<80x16xf32> -> vector<80x16xf32>
    %102 = arith.addf %96, %101 : vector<80x16xf32>
    %c0_116 = arith.constant 0 : index
    %c0_117 = arith.constant 0 : index
    %c22_118 = arith.constant 22 : index
    %c0_119 = arith.constant 0 : index
    %103 = vector.load %arg3[%c0_116, %c0_117, %c22_118, %c0_119] : memref<1x1x102x16xf32, #tpu.memory_space<vmem>>, vector<1x1x80x16xf32>
    %104 = vector.shape_cast %103 : vector<1x1x80x16xf32> to vector<80x16xf32>
    %c17 = arith.constant 17 : index
    %c0_120 = arith.constant 0 : index
    %c0_121 = arith.constant 0 : index
    %105 = vector.load %arg5[%c17, %c0_120, %c0_121] : memref<27x16x16xf32, #tpu.memory_space<vmem>>, vector<1x16x16xf32>
    %106 = vector.shape_cast %105 : vector<1x16x16xf32> to vector<16x16xf32>
    %cst_122 = arith.constant dense<0.000000e+00> : vector<80x16xf32>
    %107 = tpu.matmul %104, %106, %cst_122 {dimension_numbers = #tpu.dot_dimension_numbers<[1], [0], [0], [1], [0, 0, 1, 1], [], []>} : vector<80x16xf32>, vector<16x16xf32>, vector<80x16xf32> -> vector<80x16xf32>
    %108 = arith.addf %102, %107 : vector<80x16xf32>
    %c0_123 = arith.constant 0 : index
    %c0_124 = arith.constant 0 : index
    %c0_125 = arith.constant 0 : index
    %c0_126 = arith.constant 0 : index
    %109 = vector.load %arg4[%c0_123, %c0_124, %c0_125, %c0_126] : memref<1x1x102x16xf32, #tpu.memory_space<vmem>>, vector<1x1x80x16xf32>
    %110 = vector.shape_cast %109 : vector<1x1x80x16xf32> to vector<80x16xf32>
    %c18 = arith.constant 18 : index
    %c0_127 = arith.constant 0 : index
    %c0_128 = arith.constant 0 : index
    %111 = vector.load %arg5[%c18, %c0_127, %c0_128] : memref<27x16x16xf32, #tpu.memory_space<vmem>>, vector<1x16x16xf32>
    %112 = vector.shape_cast %111 : vector<1x16x16xf32> to vector<16x16xf32>
    %cst_129 = arith.constant dense<0.000000e+00> : vector<80x16xf32>
    %113 = tpu.matmul %110, %112, %cst_129 {dimension_numbers = #tpu.dot_dimension_numbers<[1], [0], [0], [1], [0, 0, 1, 1], [], []>} : vector<80x16xf32>, vector<16x16xf32>, vector<80x16xf32> -> vector<80x16xf32>
    %114 = arith.addf %108, %113 : vector<80x16xf32>
    %c0_130 = arith.constant 0 : index
    %c0_131 = arith.constant 0 : index
    %c1_132 = arith.constant 1 : index
    %c0_133 = arith.constant 0 : index
    %115 = vector.load %arg4[%c0_130, %c0_131, %c1_132, %c0_133] : memref<1x1x102x16xf32, #tpu.memory_space<vmem>>, vector<1x1x80x16xf32>
    %116 = vector.shape_cast %115 : vector<1x1x80x16xf32> to vector<80x16xf32>
    %c19 = arith.constant 19 : index
    %c0_134 = arith.constant 0 : index
    %c0_135 = arith.constant 0 : index
    %117 = vector.load %arg5[%c19, %c0_134, %c0_135] : memref<27x16x16xf32, #tpu.memory_space<vmem>>, vector<1x16x16xf32>
    %118 = vector.shape_cast %117 : vector<1x16x16xf32> to vector<16x16xf32>
    %cst_136 = arith.constant dense<0.000000e+00> : vector<80x16xf32>
    %119 = tpu.matmul %116, %118, %cst_136 {dimension_numbers = #tpu.dot_dimension_numbers<[1], [0], [0], [1], [0, 0, 1, 1], [], []>} : vector<80x16xf32>, vector<16x16xf32>, vector<80x16xf32> -> vector<80x16xf32>
    %120 = arith.addf %114, %119 : vector<80x16xf32>
    %c0_137 = arith.constant 0 : index
    %c0_138 = arith.constant 0 : index
    %c2_139 = arith.constant 2 : index
    %c0_140 = arith.constant 0 : index
    %121 = vector.load %arg4[%c0_137, %c0_138, %c2_139, %c0_140] : memref<1x1x102x16xf32, #tpu.memory_space<vmem>>, vector<1x1x80x16xf32>
    %122 = vector.shape_cast %121 : vector<1x1x80x16xf32> to vector<80x16xf32>
    %c20_141 = arith.constant 20 : index
    %c0_142 = arith.constant 0 : index
    %c0_143 = arith.constant 0 : index
    %123 = vector.load %arg5[%c20_141, %c0_142, %c0_143] : memref<27x16x16xf32, #tpu.memory_space<vmem>>, vector<1x16x16xf32>
    %124 = vector.shape_cast %123 : vector<1x16x16xf32> to vector<16x16xf32>
    %cst_144 = arith.constant dense<0.000000e+00> : vector<80x16xf32>
    %125 = tpu.matmul %122, %124, %cst_144 {dimension_numbers = #tpu.dot_dimension_numbers<[1], [0], [0], [1], [0, 0, 1, 1], [], []>} : vector<80x16xf32>, vector<16x16xf32>, vector<80x16xf32> -> vector<80x16xf32>
    %126 = arith.addf %120, %125 : vector<80x16xf32>
    %c0_145 = arith.constant 0 : index
    %c0_146 = arith.constant 0 : index
    %c10_147 = arith.constant 10 : index
    %c0_148 = arith.constant 0 : index
    %127 = vector.load %arg4[%c0_145, %c0_146, %c10_147, %c0_148] : memref<1x1x102x16xf32, #tpu.memory_space<vmem>>, vector<1x1x80x16xf32>
    %128 = vector.shape_cast %127 : vector<1x1x80x16xf32> to vector<80x16xf32>
    %c21_149 = arith.constant 21 : index
    %c0_150 = arith.constant 0 : index
    %c0_151 = arith.constant 0 : index
    %129 = vector.load %arg5[%c21_149, %c0_150, %c0_151] : memref<27x16x16xf32, #tpu.memory_space<vmem>>, vector<1x16x16xf32>
    %130 = vector.shape_cast %129 : vector<1x16x16xf32> to vector<16x16xf32>
    %cst_152 = arith.constant dense<0.000000e+00> : vector<80x16xf32>
    %131 = tpu.matmul %128, %130, %cst_152 {dimension_numbers = #tpu.dot_dimension_numbers<[1], [0], [0], [1], [0, 0, 1, 1], [], []>} : vector<80x16xf32>, vector<16x16xf32>, vector<80x16xf32> -> vector<80x16xf32>
    %132 = arith.addf %126, %131 : vector<80x16xf32>
    %c0_153 = arith.constant 0 : index
    %c0_154 = arith.constant 0 : index
    %c11_155 = arith.constant 11 : index
    %c0_156 = arith.constant 0 : index
    %133 = vector.load %arg4[%c0_153, %c0_154, %c11_155, %c0_156] : memref<1x1x102x16xf32, #tpu.memory_space<vmem>>, vector<1x1x80x16xf32>
    %134 = vector.shape_cast %133 : vector<1x1x80x16xf32> to vector<80x16xf32>
    %c22_157 = arith.constant 22 : index
    %c0_158 = arith.constant 0 : index
    %c0_159 = arith.constant 0 : index
    %135 = vector.load %arg5[%c22_157, %c0_158, %c0_159] : memref<27x16x16xf32, #tpu.memory_space<vmem>>, vector<1x16x16xf32>
    %136 = vector.shape_cast %135 : vector<1x16x16xf32> to vector<16x16xf32>
    %cst_160 = arith.constant dense<0.000000e+00> : vector<80x16xf32>
    %137 = tpu.matmul %134, %136, %cst_160 {dimension_numbers = #tpu.dot_dimension_numbers<[1], [0], [0], [1], [0, 0, 1, 1], [], []>} : vector<80x16xf32>, vector<16x16xf32>, vector<80x16xf32> -> vector<80x16xf32>
    %138 = arith.addf %132, %137 : vector<80x16xf32>
    %c0_161 = arith.constant 0 : index
    %c0_162 = arith.constant 0 : index
    %c12_163 = arith.constant 12 : index
    %c0_164 = arith.constant 0 : index
    %139 = vector.load %arg4[%c0_161, %c0_162, %c12_163, %c0_164] : memref<1x1x102x16xf32, #tpu.memory_space<vmem>>, vector<1x1x80x16xf32>
    %140 = vector.shape_cast %139 : vector<1x1x80x16xf32> to vector<80x16xf32>
    %c23 = arith.constant 23 : index
    %c0_165 = arith.constant 0 : index
    %c0_166 = arith.constant 0 : index
    %141 = vector.load %arg5[%c23, %c0_165, %c0_166] : memref<27x16x16xf32, #tpu.memory_space<vmem>>, vector<1x16x16xf32>
    %142 = vector.shape_cast %141 : vector<1x16x16xf32> to vector<16x16xf32>
    %cst_167 = arith.constant dense<0.000000e+00> : vector<80x16xf32>
    %143 = tpu.matmul %140, %142, %cst_167 {dimension_numbers = #tpu.dot_dimension_numbers<[1], [0], [0], [1], [0, 0, 1, 1], [], []>} : vector<80x16xf32>, vector<16x16xf32>, vector<80x16xf32> -> vector<80x16xf32>
    %144 = arith.addf %138, %143 : vector<80x16xf32>
    %c0_168 = arith.constant 0 : index
    %c0_169 = arith.constant 0 : index
    %c20_170 = arith.constant 20 : index
    %c0_171 = arith.constant 0 : index
    %145 = vector.load %arg4[%c0_168, %c0_169, %c20_170, %c0_171] : memref<1x1x102x16xf32, #tpu.memory_space<vmem>>, vector<1x1x80x16xf32>
    %146 = vector.shape_cast %145 : vector<1x1x80x16xf32> to vector<80x16xf32>
    %c24 = arith.constant 24 : index
    %c0_172 = arith.constant 0 : index
    %c0_173 = arith.constant 0 : index
    %147 = vector.load %arg5[%c24, %c0_172, %c0_173] : memref<27x16x16xf32, #tpu.memory_space<vmem>>, vector<1x16x16xf32>
    %148 = vector.shape_cast %147 : vector<1x16x16xf32> to vector<16x16xf32>
    %cst_174 = arith.constant dense<0.000000e+00> : vector<80x16xf32>
    %149 = tpu.matmul %146, %148, %cst_174 {dimension_numbers = #tpu.dot_dimension_numbers<[1], [0], [0], [1], [0, 0, 1, 1], [], []>} : vector<80x16xf32>, vector<16x16xf32>, vector<80x16xf32> -> vector<80x16xf32>
    %150 = arith.addf %144, %149 : vector<80x16xf32>
    %c0_175 = arith.constant 0 : index
    %c0_176 = arith.constant 0 : index
    %c21_177 = arith.constant 21 : index
    %c0_178 = arith.constant 0 : index
    %151 = vector.load %arg4[%c0_175, %c0_176, %c21_177, %c0_178] : memref<1x1x102x16xf32, #tpu.memory_space<vmem>>, vector<1x1x80x16xf32>
    %152 = vector.shape_cast %151 : vector<1x1x80x16xf32> to vector<80x16xf32>
    %c25 = arith.constant 25 : index
    %c0_179 = arith.constant 0 : index
    %c0_180 = arith.constant 0 : index
    %153 = vector.load %arg5[%c25, %c0_179, %c0_180] : memref<27x16x16xf32, #tpu.memory_space<vmem>>, vector<1x16x16xf32>
    %154 = vector.shape_cast %153 : vector<1x16x16xf32> to vector<16x16xf32>
    %cst_181 = arith.constant dense<0.000000e+00> : vector<80x16xf32>
    %155 = tpu.matmul %152, %154, %cst_181 {dimension_numbers = #tpu.dot_dimension_numbers<[1], [0], [0], [1], [0, 0, 1, 1], [], []>} : vector<80x16xf32>, vector<16x16xf32>, vector<80x16xf32> -> vector<80x16xf32>
    %156 = arith.addf %150, %155 : vector<80x16xf32>
    %c0_182 = arith.constant 0 : index
    %c0_183 = arith.constant 0 : index
    %c22_184 = arith.constant 22 : index
    %c0_185 = arith.constant 0 : index
    %157 = vector.load %arg4[%c0_182, %c0_183, %c22_184, %c0_185] : memref<1x1x102x16xf32, #tpu.memory_space<vmem>>, vector<1x1x80x16xf32>
    %158 = vector.shape_cast %157 : vector<1x1x80x16xf32> to vector<80x16xf32>
    %c26 = arith.constant 26 : index
    %c0_186 = arith.constant 0 : index
    %c0_187 = arith.constant 0 : index
    %159 = vector.load %arg5[%c26, %c0_186, %c0_187] : memref<27x16x16xf32, #tpu.memory_space<vmem>>, vector<1x16x16xf32>
    %160 = vector.shape_cast %159 : vector<1x16x16xf32> to vector<16x16xf32>
    %cst_188 = arith.constant dense<0.000000e+00> : vector<80x16xf32>
    %161 = tpu.matmul %158, %160, %cst_188 {dimension_numbers = #tpu.dot_dimension_numbers<[1], [0], [0], [1], [0, 0, 1, 1], [], []>} : vector<80x16xf32>, vector<16x16xf32>, vector<80x16xf32> -> vector<80x16xf32>
    %162 = arith.addf %156, %161 : vector<80x16xf32>
    %c0_189 = arith.constant 0 : index
    %c0_190 = arith.constant 0 : index
    %163 = vector.load %arg6[%c0_189, %c0_190] : memref<1x16xf32, #tpu.memory_space<vmem>>, vector<1x16xf32>
    %164 = vector.broadcast %163 : vector<1x16xf32> to vector<80x16xf32>
    %165 = arith.mulf %162, %164 : vector<80x16xf32>
    %c0_191 = arith.constant 0 : index
    %c0_192 = arith.constant 0 : index
    %166 = vector.load %arg7[%c0_191, %c0_192] : memref<1x16xf32, #tpu.memory_space<vmem>>, vector<1x16xf32>
    %167 = vector.broadcast %166 : vector<1x16xf32> to vector<80x16xf32>
    %168 = arith.addf %165, %167 : vector<80x16xf32>
    %cst_193 = arith.constant 0.000000e+00 : f32
    %169 = vector.broadcast %cst_193 : f32 to vector<80x16xf32>
    %170 = arith.maximumf %168, %169 : vector<80x16xf32>
    %c0_194 = arith.constant 0 : index
    %c0_195 = arith.constant 0 : index
    %171 = vector.load %arg8[%c0_194, %c0_195] : memref<16x64xf32, #tpu.memory_space<vmem>>, vector<16x64xf32>
    %cst_196 = arith.constant dense<0.000000e+00> : vector<80x64xf32>
    %172 = tpu.matmul %170, %171, %cst_196 {dimension_numbers = #tpu.dot_dimension_numbers<[1], [0], [0], [1], [0, 0, 1, 1], [], []>} : vector<80x16xf32>, vector<16x64xf32>, vector<80x64xf32> -> vector<80x64xf32>
    %173 = vector.shape_cast %172 : vector<80x64xf32> to vector<1x1x80x64xf32>
    %c0_197 = arith.constant 0 : index
    %c0_198 = arith.constant 0 : index
    %c0_199 = arith.constant 0 : index
    %c0_200 = arith.constant 0 : index
    %174 = vector.load %arg9[%c0_197, %c0_198, %c0_199, %c0_200] : memref<1x1x80x64xf32, #tpu.memory_space<vmem>>, vector<1x1x80x64xf32>
    tpu.vector_store %arg9[%c0_197, %c0_198, %c0_199, %c0_200], %173 {strides = array<i32>} : memref<1x1x80x64xf32, #tpu.memory_space<vmem>>, vector<1x1x80x64xf32>,
    return
  }
  func.func @transform_0(%arg0: i32, %arg1: i32) -> (i32, i32, i32, i32) {
    %c0_i32 = arith.constant 0 : i32
    %0 = arith.addi %arg1, %c0_i32 : i32
    %c0_i32_0 = arith.constant 0 : i32
    %c0_i32_1 = arith.constant 0 : i32
    %c0_i32_2 = arith.constant 0 : i32
    return %arg0, %0, %c0_i32_0, %c0_i32_1 : i32, i32, i32, i32
  }
  func.func @transform_1(%arg0: i32, %arg1: i32) -> (i32, i32, i32, i32) {
    %c1_i32 = arith.constant 1 : i32
    %0 = arith.addi %arg1, %c1_i32 : i32
    %c0_i32 = arith.constant 0 : i32
    %c0_i32_0 = arith.constant 0 : i32
    %c0_i32_1 = arith.constant 0 : i32
    return %arg0, %0, %c0_i32, %c0_i32_0 : i32, i32, i32, i32
  }
  func.func @transform_2(%arg0: i32, %arg1: i32) -> (i32, i32, i32, i32) {
    %c2_i32 = arith.constant 2 : i32
    %0 = arith.addi %arg1, %c2_i32 : i32
    %c0_i32 = arith.constant 0 : i32
    %c0_i32_0 = arith.constant 0 : i32
    %c0_i32_1 = arith.constant 0 : i32
    return %arg0, %0, %c0_i32, %c0_i32_0 : i32, i32, i32, i32
  }
  func.func @transform_3(%arg0: i32, %arg1: i32) -> (i32, i32, i32) {
    %c0_i32 = arith.constant 0 : i32
    %c0_i32_0 = arith.constant 0 : i32
    %c0_i32_1 = arith.constant 0 : i32
    %c0_i32_2 = arith.constant 0 : i32
    return %c0_i32, %c0_i32_0, %c0_i32_1 : i32, i32, i32
  }
  func.func @transform_4(%arg0: i32, %arg1: i32) -> (i32, i32) {
    %c0_i32 = arith.constant 0 : i32
    %c0_i32_0 = arith.constant 0 : i32
    %c0_i32_1 = arith.constant 0 : i32
    return %c0_i32, %c0_i32_0 : i32, i32
  }
  func.func @transform_5(%arg0: i32, %arg1: i32) -> (i32, i32) {
    %c0_i32 = arith.constant 0 : i32
    %c0_i32_0 = arith.constant 0 : i32
    %c0_i32_1 = arith.constant 0 : i32
    return %c0_i32, %c0_i32_0 : i32, i32
  }
  func.func @transform_6(%arg0: i32, %arg1: i32) -> (i32, i32) {
    %c0_i32 = arith.constant 0 : i32
    %c0_i32_0 = arith.constant 0 : i32
    %c0_i32_1 = arith.constant 0 : i32
    return %c0_i32, %c0_i32_0 : i32, i32
  }
  func.func @transform_7(%arg0: i32, %arg1: i32) -> (i32, i32, i32, i32) {
    %c0_i32 = arith.constant 0 : i32
    %c0_i32_0 = arith.constant 0 : i32
    %c0_i32_1 = arith.constant 0 : i32
    return %arg0, %arg1, %c0_i32, %c0_i32_0 : i32, i32, i32, i32
  }
}

</mosaic_0001>

<bundles_post_ra>
// kernel: res_block_forward.2
= control target key start
LH: loop header
LB: loop body
LE: loop exit
PB: predicated region body
PF: predicated region fallthrough
CT: control target
= control target key end

     0   :  { %11 = vsyncpa [#allocation3], 0  ;;  %s2603_s0 = inlined_call_operand.hbm [shape: f32[1024,64], index: 0, kind: input, shape index: {}]   ;;  %s2604_s1 = inlined_call_operand.vmem [shape: f32[1,64], index: 1, kind: input, shape index: {}]   ;;  %s2605_s2 = inlined_call_operand.vmem [shape: f32[1,64], index: 2, kind: input, shape index: {}]   ;;  %s2606_s3 = inlined_call_operand.vmem [shape: f32[64,16], index: 3, kind: input, shape index: {}]   ;;  %s2607_s4 = inlined_call_operand.vmem [shape: f32[1,16], index: 4, kind: input, shape index: {}]   ;;  %s2608_s5 = inlined_call_operand.vmem [shape: f32[1,16], index: 5, kind: input, shape index: {}]   ;;  %s2609_s6 = inlined_call_operand.vmem [shape: f32[1024,16], index: 6, kind: output, shape index: {}]  }
   0x1   :  { %13 = vsyncpa [#allocation3 + $0x1], 0  ;;  %s1903_s21 = smov 0   ;;  %s1905_s22 = smov 0  }
   0x2   :  { %s1907_s23 = smov 0   ;;  %s1909_s24 = smov 0  }
   0x3 LB: > { %s1468_s25 = sadd.s32 4294967295, %s1863_s24   ;;  %s1923_s26 = sadd.s32 1, %s1863_s24   ;;  %s1863_s24 = sphi %s1909_s24, %s2616_s24   ;;  %s1859_s23 = sphi %s1907_s23, %s2615_s23   ;;  %s1855_s22 = sphi %s1905_s22, %s2614_s22   ;;  %s1851_s21 = sphi %s1903_s21, %s2613_s21  }
   0x4   : > { %s23_s27 = ssub.s32 %s1863_s24, %s1923_s26  ;;  %s26_s28 = sadd.s32 1, %s1859_s23 }
   0x5   : > { %p24_p0 = scmp.eq.s32.totalorder %s23_s27, 0  ;;  %p33_p1 = scmp.ne.s32.totalorder %s1859_s23, %s1855_s22 }
   0x6   : > { %p34_p2 = scmp.eq.s32.totalorder %s1863_s24, 0  ;;  %p39_p3 = scmp.ne.s32.totalorder %s1855_s22, %s1851_s21 }
   0x7   : > { %s1933_s29 = scalar_select %p24_p0, %s1859_s23, %s26_s28  }
   0x8   : > { %p35_p4 = por %p34_p2, %p33_p1  ;;  %p40_p5 = scmp.eq.s32.totalorder %s1468_s25, 0 }
   0x9   : > { %p1764_p6 = scmp.lt.s32.totalorder %s1863_s24, 2  ;;  %s209_s7 = sand.u32 1, %s1859_s23  }
   0xa   : > { %p1938_p7 = por %p40_p5, %p39_p3  ;;  %s1472_s8 = sshll.u32 %s209_s7, 9 }
   0xb   : > { %s1549_s9 = sshll.u32 %s1863_s24, 13  ;;  %s213_s13 = scalar_lea.vmem [#allocation2], %s1472_s8 }
   0xc   : > { %s1947_s12 = scalar_lea.hbm %s2603_s0, %s1549_s9  ;;  %s220_s14 = sshll.u32 %s213_s13, 4  ;;  %s1949_s14 = int_to_ptr.vmem [resolvable:$true] %s220_s14 }
   0xd   : > { %p1951_p8 = pnand %p1764_p6, %p35_p4  ;;  %s1956_s16 = scalar_lea.sflag [#allocation3], %s209_s7 }
   0xe   : > { %s1799_s17 = scalar_lea.hbm %s1947_s12, 8192  ;;  %s1804_s20 = scalar_lea.hbm %s2603_s0, 16384 }
   0xf   : > { %p1800_p10 = scmp.ne.s32.totalorder %s1947_s12, %s1799_s17  ;;  %p1801_p11 = pneg %p1951_p8 }
  0x10   : > { %p1805_p0 = scmp.lt.u32.totalorder %s1947_s12, %s2603_s0  ;;  %p1806_p1 = scmp.lt.u32.totalorder %s1804_s20, %s1799_s17 }
  0x11   : > { %p1802_p12 = pnand %p1801_p11, %p1800_p10  ;;  %p1808_p3 = scmp.lt.u32.totalorder %s1799_s17, %s1947_s12 }
  0x12   : > { %p1807_p2 = por %p1806_p1, %p1805_p0 }
  0x13   : > { %p1803_p13 = pneg %p1802_p12 }
  0x14   : > { %p1809_p4 = por %p1808_p3, %p1807_p2 }
  0x16   : > { %p1810_p5 = pnand %p1809_p4, %p1803_p13 }
  0x18   : > { %1813 = shalt.err (!%p1810_p5)
}
  0x19   : > { %s1814_s28 = scalar_lea.vmem %s1949_s14, 8192  ;;  %s1865_s7 = smov [#allocation2]  }
  0x1a   : > { %p1815_p6 = scmp.ne.s32.totalorder %s1949_s14, %s1814_s28  ;;  %s1819_s8 = sshll.u32 %s1865_s7, 4  ;;  %s1820_s8 = int_to_ptr.vmem [resolvable:$false] %s1819_s8 }
  0x1b   : > { %s1821_s9 = scalar_lea.vmem %s1820_s8, 16384  ;;  %p1822_p9 = scmp.lt.s32.totalorder %s1949_s14, %s1820_s8 }
  0x1c   : > { %p1817_p10 = pnand %p1815_p6, %p1801_p11  ;;  %p1823_p0 = scmp.lt.s32.totalorder %s1821_s9, %s1814_s28 }
  0x1e   : > { %p1818_p12 = pneg %p1817_p10  ;;  %p1824_p1 = por %p1823_p0, %p1822_p9 }
  0x20   : > { %p1825_p2 = pnand %p1824_p1, %p1818_p12 }
  0x22   : > { %1828 = shalt.err (!%p1825_p2)
}
  0x23   : > { %s1866_s10 = smov 128   ;;  %s1867_s11 = smov 8  }
  0x24   : > { %1763 = dma.hbm_to_vmem [thread:$0]  (!%p1951_p8), %s1947_s12, 8192, %s1949_s14, %s1956_s16, %s1866_s10, %s1866_s10, %s1867_s11  }
  0x25   : > { %p228_p11 = scmp.lt.s32.totalorder %s1863_s24, 3  ;;  %p2612_p13 = scmp.ge.s32.totalorder %s1863_s24, 1 }
  0x27   : > { %p229_p3 = pnand %p2612_p13, %p228_p11 }
  0x28   : > { %s234_s13 = sand.u32 (!%p229_p3), 1, %s1855_s22  }
  0x29   : > { %232 = sbr.rel (%p229_p3) target bundleno = 349 (0x15d), region = 44  ;;  %s1476_s17 = sshll.u32 (!%p229_p3), %s234_s13, 9 }
  0x2a   : > { %s235_s18 = scalar_lea.sflag (!%p229_p3), [#allocation3], %s234_s13  ;;  %s1988_s19 = scalar_lea.vmem (!%p229_p3), [#allocation2], %s1476_s17 }
  0x30   : > { %1846 = dma.done.wait (%p1938_p7), %s235_s18, 8192  }
  0x31   : > { %1848 = vsyncadd (%p1938_p7), %s235_s18, 4294959104  ;;  %v544_v0 = vld [vmem:[%s2606_s3] sm:$0xff]  ;;  %v545_v1 = vld [vmem:[%s2606_s3 + $0x8] sm:$0xff]  ;;  %vm552_vm0 = vcmask 523264   ;;  %vm1336_vm1 = vcmask 130048  }
  0x32   : > { %v546_v2 = vld [vmem:[%s2606_s3 + $0x10] sm:$0xff]  ;;  %v1734_v3 = vpack.c.bf16 %v545_v1, %v544_v0  ;;  %v547_v4 = vld [vmem:[%s2606_s3 + $0x18] sm:$0xff]  ;;  %v548_v6 = vld [vmem:[%s2606_s3 + $0x20] sm:$0xff] }
  0x33   : > { %v1738_v5 = vpack.c.bf16 %v547_v4, %v546_v2  ;;  %v549_v7 = vld [vmem:[%s2606_s3 + $0x28] sm:$0xff]  ;;  %v274_v8 = vld [vmem:[%s1988_s19] sm:$0xff]  ;;  %v276_v17 = vld [vmem:[%s1988_s19 + $0x10] sm:$0xff] }
  0x34   : > { %1735 = vmatprep.subr.bf16.mxu0 %v1734_v3  ;;  %1750 = vmatprep.subr.bf16.mxu1 %v1734_v3  ;;  %v2016_v9 = vld [vmem:[%s2604_s1] ss:$0 sm:$0xff]  ;;  %v275_v14 = vld [vmem:[%s1988_s19 + $0x8] sm:$0xff]  ;;  %v1742_v16 = vpack.c.bf16 %v549_v7, %v548_v6  ;;  %v308_v18 = vld [vmem:[%s1988_s19 + $0x110] sm:$0xff] }
  0x35   : > { %v2021_v10 = vld [vmem:[%s2605_s2] ss:$0 sm:$0xff]  ;;  %1737 = vmatpush3.bf16.msra.mxu0 %v1734_v3  ;;  %1754 = vmatpush3.bf16.msra.mxu1 %v1734_v3  ;;  %v345_v12 = vmul.f32 %v2016_v9, %v274_v8  ;;  %v307_v15 = vld [vmem:[%s1988_s19 + $0x108] sm:$0xff]  ;;  %v550_v19 = vld [vmem:[%s2606_s3 + $0x30] sm:$0xff]  ;;  %v346_v23 = vmul.f32 %v2016_v9, %v275_v14  ;;  %v347_v28 = vmul.f32 %v2016_v9, %v276_v17 }
  0x36   : > { %v306_v11 = vld [vmem:[%s1988_s19 + $0x100] sm:$0xff]  ;;  %1739 = vmatprep.subr.bf16.mxu0 %v1738_v5  ;;  %1751 = vmatprep.subr.bf16.mxu1 %v1738_v5  ;;  %v551_v20 = vld [vmem:[%s2606_s3 + $0x38] sm:$0xff]  ;;  %v378_v24 = vmul.f32 %v2016_v9, %v307_v15  ;;  %v379_v29 = vmul.f32 %v2016_v9, %v308_v18  ;;  %v279_v39 = vld [vmem:[%s1988_s19 + $0x28] sm:$0xff] }
  0x37   : > { %v377_v13 = vmul.f32 %v2016_v9, %v306_v11  ;;  %v416_v21 = vadd.f32 %v2021_v10, %v345_v12  ;;  %v277_v25 = vld [vmem:[%s1988_s19 + $0x18] sm:$0xff]  ;;  %v278_v31 = vld [vmem:[%s1988_s19 + $0x20] sm:$0xff]  ;;  %v1746_v32 = vpack.c.bf16 %v551_v20, %v550_v19  ;;  %v417_v34 = vadd.f32 %v2021_v10, %v346_v23  ;;  %v311_v40 = vld [vmem:[%s1988_s19 + $0x128] sm:$0xff] }
  0x38   : > { %v309_v30 = vld [vmem:[%s1988_s19 + $0x118] sm:$0xff]  ;;  %v310_v33 = vld [vmem:[%s1988_s19 + $0x120] sm:$0xff]  ;;  %v348_v35 = vmul.f32 %v2016_v9, %v277_v25  ;;  %v449_v36 = vadd.f32 %v2021_v10, %v378_v24  ;;  %v349_v38 = vmul.f32 %v2016_v9, %v278_v31  ;;  %v418_v41 = vadd.f32 %v2021_v10, %v347_v28  ;;  %v280_v44 = vld [vmem:[%s1988_s19 + $0x30] sm:$0xff] }
  0x39   : > { %v448_v22 = vadd.f32 %v2021_v10, %v377_v13  ;;  %1741 = vmatpush3.bf16.msra.mxu0 %v1738_v5  ;;  %1755 = vmatpush3.bf16.msra.mxu1 %v1738_v5  ;;  %v480_v26 = vmax.f32 %v416_v21, 0.0  ;;  %v380_v37 = vmul.f32 %v2016_v9, %v309_v30  ;;  %v450_v42 = vadd.f32 %v2021_v10, %v379_v29  ;;  %v312_v45 = vld [vmem:[%s1988_s19 + $0x130] sm:$0xff]  ;;  %v281_v54 = vld [vmem:[%s1988_s19 + $0x38] sm:$0xff]  ;;  %v282_v60 = vld [vmem:[%s1988_s19 + $0x40] sm:$0xff] }
  0x3a   : > { %1743 = vmatprep.subr.bf16.mxu0 %v1742_v16  ;;  %1752 = vmatprep.subr.bf16.mxu1 %v1742_v16  ;;  %v381_v43 = vmul.f32 %v2016_v9, %v310_v33  ;;  %v481_v46 = vmax.f32 %v417_v34, 0.0  ;;  %v419_v47 = vadd.f32 %v2021_v10, %v348_v35  ;;  %v350_v48 = vmul.f32 %v2016_v9, %v279_v39  ;;  %v313_v59 = vld [vmem:[%s1988_s19 + $0x138] sm:$0xff]  ;;  %v314_v61 = vld [vmem:[%s1988_s19 + $0x140] sm:$0xff]  ;;  %v283_v6 = vld [vmem:[%s1988_s19 + $0x48] sm:$0xff] }
  0x3b   : > { %v512_v27 = vmax.f32 %v448_v22, 0.0  ;;  %1638 = vmatprep.mubr.msk.f32.mxu0 %vm552_vm0, %v480_v26  ;;  %v382_v49 = vmul.f32 %v2016_v9, %v311_v40  ;;  %v513_v50 = vmax.f32 %v449_v36, 0.0  ;;  %v451_v51 = vadd.f32 %v2021_v10, %v380_v37  ;;  %v315_v13 = vld [vmem:[%s1988_s19 + $0x148] sm:$0xff]  ;;  %v284_v14 = vld [vmem:[%s1988_s19 + $0x50] sm:$0xff]  ;;  %v285_v24 = vld [vmem:[%s1988_s19 + $0x58] sm:$0xff] }
  0x3c   : > { %v420_v52 = vadd.f32 %v2021_v10, %v349_v38  ;;  %v351_v53 = vmul.f32 %v2016_v9, %v280_v44  ;;  %v482_v55 = vmax.f32 %v418_v41, 0.0  ;;  %v514_v56 = vmax.f32 %v450_v42, 0.0  ;;  %v316_v15 = vld [vmem:[%s1988_s19 + $0x150] sm:$0xff]  ;;  %v317_v25 = vld [vmem:[%s1988_s19 + $0x158] sm:$0xff]  ;;  %v286_v30 = vld [vmem:[%s1988_s19 + $0x60] sm:$0xff] }
  0x3d   : > { %1686 = vmatprep.mubr.msk.f32.mxu1 %vm552_vm0, %v512_v27  ;;  %1745 = vmatpush3.bf16.msra.mxu0 %v1742_v16  ;;  %v452_v57 = vadd.f32 %v2021_v10, %v381_v43  ;;  %v383_v58 = vmul.f32 %v2016_v9, %v312_v45  ;;  %v483_v62 = vmax.f32 %v419_v47, 0.0  ;;  %v421_v63 = vadd.f32 %v2021_v10, %v350_v48  ;;  %v318_v31 = vld [vmem:[%s1988_s19 + $0x160] sm:$0xff]  ;;  %v287_v40 = vld [vmem:[%s1988_s19 + $0x68] sm:$0xff]  ;;  %v320_v47 = vld [vmem:[%s1988_s19 + $0x170] sm:$0xff] }
  0x3e   : > { %1756 = vmatpush3.bf16.msra.mxu1 %v1742_v16  ;;  %1747 = vmatprep.subr.bf16.mxu0 %v1746_v32  ;;  %v453_v0 = vadd.f32 %v2021_v10, %v382_v49  ;;  %v352_v1 = vmul.f32 %v2016_v9, %v281_v54  ;;  %v515_v2 = vmax.f32 %v451_v51, 0.0  ;;  %v484_v3 = vmax.f32 %v420_v52, 0.0  ;;  %v319_v41 = vld [vmem:[%s1988_s19 + $0x168] sm:$0xff] }
  0x3f   : > { %1753 = vmatprep.subr.bf16.mxu1 %v1746_v32  ;;  %v422_v4 = vadd.f32 %v2021_v10, %v351_v53  ;;  %v384_v5 = vmul.f32 %v2016_v9, %v313_v59  ;;  %v516_v7 = vmax.f32 %v452_v57, 0.0  ;;  %v454_v8 = vadd.f32 %v2021_v10, %v383_v58 }
  0x40   : > { %v353_v11 = vmul.f32 %v2016_v9, %v282_v60  ;;  %v385_v12 = vmul.f32 %v2016_v9, %v314_v61  ;;  %v485_v16 = vmax.f32 %v421_v63, 0.0  ;;  %v517_v17 = vmax.f32 %v453_v0, 0.0  ;;  %v289_v60 = vld [vmem:[%s1988_s19 + $0x78] sm:$0xff]  ;;  %v322_v63 = vld [vmem:[%s1988_s19 + $0x180] sm:$0xff] }
  0x41   : > { %1749 = vmatpush3.bf16.msra.mxu0 %v1746_v32  ;;  %v423_v18 = vadd.f32 %v2021_v10, %v352_v1  ;;  %v354_v19 = vmul.f32 %v2016_v9, %v283_v6  ;;  %v486_v20 = vmax.f32 %v422_v4, 0.0  ;;  %v455_v21 = vadd.f32 %v2021_v10, %v384_v5  ;;  %v321_v61 = vld [vmem:[%s1988_s19 + $0x178] sm:$0xff]  ;;  %v291_v4 = vld [vmem:[%s1988_s19 + $0x88] sm:$0xff] }
  0x42   : > { %1757 = vmatpush3.bf16.msra.mxu1 %v1746_v32  ;;  %v386_v22 = vmul.f32 %v2016_v9, %v315_v13  ;;  %v355_v23 = vmul.f32 %v2016_v9, %v284_v14  ;;  %v518_v26 = vmax.f32 %v454_v8, 0.0  ;;  %v424_v27 = vadd.f32 %v2021_v10, %v353_v11  ;;  %v323_v5 = vld [vmem:[%s1988_s19 + $0x188] sm:$0xff]  ;;  %v324_v13 = vld [vmem:[%s1988_s19 + $0x190] sm:$0xff] }
  0x43   : > { %v456_v28 = vadd.f32 %v2021_v10, %v385_v12  ;;  %v387_v29 = vmul.f32 %v2016_v9, %v316_v15  ;;  %v487_v32 = vmax.f32 %v423_v18, 0.0  ;;  %v425_v33 = vadd.f32 %v2021_v10, %v354_v19  ;;  %v292_v12 = vld [vmem:[%s1988_s19 + $0x90] sm:$0xff]  ;;  %v293_v18 = vld [vmem:[%s1988_s19 + $0x98] sm:$0xff] }
  0x44   : > { %1639 = vmatmul.mubr.msk.f32.vlgmr.msra.gmra.mrb[0].mxu0 %vm552_vm0, %v481_v46  ;;  %v356_v34 = vmul.f32 %v2016_v9, %v285_v24  ;;  %v388_v35 = vmul.f32 %v2016_v9, %v317_v25  ;;  %v519_v36 = vmax.f32 %v455_v21, 0.0  ;;  %v457_v37 = vadd.f32 %v2021_v10, %v386_v22  ;;  %v288_v46 = vld [vmem:[%s1988_s19 + $0x70] sm:$0xff]  ;;  %v325_v21 = vld [vmem:[%s1988_s19 + $0x198] sm:$0xff] }
  0x45   : > { %1687 = vmatmul.mubr.msk.f32.vlgmr.msra.gmra.mrb[0].mxu1 %vm552_vm0, %v513_v50  ;;  %1641 = vmatprep.mubr.msk.f32.mxu0 %vm552_vm0, %v482_v55  ;;  %v426_v38 = vadd.f32 %v2021_v10, %v355_v23  ;;  %v357_v39 = vmul.f32 %v2016_v9, %v286_v30  ;;  %v488_v42 = vmax.f32 %v424_v27, 0.0  ;;  %v520_v43 = vmax.f32 %v456_v28, 0.0  ;;  %v294_v30 = vld [vmem:[%s1988_s19 + $0xa0] sm:$0xff] }
  0x46   : > { %1689 = vmatprep.mubr.msk.f32.mxu1 %vm552_vm0, %v514_v56  ;;  %v458_v44 = vadd.f32 %v2021_v10, %v387_v29  ;;  %v389_v45 = vmul.f32 %v2016_v9, %v318_v31  ;;  %v427_v48 = vadd.f32 %v2021_v10, %v356_v34  ;;  %v459_v49 = vadd.f32 %v2021_v10, %v388_v35  ;;  %v326_v31 = vld [vmem:[%s1988_s19 + $0x1a0] sm:$0xff] }
  0x47   : > { %v358_v50 = vmul.f32 %v2016_v9, %v287_v40  ;;  %v390_v51 = vmul.f32 %v2016_v9, %v319_v41  ;;  %v489_v52 = vmax.f32 %v425_v33, 0.0  ;;  %v521_v53 = vmax.f32 %v457_v37, 0.0 }
  0x48   : > { %1642 = vmatmul.mubr.msk.f32.gmra.mrb[2].mxu0 %vm552_vm0, %v483_v62  ;;  %v428_v54 = vadd.f32 %v2021_v10, %v357_v39  ;;  %v359_v55 = vmul.f32 %v2016_v9, %v288_v46  ;;  %v490_v56 = vmax.f32 %v426_v38, 0.0  ;;  %v522_v57 = vmax.f32 %v458_v44, 0.0  ;;  %v290_v62 = vld [vmem:[%s1988_s19 + $0x80] sm:$0xff]  ;;  %v327_v39 = vld [vmem:[%s1988_s19 + $0x1a8] sm:$0xff]  ;;  %v296_v44 = vld [vmem:[%s1988_s19 + $0xb0] sm:$0xff] }
  0x49   : > { %1690 = vmatmul.mubr.msk.f32.gmra.mrb[2].mxu1 %vm552_vm0, %v515_v2  ;;  %1644 = vmatprep.mubr.msk.f32.mxu0 %vm552_vm0, %v484_v3  ;;  %v460_v58 = vadd.f32 %v2021_v10, %v389_v45  ;;  %v391_v59 = vmul.f32 %v2016_v9, %v320_v47  ;;  %v491_v0 = vmax.f32 %v427_v48, 0.0  ;;  %v523_v1 = vmax.f32 %v459_v49, 0.0 }
  0x4a   : > { %1692 = vmatprep.mubr.msk.f32.mxu1 %vm552_vm0, %v516_v7  ;;  %v429_v2 = vadd.f32 %v2021_v10, %v358_v50  ;;  %v461_v3 = vadd.f32 %v2021_v10, %v390_v51  ;;  %v492_v6 = vmax.f32 %v428_v54, 0.0  ;;  %v430_v7 = vadd.f32 %v2021_v10, %v359_v55  ;;  %v335_v54 = vld [vmem:[%s1988_s19 + $0x1e8] sm:$0xff] }
  0x4b   : > { %v360_v8 = vmul.f32 %v2016_v9, %v289_v60  ;;  %v392_v11 = vmul.f32 %v2016_v9, %v321_v61  ;;  %v524_v14 = vmax.f32 %v460_v58, 0.0  ;;  %v462_v15 = vadd.f32 %v2021_v10, %v391_v59  ;;  %v328_v58 = vld [vmem:[%s1988_s19 + $0x1b0] sm:$0xff] }
  0x4c   : > { %1645 = vmatmul.mubr.msk.f32.gmra.mrb[4].mxu0 %vm552_vm0, %v485_v16  ;;  %v361_v16 = vmul.f32 %v2016_v9, %v290_v62  ;;  %v362_v19 = vmul.f32 %v2016_v9, %v291_v4  ;;  %v493_v22 = vmax.f32 %v429_v2, 0.0  ;;  %v525_v23 = vmax.f32 %v461_v3, 0.0  ;;  %v304_v59 = vld [vmem:[%s1988_s19 + $0xf0] sm:$0xff]  ;;  %v297_v3 = vld [vmem:[%s1988_s19 + $0xb8] sm:$0xff] }
  0x4d   : > { %1693 = vmatmul.mubr.msk.f32.gmra.mrb[4].mxu1 %vm552_vm0, %v517_v17  ;;  %1647 = vmatprep.mubr.msk.f32.mxu0 %vm552_vm0, %v486_v20  ;;  %v393_v17 = vmul.f32 %v2016_v9, %v322_v63  ;;  %v394_v20 = vmul.f32 %v2016_v9, %v323_v5  ;;  %v363_v24 = vmul.f32 %v2016_v9, %v292_v12  ;;  %v329_v4 = vld [vmem:[%s1988_s19 + $0x1b8] sm:$0xff] }
  0x4e   : > { %1695 = vmatprep.mubr.msk.f32.mxu1 %vm552_vm0, %v518_v26  ;;  %v395_v25 = vmul.f32 %v2016_v9, %v324_v13  ;;  %v494_v26 = vmax.f32 %v430_v7, 0.0  ;;  %v431_v27 = vadd.f32 %v2021_v10, %v360_v8  ;;  %v463_v28 = vadd.f32 %v2021_v10, %v392_v11  ;;  %v305_v7 = vld [vmem:[%s1988_s19 + $0xf8] sm:$0xff]  ;;  %v298_v13 = vld [vmem:[%s1988_s19 + $0xc0] sm:$0xff] }
  0x4f   : > { %v364_v29 = vmul.f32 %v2016_v9, %v293_v18  ;;  %v432_v33 = vadd.f32 %v2021_v10, %v361_v16  ;;  %v464_v34 = vadd.f32 %v2021_v10, %v393_v17  ;;  %v396_v35 = vmul.f32 %v2016_v9, %v325_v21  ;;  %v330_v17 = vld [vmem:[%s1988_s19 + $0x1c0] sm:$0xff] }
  0x50   : > { %1648 = vmatmul.mubr.msk.f32.gmra.mrb[6].mxu0 %vm552_vm0, %v487_v32  ;;  %v526_v32 = vmax.f32 %v462_v15, 0.0  ;;  %v433_v37 = vadd.f32 %v2021_v10, %v362_v19  ;;  %v465_v38 = vadd.f32 %v2021_v10, %v394_v20  ;;  %v2175_v40 = vadd.f32 %v2021_v10, %v363_v24  ;;  %v337_v15 = vld [vmem:[%s1988_s19 + $0x1f8] sm:$0xff] }
  0x51   : > { %1696 = vmatmul.mubr.msk.f32.gmra.mrb[6].mxu1 %vm552_vm0, %v519_v36  ;;  %1650 = vmatprep.mubr.msk.f32.mxu0 %vm552_vm0, %v488_v42  ;;  %v295_v36 = vld [vmem:[%s1988_s19 + $0xa8] sm:$0xff]  ;;  %v2178_v41 = vadd.f32 %v2021_v10, %v395_v25  ;;  %v365_v42 = vmul.f32 %v2016_v9, %v294_v30  ;;  %v495_v45 = vmax.f32 %v431_v27, 0.0  ;;  %v527_v46 = vmax.f32 %v463_v28, 0.0 }
  0x52   : > { %1698 = vmatprep.mubr.msk.f32.mxu1 %vm552_vm0, %v520_v43  ;;  %v397_v43 = vmul.f32 %v2016_v9, %v326_v31  ;;  %v2186_v47 = vadd.f32 %v2021_v10, %v364_v29  ;;  %v366_v48 = vmul.f32 %v2016_v9, %v295_v36  ;;  %v496_v49 = vmax.f32 %v432_v33, 0.0  ;;  %v299_v27 = vld [vmem:[%s1988_s19 + $0xc8] sm:$0xff]  ;;  %v332_v36 = vld [vmem:[%s1988_s19 + $0x1d0] sm:$0xff] }
  0x53   : > { %v528_v50 = vmax.f32 %v464_v34, 0.0  ;;  %v2192_v51 = vadd.f32 %v2021_v10, %v396_v35  ;;  %v497_v55 = vmax.f32 %v433_v37, 0.0  ;;  %v498_v60 = vmax.f32 %v2175_v40, 0.0  ;;  %v331_v28 = vld [vmem:[%s1988_s19 + $0x1c8] sm:$0xff]  ;;  %v300_v34 = vld [vmem:[%s1988_s19 + $0xd0] sm:$0xff] }
  0x54   : > { %1651 = vmatmul.mubr.msk.f32.gmra.mrb[8].mxu0 %vm552_vm0, %v489_v52  ;;  %v398_v52 = vmul.f32 %v2016_v9, %v327_v39  ;;  %v530_v61 = vmax.f32 %v2178_v41, 0.0  ;;  %v436_v62 = vadd.f32 %v2021_v10, %v365_v42  ;;  %v468_v63 = vadd.f32 %v2021_v10, %v397_v43 }
  0x55   : > { %1699 = vmatmul.mubr.msk.f32.gmra.mrb[8].mxu1 %vm552_vm0, %v521_v53  ;;  %1653 = vmatprep.mubr.msk.f32.mxu0 %vm552_vm0, %v490_v56  ;;  %v303_v53 = vld [vmem:[%s1988_s19 + $0xe8] sm:$0xff]  ;;  %v529_v56 = vmax.f32 %v465_v38, 0.0  ;;  %v2209_v2 = vadd.f32 %v2021_v10, %v366_v48  ;;  %v531_v8 = vmax.f32 %v2192_v51, 0.0  ;;  %v399_v12 = vmul.f32 %v2016_v9, %v328_v58  ;;  %v333_v51 = vld [vmem:[%s1988_s19 + $0x1d8] sm:$0xff] }
  0x56   : > { %1701 = vmatprep.mubr.msk.f32.mxu1 %vm552_vm0, %v522_v57  ;;  %v367_v57 = vmul.f32 %v2016_v9, %v296_v44  ;;  %v374_v5 = vmul.f32 %v2016_v9, %v303_v53  ;;  %v469_v11 = vadd.f32 %v2021_v10, %v398_v52  ;;  %v368_v21 = vmul.f32 %v2016_v9, %v297_v3  ;;  %v302_v52 = vld [vmem:[%s1988_s19 + $0xe0] sm:$0xff] }
  0x57   : > { %v376_v24 = vmul.f32 %v2016_v9, %v305_v7  ;;  %v500_v25 = vmax.f32 %v436_v62, 0.0  ;;  %v408_v30 = vmul.f32 %v2016_v9, %v337_v15  ;;  %v532_v31 = vmax.f32 %v468_v63, 0.0  ;;  %v334_v53 = vld [vmem:[%s1988_s19 + $0x1e0] sm:$0xff] }
  0x58   : > { %1654 = vmatmul.mubr.msk.f32.gmra.mrb[10].mxu0 %vm552_vm0, %v491_v0  ;;  %v336_v0 = vld [vmem:[%s1988_s19 + $0x1f0] sm:$0xff]  ;;  %v438_v16 = vadd.f32 %v2021_v10, %v367_v57  ;;  %v2227_v18 = vadd.f32 %v2021_v10, %v374_v5  ;;  %v401_v33 = vmul.f32 %v2016_v9, %v330_v17  ;;  %v439_v38 = vadd.f32 %v2021_v10, %v368_v21 }
  0x59   : > { %1702 = vmatmul.mubr.msk.f32.gmra.mrb[10].mxu1 %vm552_vm0, %v523_v1  ;;  %1656 = vmatprep.mubr.msk.f32.mxu0 %vm552_vm0, %v492_v6  ;;  %v499_v1 = vmax.f32 %v2186_v47, 0.0  ;;  %v406_v6 = vmul.f32 %v2016_v9, %v335_v54  ;;  %v407_v20 = vmul.f32 %v2016_v9, %v336_v0  ;;  %v2254_v35 = vadd.f32 %v2021_v10, %v376_v24 }
  0x5a   : > { %1704 = vmatprep.mubr.msk.f32.mxu1 %vm552_vm0, %v524_v14  ;;  %v375_v14 = vmul.f32 %v2016_v9, %v304_v59  ;;  %v2258_v37 = vadd.f32 %v2021_v10, %v408_v30  ;;  %v370_v40 = vmul.f32 %v2016_v9, %v299_v27  ;;  %v402_v41 = vmul.f32 %v2016_v9, %v331_v28 }
  0x5b   : > { %v2230_v19 = vadd.f32 %v2021_v10, %v406_v6  ;;  %v2245_v29 = vadd.f32 %v2021_v10, %v407_v20  ;;  %v501_v42 = vmax.f32 %v2209_v2, 0.0  ;;  %v533_v43 = vmax.f32 %v469_v11, 0.0 }
  0x5c   : > { %1657 = vmatmul.mubr.msk.f32.gmra.mrb[12].mxu0 %vm552_vm0, %v493_v22  ;;  %v400_v22 = vmul.f32 %v2016_v9, %v329_v4  ;;  %v472_v48 = vadd.f32 %v2021_v10, %v401_v33  ;;  %v503_v54 = vmax.f32 %v439_v38, 0.0  ;;  %v473_v57 = vadd.f32 %v2021_v10, %v402_v41 }
  0x5d   : > { %1705 = vmatmul.mubr.msk.f32.gmra.mrb[12].mxu1 %vm552_vm0, %v525_v23  ;;  %1659 = vmatprep.mubr.msk.f32.mxu0 %vm552_vm0, %v494_v26  ;;  %v2236_v23 = vadd.f32 %v2021_v10, %v375_v14  ;;  %v369_v26 = vmul.f32 %v2016_v9, %v298_v13  ;;  %v373_v0 = vmul.f32 %v2016_v9, %v302_v52  ;;  %v509_v15 = vmax.f32 %v2227_v18, 0.0  ;;  %v2322_v18 = vld [vmem:[%s2607_s4] ss:$0 sm:$0xff] }
  0x5e   : > { %1707 = vmatprep.mubr.msk.f32.mxu1 %vm552_vm0, %v526_v32  ;;  %v470_v32 = vadd.f32 %v2021_v10, %v399_v12  ;;  %v471_v39 = vadd.f32 %v2021_v10, %v400_v22  ;;  %v536_v62 = vmax.f32 %v472_v48, 0.0  ;;  %v537_v3 = vmax.f32 %v473_v57, 0.0  ;;  %v2327_v22 = vld [vmem:[%s2608_s5] ss:$0 sm:$0xff] }
  0x5f   : > { %v440_v44 = vadd.f32 %v2021_v10, %v369_v26  ;;  %v542_v17 = vmax.f32 %v2245_v29, 0.0  ;;  %v511_v20 = vmax.f32 %v2254_v35, 0.0  ;;  %v543_v21 = vmax.f32 %v2258_v37, 0.0 }
  0x60   : > { %1660 = vmatmul.mubr.msk.f32.gmra.mrb[14].mxu0 %vm552_vm0, %v495_v45  ;;  %v371_v45 = vmul.f32 %v2016_v9, %v300_v34  ;;  %v534_v47 = vmax.f32 %v470_v32, 0.0 }
  0x61   : > { %1708 = vmatmul.mubr.msk.f32.gmra.mrb[14].mxu1 %vm552_vm0, %v527_v46  ;;  %1662 = vmatprep.mubr.msk.f32.mxu0 %vm552_vm0, %v496_v49  ;;  %v502_v46 = vmax.f32 %v438_v16, 0.0  ;;  %v403_v49 = vmul.f32 %v2016_v9, %v332_v36  ;;  %v504_v58 = vmax.f32 %v440_v44, 0.0  ;;  %v510_v16 = vmax.f32 %v2236_v23, 0.0 }
  0x62   : > { %1710 = vmatprep.mubr.msk.f32.mxu1 %vm552_vm0, %v528_v50  ;;  %v301_v50 = vld [vmem:[%s1988_s19 + $0xd8] sm:$0xff]  ;;  %v442_v59 = vadd.f32 %v2021_v10, %v371_v45  ;;  %s1477_s19 = sshll.u32 %s1468_s25, 6 }
  0x63   : > { %v474_v63 = vadd.f32 %v2021_v10, %v403_v49  ;;  %p269_p7 = scmp.lt.s32.totalorder %s1477_s19, 127 }
  0x64   : > { %1663 = vmatmul.mubr.msk.f32.gmra.mrb[16].mxu0 %vm552_vm0, %v497_v55  ;;  %v535_v55 = vmax.f32 %v471_v39, 0.0  ;;  %v506_v6 = vmax.f32 %v442_v59, 0.0 }
  0x65   : > { %1711 = vmatmul.mubr.msk.f32.gmra.mrb[16].mxu1 %vm552_vm0, %v529_v56  ;;  %1665 = vmatprep.mubr.msk.f32.mxu0 %vm552_vm0, %v498_v60  ;;  %v441_v56 = vadd.f32 %v2021_v10, %v370_v40  ;;  %v372_v60 = vmul.f32 %v2016_v9, %v301_v50  ;;  %v538_v7 = vmax.f32 %v474_v63, 0.0  ;;  %s2618_s19 = smov (!%p269_p7, %s1477_s19), 127 }
  0x66   : > { %1713 = vmatprep.mubr.msk.f32.mxu1 %vm552_vm0, %v530_v61  ;;  %v404_v61 = vmul.f32 %v2016_v9, %v333_v51  ;;  %s1478_s28 = sshll.u32 %s2618_s19, 3 }
  0x67   : > { %v505_v2 = vmax.f32 %v441_v56, 0.0  ;;  %v443_v4 = vadd.f32 %v2021_v10, %v372_v60  ;;  %s2338_s30 = scalar_lea.vmem %s2609_s6, %s1478_s28 }
  0x68   : > { %1666 = vmatmul.mubr.msk.f32.gmra.mrb[18].mxu0 %vm552_vm0, %v499_v1  ;;  %v405_v1 = vmul.f32 %v2016_v9, %v334_v53  ;;  %v475_v5 = vadd.f32 %v2021_v10, %v404_v61 }
  0x69   : > { %1714 = vmatmul.mubr.msk.f32.gmra.mrb[18].mxu1 %vm552_vm0, %v531_v8  ;;  %1668 = vmatprep.mubr.msk.f32.mxu0 %vm552_vm0, %v500_v25  ;;  %v444_v8 = vadd.f32 %v2021_v10, %v373_v0  ;;  %v507_v11 = vmax.f32 %v443_v4, 0.0 }
  0x6a   : > { %1716 = vmatprep.mubr.msk.f32.mxu1 %vm552_vm0, %v532_v31  ;;  %v476_v9 = vadd.f32 %v2021_v10, %v405_v1  ;;  %v539_v12 = vmax.f32 %v475_v5, 0.0  ;;  %v541_v10 = vmax.f32 %v2230_v19, 0.0 }
  0x6b   : > { %v508_v13 = vmax.f32 %v444_v8, 0.0 }
  0x6c   : > { %1669 = vmatmul.mubr.msk.f32.gmra.mrb[20].mxu0 %vm552_vm0, %v501_v42  ;;  %v540_v14 = vmax.f32 %v476_v9, 0.0 }
  0x6d   : > { %1717 = vmatmul.mubr.msk.f32.gmra.mrb[20].mxu1 %vm552_vm0, %v533_v43  ;;  %1671 = vmatprep.mubr.msk.f32.mxu0 %vm552_vm0, %v502_v46 }
  0x6e   : > { %1719 = vmatprep.mubr.msk.f32.mxu1 %vm552_vm0, %v534_v47 }
  0x70   : > { %1672 = vmatmul.mubr.msk.f32.gmra.mrb[22].mxu0 %vm552_vm0, %v503_v54 }
  0x71   : > { %1720 = vmatmul.mubr.msk.f32.gmra.mrb[22].mxu1 %vm552_vm0, %v535_v55  ;;  %1674 = vmatprep.mubr.msk.f32.mxu0 %vm552_vm0, %v504_v58 }
  0x72   : > { %1722 = vmatprep.mubr.msk.f32.mxu1 %vm552_vm0, %v536_v62 }
  0x74   : > { %1675 = vmatmul.mubr.msk.f32.gmra.mrb[24].mxu0 %vm552_vm0, %v505_v2 }
  0x75   : > { %1723 = vmatmul.mubr.msk.f32.gmra.mrb[24].mxu1 %vm552_vm0, %v537_v3  ;;  %1677 = vmatprep.mubr.msk.f32.mxu0 %vm552_vm0, %v506_v6 }
  0x76   : > { %1725 = vmatprep.mubr.msk.f32.mxu1 %vm552_vm0, %v538_v7 }
  0x78   : > { %1678 = vmatmul.mubr.msk.f32.gmra.mrb[26].mxu0 %vm552_vm0, %v507_v11 }
  0x79   : > { %1726 = vmatmul.mubr.msk.f32.gmra.mrb[26].mxu1 %vm552_vm0, %v539_v12  ;;  %1680 = vmatprep.mubr.msk.f32.mxu0 %vm552_vm0, %v508_v13 }
  0x7a   : > { %1728 = vmatprep.mubr.msk.f32.mxu1 %vm552_vm0, %v540_v14 }
  0x7c   : > { %1681 = vmatmul.mubr.msk.f32.gmra.mrb[28].mxu0 %vm552_vm0, %v509_v15 }
  0x7d   : > { %1729 = vmatmul.mubr.msk.f32.gmra.mrb[28].mxu1 %vm552_vm0, %v541_v10  ;;  %1683 = vmatprep.mubr.msk.f32.mxu0 %vm552_vm0, %v510_v16 }
  0x7e   : > { %1731 = vmatprep.mubr.msk.f32.mxu1 %vm552_vm0, %v542_v17 }
  0x80   : > { %1684 = vmatmul.mubr.msk.f32.gmra.mrb[30].mxu0 %vm552_vm0, %v511_v20 }
  0x81   : > { %1732 = vmatmul.mubr.msk.f32.gmra.mrb[30].mxu1 %vm552_vm0, %v543_v21 }
 0x117   : > { %v1640_v19 = vpop.f32.mrb[0].mxu0 }
 0x118   : > { %v1688_v23 = vpop.f32.mrb[0].mxu1  ;;  %v1138_v24 = vmul.f32 %v1640_v19, %v2322_v18  ;;  %v811_v26 = vpop.f32.mrb[1].mxu0 }
 0x119   : > { %v1170_v25 = vmul.f32 %v1688_v23, %v2322_v18  ;;  %v971_v27 = vpop.f32.mrb[1].mxu1  ;;  %v1137_v28 = vmul.f32 %v2322_v18, %v811_v26 }
 0x11a   : > { %v1169_v29 = vmul.f32 %v2322_v18, %v971_v27  ;;  %v1209_v30 = vadd.f32 %v2327_v22, %v1138_v24 }
 0x11b   : > { %v1241_v31 = vadd.f32 %v2327_v22, %v1170_v25  ;;  %v1208_v32 = vadd.f32 %v2327_v22, %v1137_v28  ;;  %v1643_v34 = vpop.f32.mrb[2].mxu0 }
 0x11c   : > { %v1240_v33 = vadd.f32 %v2327_v22, %v1169_v29  ;;  %v1691_v35 = vpop.f32.mrb[2].mxu1  ;;  %v1273_v36 = vmax.f32 %v1209_v30, 0.0  ;;  %v1140_v38 = vmul.f32 %v1643_v34, %v2322_v18  ;;  %v821_v40 = vpop.f32.mrb[3].mxu0 }
 0x11d   : > { %v1305_v37 = vmax.f32 %v1241_v31, 0.0  ;;  %v1172_v39 = vmul.f32 %v1691_v35, %v2322_v18  ;;  %v981_v41 = vpop.f32.mrb[3].mxu1  ;;  %v1272_v42 = vmax.f32 %v1208_v32, 0.0  ;;  %v1139_v44 = vmul.f32 %v2322_v18, %v821_v40 }
 0x11e   : > { %v1304_v43 = vmax.f32 %v1240_v33, 0.0  ;;  %v1171_v45 = vmul.f32 %v2322_v18, %v981_v41  ;;  %1338 = vst.msk [vmem:[%s2338_s30 + $0x8] sm:$0xff] %vm1336_vm1, %v1273_v36  ;;  %v1211_v46 = vadd.f32 %v2327_v22, %v1140_v38 }
 0x11f   : > { %1370 = vst.msk [vmem:[%s2338_s30 + $0x108] sm:$0xff] %vm1336_vm1, %v1305_v37  ;;  %v1243_v47 = vadd.f32 %v2327_v22, %v1172_v39  ;;  %1337 = vst.msk [vmem:[%s2338_s30] sm:$0xff] %vm1336_vm1, %v1272_v42  ;;  %v1210_v48 = vadd.f32 %v2327_v22, %v1139_v44  ;;  %v1646_v50 = vpop.f32.mrb[4].mxu0 }
 0x120   : > { %1369 = vst.msk [vmem:[%s2338_s30 + $0x100] sm:$0xff] %vm1336_vm1, %v1304_v43  ;;  %v1242_v49 = vadd.f32 %v2327_v22, %v1171_v45  ;;  %v1694_v51 = vpop.f32.mrb[4].mxu1  ;;  %v1275_v52 = vmax.f32 %v1211_v46, 0.0  ;;  %v1142_v54 = vmul.f32 %v1646_v50, %v2322_v18  ;;  %v831_v56 = vpop.f32.mrb[5].mxu0 }
 0x121   : > { %v1307_v53 = vmax.f32 %v1243_v47, 0.0  ;;  %v1174_v55 = vmul.f32 %v1694_v51, %v2322_v18  ;;  %v991_v57 = vpop.f32.mrb[5].mxu1  ;;  %v1274_v58 = vmax.f32 %v1210_v48, 0.0  ;;  %v1141_v60 = vmul.f32 %v2322_v18, %v831_v56 }
 0x122   : > { %v1306_v59 = vmax.f32 %v1242_v49, 0.0  ;;  %v1173_v61 = vmul.f32 %v2322_v18, %v991_v57  ;;  %1340 = vst.msk [vmem:[%s2338_s30 + $0x18] sm:$0xff] %vm1336_vm1, %v1275_v52  ;;  %v1213_v62 = vadd.f32 %v2327_v22, %v1142_v54 }
 0x123   : > { %1372 = vst.msk [vmem:[%s2338_s30 + $0x118] sm:$0xff] %vm1336_vm1, %v1307_v53  ;;  %v1245_v63 = vadd.f32 %v2327_v22, %v1174_v55  ;;  %1339 = vst.msk [vmem:[%s2338_s30 + $0x10] sm:$0xff] %vm1336_vm1, %v1274_v58  ;;  %v1212_v0 = vadd.f32 %v2327_v22, %v1141_v60  ;;  %v1649_v2 = vpop.f32.mrb[6].mxu0 }
 0x124   : > { %1371 = vst.msk [vmem:[%s2338_s30 + $0x110] sm:$0xff] %vm1336_vm1, %v1306_v59  ;;  %v1244_v1 = vadd.f32 %v2327_v22, %v1173_v61  ;;  %v1697_v3 = vpop.f32.mrb[6].mxu1  ;;  %v1277_v4 = vmax.f32 %v1213_v62, 0.0  ;;  %v1144_v6 = vmul.f32 %v1649_v2, %v2322_v18  ;;  %v841_v8 = vpop.f32.mrb[7].mxu0 }
 0x125   : > { %v1309_v5 = vmax.f32 %v1245_v63, 0.0  ;;  %v1176_v7 = vmul.f32 %v1697_v3, %v2322_v18  ;;  %v1001_v9 = vpop.f32.mrb[7].mxu1  ;;  %v1276_v11 = vmax.f32 %v1212_v0, 0.0  ;;  %v1143_v13 = vmul.f32 %v2322_v18, %v841_v8 }
 0x126   : > { %v1308_v12 = vmax.f32 %v1244_v1, 0.0  ;;  %v1175_v14 = vmul.f32 %v2322_v18, %v1001_v9  ;;  %1342 = vst.msk [vmem:[%s2338_s30 + $0x28] sm:$0xff] %vm1336_vm1, %v1277_v4  ;;  %v1215_v15 = vadd.f32 %v2327_v22, %v1144_v6 }
 0x127   : > { %1374 = vst.msk [vmem:[%s2338_s30 + $0x128] sm:$0xff] %vm1336_vm1, %v1309_v5  ;;  %v1247_v10 = vadd.f32 %v2327_v22, %v1176_v7  ;;  %1341 = vst.msk [vmem:[%s2338_s30 + $0x20] sm:$0xff] %vm1336_vm1, %v1276_v11  ;;  %v1214_v16 = vadd.f32 %v2327_v22, %v1143_v13  ;;  %v1652_v20 = vpop.f32.mrb[8].mxu0 }
 0x128   : > { %1373 = vst.msk [vmem:[%s2338_s30 + $0x120] sm:$0xff] %vm1336_vm1, %v1308_v12  ;;  %v1246_v17 = vadd.f32 %v2327_v22, %v1175_v14  ;;  %v1700_v21 = vpop.f32.mrb[8].mxu1  ;;  %v1279_v19 = vmax.f32 %v1215_v15, 0.0  ;;  %v1146_v24 = vmul.f32 %v1652_v20, %v2322_v18  ;;  %v851_v26 = vpop.f32.mrb[9].mxu0 }
 0x129   : > { %v1311_v23 = vmax.f32 %v1247_v10, 0.0  ;;  %v1178_v25 = vmul.f32 %v1700_v21, %v2322_v18  ;;  %v1011_v27 = vpop.f32.mrb[9].mxu1  ;;  %v1278_v28 = vmax.f32 %v1214_v16, 0.0  ;;  %v1145_v30 = vmul.f32 %v2322_v18, %v851_v26 }
 0x12a   : > { %v1310_v29 = vmax.f32 %v1246_v17, 0.0  ;;  %v1177_v31 = vmul.f32 %v2322_v18, %v1011_v27  ;;  %1344 = vst.msk [vmem:[%s2338_s30 + $0x38] sm:$0xff] %vm1336_vm1, %v1279_v19  ;;  %v1217_v32 = vadd.f32 %v2327_v22, %v1146_v24 }
 0x12b   : > { %1376 = vst.msk [vmem:[%s2338_s30 + $0x138] sm:$0xff] %vm1336_vm1, %v1311_v23  ;;  %v1249_v33 = vadd.f32 %v2327_v22, %v1178_v25  ;;  %1343 = vst.msk [vmem:[%s2338_s30 + $0x30] sm:$0xff] %vm1336_vm1, %v1278_v28  ;;  %v1216_v34 = vadd.f32 %v2327_v22, %v1145_v30  ;;  %v1655_v36 = vpop.f32.mrb[10].mxu0 }
 0x12c   : > { %1375 = vst.msk [vmem:[%s2338_s30 + $0x130] sm:$0xff] %vm1336_vm1, %v1310_v29  ;;  %v1248_v35 = vadd.f32 %v2327_v22, %v1177_v31  ;;  %v1703_v37 = vpop.f32.mrb[10].mxu1  ;;  %v1281_v38 = vmax.f32 %v1217_v32, 0.0  ;;  %v1148_v40 = vmul.f32 %v1655_v36, %v2322_v18  ;;  %v861_v42 = vpop.f32.mrb[11].mxu0 }
 0x12d   : > { %v1313_v39 = vmax.f32 %v1249_v33, 0.0  ;;  %v1180_v41 = vmul.f32 %v1703_v37, %v2322_v18  ;;  %v1021_v43 = vpop.f32.mrb[11].mxu1  ;;  %v1280_v44 = vmax.f32 %v1216_v34, 0.0  ;;  %v1147_v46 = vmul.f32 %v2322_v18, %v861_v42 }
 0x12e   : > { %v1312_v45 = vmax.f32 %v1248_v35, 0.0  ;;  %v1179_v47 = vmul.f32 %v2322_v18, %v1021_v43  ;;  %1346 = vst.msk [vmem:[%s2338_s30 + $0x48] sm:$0xff] %vm1336_vm1, %v1281_v38  ;;  %v1219_v48 = vadd.f32 %v2327_v22, %v1148_v40 }
 0x12f   : > { %1378 = vst.msk [vmem:[%s2338_s30 + $0x148] sm:$0xff] %vm1336_vm1, %v1313_v39  ;;  %v1251_v49 = vadd.f32 %v2327_v22, %v1180_v41  ;;  %1345 = vst.msk [vmem:[%s2338_s30 + $0x40] sm:$0xff] %vm1336_vm1, %v1280_v44  ;;  %v1218_v50 = vadd.f32 %v2327_v22, %v1147_v46  ;;  %v1658_v52 = vpop.f32.mrb[12].mxu0 }
 0x130   : > { %1377 = vst.msk [vmem:[%s2338_s30 + $0x140] sm:$0xff] %vm1336_vm1, %v1312_v45  ;;  %v1250_v51 = vadd.f32 %v2327_v22, %v1179_v47  ;;  %v1706_v53 = vpop.f32.mrb[12].mxu1  ;;  %v1283_v54 = vmax.f32 %v1219_v48, 0.0  ;;  %v1150_v56 = vmul.f32 %v1658_v52, %v2322_v18  ;;  %v871_v58 = vpop.f32.mrb[13].mxu0 }
 0x131   : > { %v1315_v55 = vmax.f32 %v1251_v49, 0.0  ;;  %v1182_v57 = vmul.f32 %v1706_v53, %v2322_v18  ;;  %v1031_v59 = vpop.f32.mrb[13].mxu1  ;;  %v1282_v60 = vmax.f32 %v1218_v50, 0.0  ;;  %v1149_v62 = vmul.f32 %v2322_v18, %v871_v58 }
 0x132   : > { %v1314_v61 = vmax.f32 %v1250_v51, 0.0  ;;  %v1181_v63 = vmul.f32 %v2322_v18, %v1031_v59  ;;  %1348 = vst.msk [vmem:[%s2338_s30 + $0x58] sm:$0xff] %vm1336_vm1, %v1283_v54  ;;  %v1221_v0 = vadd.f32 %v2327_v22, %v1150_v56 }
 0x133   : > { %1380 = vst.msk [vmem:[%s2338_s30 + $0x158] sm:$0xff] %vm1336_vm1, %v1315_v55  ;;  %v1253_v1 = vadd.f32 %v2327_v22, %v1182_v57  ;;  %1347 = vst.msk [vmem:[%s2338_s30 + $0x50] sm:$0xff] %vm1336_vm1, %v1282_v60  ;;  %v1220_v2 = vadd.f32 %v2327_v22, %v1149_v62  ;;  %v1661_v4 = vpop.f32.mrb[14].mxu0 }
 0x134   : > { %1379 = vst.msk [vmem:[%s2338_s30 + $0x150] sm:$0xff] %vm1336_vm1, %v1314_v61  ;;  %v1252_v3 = vadd.f32 %v2327_v22, %v1181_v63  ;;  %v1709_v5 = vpop.f32.mrb[14].mxu1  ;;  %v1285_v6 = vmax.f32 %v1221_v0, 0.0  ;;  %v1152_v8 = vmul.f32 %v1661_v4, %v2322_v18  ;;  %v881_v11 = vpop.f32.mrb[15].mxu0 }
 0x135   : > { %v1317_v7 = vmax.f32 %v1253_v1, 0.0  ;;  %v1184_v9 = vmul.f32 %v1709_v5, %v2322_v18  ;;  %v1041_v12 = vpop.f32.mrb[15].mxu1  ;;  %v1284_v13 = vmax.f32 %v1220_v2, 0.0  ;;  %v1151_v15 = vmul.f32 %v2322_v18, %v881_v11 }
 0x136   : > { %v1316_v14 = vmax.f32 %v1252_v3, 0.0  ;;  %v1183_v10 = vmul.f32 %v2322_v18, %v1041_v12  ;;  %1350 = vst.msk [vmem:[%s2338_s30 + $0x68] sm:$0xff] %vm1336_vm1, %v1285_v6  ;;  %v1223_v16 = vadd.f32 %v2327_v22, %v1152_v8 }
 0x137   : > { %1382 = vst.msk [vmem:[%s2338_s30 + $0x168] sm:$0xff] %vm1336_vm1, %v1317_v7  ;;  %v1255_v17 = vadd.f32 %v2327_v22, %v1184_v9  ;;  %1349 = vst.msk [vmem:[%s2338_s30 + $0x60] sm:$0xff] %vm1336_vm1, %v1284_v13  ;;  %v1222_v20 = vadd.f32 %v2327_v22, %v1151_v15  ;;  %v1664_v19 = vpop.f32.mrb[16].mxu0 }
 0x138   : > { %1381 = vst.msk [vmem:[%s2338_s30 + $0x160] sm:$0xff] %vm1336_vm1, %v1316_v14  ;;  %v1254_v21 = vadd.f32 %v2327_v22, %v1183_v10  ;;  %v1712_v23 = vpop.f32.mrb[16].mxu1  ;;  %v1287_v24 = vmax.f32 %v1223_v16, 0.0  ;;  %v1154_v26 = vmul.f32 %v1664_v19, %v2322_v18  ;;  %v891_v28 = vpop.f32.mrb[17].mxu0 }
 0x139   : > { %v1319_v25 = vmax.f32 %v1255_v17, 0.0  ;;  %v1186_v27 = vmul.f32 %v1712_v23, %v2322_v18  ;;  %v1051_v29 = vpop.f32.mrb[17].mxu1  ;;  %v1286_v30 = vmax.f32 %v1222_v20, 0.0  ;;  %v1153_v32 = vmul.f32 %v2322_v18, %v891_v28 }
 0x13a   : > { %v1318_v31 = vmax.f32 %v1254_v21, 0.0  ;;  %v1185_v33 = vmul.f32 %v2322_v18, %v1051_v29  ;;  %1352 = vst.msk [vmem:[%s2338_s30 + $0x78] sm:$0xff] %vm1336_vm1, %v1287_v24  ;;  %v1225_v34 = vadd.f32 %v2327_v22, %v1154_v26 }
 0x13b   : > { %1384 = vst.msk [vmem:[%s2338_s30 + $0x178] sm:$0xff] %vm1336_vm1, %v1319_v25  ;;  %v1257_v35 = vadd.f32 %v2327_v22, %v1186_v27  ;;  %1351 = vst.msk [vmem:[%s2338_s30 + $0x70] sm:$0xff] %vm1336_vm1, %v1286_v30  ;;  %v1224_v36 = vadd.f32 %v2327_v22, %v1153_v32  ;;  %v1667_v38 = vpop.f32.mrb[18].mxu0 }
 0x13c   : > { %1383 = vst.msk [vmem:[%s2338_s30 + $0x170] sm:$0xff] %vm1336_vm1, %v1318_v31  ;;  %v1256_v37 = vadd.f32 %v2327_v22, %v1185_v33  ;;  %v1715_v39 = vpop.f32.mrb[18].mxu1  ;;  %v1289_v40 = vmax.f32 %v1225_v34, 0.0  ;;  %v1156_v42 = vmul.f32 %v1667_v38, %v2322_v18  ;;  %v901_v44 = vpop.f32.mrb[19].mxu0 }
 0x13d   : > { %v1321_v41 = vmax.f32 %v1257_v35, 0.0  ;;  %v1188_v43 = vmul.f32 %v1715_v39, %v2322_v18  ;;  %v1061_v45 = vpop.f32.mrb[19].mxu1  ;;  %v1288_v46 = vmax.f32 %v1224_v36, 0.0  ;;  %v1155_v48 = vmul.f32 %v2322_v18, %v901_v44 }
 0x13e   : > { %v1320_v47 = vmax.f32 %v1256_v37, 0.0  ;;  %v1187_v49 = vmul.f32 %v2322_v18, %v1061_v45  ;;  %1354 = vst.msk [vmem:[%s2338_s30 + $0x88] sm:$0xff] %vm1336_vm1, %v1289_v40  ;;  %v1227_v50 = vadd.f32 %v2327_v22, %v1156_v42 }
 0x13f   : > { %1386 = vst.msk [vmem:[%s2338_s30 + $0x188] sm:$0xff] %vm1336_vm1, %v1321_v41  ;;  %v1259_v51 = vadd.f32 %v2327_v22, %v1188_v43  ;;  %1353 = vst.msk [vmem:[%s2338_s30 + $0x80] sm:$0xff] %vm1336_vm1, %v1288_v46  ;;  %v1226_v52 = vadd.f32 %v2327_v22, %v1155_v48  ;;  %v1670_v54 = vpop.f32.mrb[20].mxu0 }
 0x140   : > { %1385 = vst.msk [vmem:[%s2338_s30 + $0x180] sm:$0xff] %vm1336_vm1, %v1320_v47  ;;  %v1258_v53 = vadd.f32 %v2327_v22, %v1187_v49  ;;  %v1718_v55 = vpop.f32.mrb[20].mxu1  ;;  %v1291_v56 = vmax.f32 %v1227_v50, 0.0  ;;  %v1158_v58 = vmul.f32 %v1670_v54, %v2322_v18  ;;  %v911_v60 = vpop.f32.mrb[21].mxu0 }
 0x141   : > { %v1323_v57 = vmax.f32 %v1259_v51, 0.0  ;;  %v1190_v59 = vmul.f32 %v1718_v55, %v2322_v18  ;;  %v1071_v61 = vpop.f32.mrb[21].mxu1  ;;  %v1290_v62 = vmax.f32 %v1226_v52, 0.0  ;;  %v1157_v0 = vmul.f32 %v2322_v18, %v911_v60 }
 0x142   : > { %v1322_v63 = vmax.f32 %v1258_v53, 0.0  ;;  %v1189_v1 = vmul.f32 %v2322_v18, %v1071_v61  ;;  %1356 = vst.msk [vmem:[%s2338_s30 + $0x98] sm:$0xff] %vm1336_vm1, %v1291_v56  ;;  %v1229_v2 = vadd.f32 %v2327_v22, %v1158_v58 }
 0x143   : > { %1388 = vst.msk [vmem:[%s2338_s30 + $0x198] sm:$0xff] %vm1336_vm1, %v1323_v57  ;;  %v1261_v3 = vadd.f32 %v2327_v22, %v1190_v59  ;;  %1355 = vst.msk [vmem:[%s2338_s30 + $0x90] sm:$0xff] %vm1336_vm1, %v1290_v62  ;;  %v1228_v4 = vadd.f32 %v2327_v22, %v1157_v0  ;;  %v1673_v6 = vpop.f32.mrb[22].mxu0 }
 0x144   : > { %1387 = vst.msk [vmem:[%s2338_s30 + $0x190] sm:$0xff] %vm1336_vm1, %v1322_v63  ;;  %v1260_v5 = vadd.f32 %v2327_v22, %v1189_v1  ;;  %v1721_v7 = vpop.f32.mrb[22].mxu1  ;;  %v1293_v8 = vmax.f32 %v1229_v2, 0.0  ;;  %v1160_v11 = vmul.f32 %v1673_v6, %v2322_v18  ;;  %v921_v13 = vpop.f32.mrb[23].mxu0 }
 0x145   : > { %v1325_v9 = vmax.f32 %v1261_v3, 0.0  ;;  %v1192_v12 = vmul.f32 %v1721_v7, %v2322_v18  ;;  %v1081_v14 = vpop.f32.mrb[23].mxu1  ;;  %v1292_v15 = vmax.f32 %v1228_v4, 0.0  ;;  %v1159_v16 = vmul.f32 %v2322_v18, %v921_v13 }
 0x146   : > { %v1324_v10 = vmax.f32 %v1260_v5, 0.0  ;;  %v1191_v17 = vmul.f32 %v2322_v18, %v1081_v14  ;;  %1358 = vst.msk [vmem:[%s2338_s30 + $0xa8] sm:$0xff] %vm1336_vm1, %v1293_v8  ;;  %v1231_v20 = vadd.f32 %v2327_v22, %v1160_v11 }
 0x147   : > { %1390 = vst.msk [vmem:[%s2338_s30 + $0x1a8] sm:$0xff] %vm1336_vm1, %v1325_v9  ;;  %v1263_v21 = vadd.f32 %v2327_v22, %v1192_v12  ;;  %1357 = vst.msk [vmem:[%s2338_s30 + $0xa0] sm:$0xff] %vm1336_vm1, %v1292_v15  ;;  %v1230_v19 = vadd.f32 %v2327_v22, %v1159_v16  ;;  %v1676_v24 = vpop.f32.mrb[24].mxu0 }
 0x148   : > { %1389 = vst.msk [vmem:[%s2338_s30 + $0x1a0] sm:$0xff] %vm1336_vm1, %v1324_v10  ;;  %v1262_v23 = vadd.f32 %v2327_v22, %v1191_v17  ;;  %v1724_v25 = vpop.f32.mrb[24].mxu1  ;;  %v1295_v26 = vmax.f32 %v1231_v20, 0.0  ;;  %v1162_v28 = vmul.f32 %v1676_v24, %v2322_v18  ;;  %v931_v30 = vpop.f32.mrb[25].mxu0 }
 0x149   : > { %v1327_v27 = vmax.f32 %v1263_v21, 0.0  ;;  %v1194_v29 = vmul.f32 %v1724_v25, %v2322_v18  ;;  %v1091_v31 = vpop.f32.mrb[25].mxu1  ;;  %v1294_v32 = vmax.f32 %v1230_v19, 0.0  ;;  %v1161_v34 = vmul.f32 %v2322_v18, %v931_v30 }
 0x14a   : > { %v1326_v33 = vmax.f32 %v1262_v23, 0.0  ;;  %v1193_v35 = vmul.f32 %v2322_v18, %v1091_v31  ;;  %1360 = vst.msk [vmem:[%s2338_s30 + $0xb8] sm:$0xff] %vm1336_vm1, %v1295_v26  ;;  %v1233_v36 = vadd.f32 %v2327_v22, %v1162_v28 }
 0x14b   : > { %1392 = vst.msk [vmem:[%s2338_s30 + $0x1b8] sm:$0xff] %vm1336_vm1, %v1327_v27  ;;  %v1265_v37 = vadd.f32 %v2327_v22, %v1194_v29  ;;  %1359 = vst.msk [vmem:[%s2338_s30 + $0xb0] sm:$0xff] %vm1336_vm1, %v1294_v32  ;;  %v1232_v38 = vadd.f32 %v2327_v22, %v1161_v34  ;;  %v1679_v40 = vpop.f32.mrb[26].mxu0 }
 0x14c   : > { %1391 = vst.msk [vmem:[%s2338_s30 + $0x1b0] sm:$0xff] %vm1336_vm1, %v1326_v33  ;;  %v1264_v39 = vadd.f32 %v2327_v22, %v1193_v35  ;;  %v1727_v41 = vpop.f32.mrb[26].mxu1  ;;  %v1297_v42 = vmax.f32 %v1233_v36, 0.0  ;;  %v1164_v44 = vmul.f32 %v1679_v40, %v2322_v18  ;;  %v941_v46 = vpop.f32.mrb[27].mxu0 }
 0x14d   : > { %v1329_v43 = vmax.f32 %v1265_v37, 0.0  ;;  %v1196_v45 = vmul.f32 %v1727_v41, %v2322_v18  ;;  %v1101_v47 = vpop.f32.mrb[27].mxu1  ;;  %v1296_v48 = vmax.f32 %v1232_v38, 0.0  ;;  %v1163_v50 = vmul.f32 %v2322_v18, %v941_v46 }
 0x14e   : > { %v1328_v49 = vmax.f32 %v1264_v39, 0.0  ;;  %v1195_v51 = vmul.f32 %v2322_v18, %v1101_v47  ;;  %1362 = vst.msk [vmem:[%s2338_s30 + $0xc8] sm:$0xff] %vm1336_vm1, %v1297_v42  ;;  %v1235_v52 = vadd.f32 %v2327_v22, %v1164_v44 }
 0x14f   : > { %1394 = vst.msk [vmem:[%s2338_s30 + $0x1c8] sm:$0xff] %vm1336_vm1, %v1329_v43  ;;  %v1267_v53 = vadd.f32 %v2327_v22, %v1196_v45  ;;  %1361 = vst.msk [vmem:[%s2338_s30 + $0xc0] sm:$0xff] %vm1336_vm1, %v1296_v48  ;;  %v1234_v54 = vadd.f32 %v2327_v22, %v1163_v50  ;;  %v1682_v56 = vpop.f32.mrb[28].mxu0 }
 0x150   : > { %1393 = vst.msk [vmem:[%s2338_s30 + $0x1c0] sm:$0xff] %vm1336_vm1, %v1328_v49  ;;  %v1266_v55 = vadd.f32 %v2327_v22, %v1195_v51  ;;  %v1730_v57 = vpop.f32.mrb[28].mxu1  ;;  %v1299_v58 = vmax.f32 %v1235_v52, 0.0  ;;  %v1166_v60 = vmul.f32 %v1682_v56, %v2322_v18  ;;  %v951_v62 = vpop.f32.mrb[29].mxu0 }
 0x151   : > { %v1331_v59 = vmax.f32 %v1267_v53, 0.0  ;;  %v1198_v61 = vmul.f32 %v1730_v57, %v2322_v18  ;;  %v1111_v63 = vpop.f32.mrb[29].mxu1  ;;  %v1298_v0 = vmax.f32 %v1234_v54, 0.0  ;;  %v1165_v2 = vmul.f32 %v2322_v18, %v951_v62 }
 0x152   : > { %v1330_v1 = vmax.f32 %v1266_v55, 0.0  ;;  %v1197_v3 = vmul.f32 %v2322_v18, %v1111_v63  ;;  %1364 = vst.msk [vmem:[%s2338_s30 + $0xd8] sm:$0xff] %vm1336_vm1, %v1299_v58  ;;  %v1237_v4 = vadd.f32 %v2327_v22, %v1166_v60 }
 0x153   : > { %1396 = vst.msk [vmem:[%s2338_s30 + $0x1d8] sm:$0xff] %vm1336_vm1, %v1331_v59  ;;  %v1269_v5 = vadd.f32 %v2327_v22, %v1198_v61  ;;  %1363 = vst.msk [vmem:[%s2338_s30 + $0xd0] sm:$0xff] %vm1336_vm1, %v1298_v0  ;;  %v1236_v6 = vadd.f32 %v2327_v22, %v1165_v2  ;;  %v1685_v8 = vpop.f32.mrb[30].mxu0 }
 0x154   : > { %1395 = vst.msk [vmem:[%s2338_s30 + $0x1d0] sm:$0xff] %vm1336_vm1, %v1330_v1  ;;  %v1268_v7 = vadd.f32 %v2327_v22, %v1197_v3  ;;  %v1733_v9 = vpop.f32.mrb[30].mxu1  ;;  %v1301_v11 = vmax.f32 %v1237_v4, 0.0  ;;  %v1168_v13 = vmul.f32 %v1685_v8, %v2322_v18  ;;  %v961_v15 = vpop.f32.mrb[31].mxu0 }
 0x155   : > { %v1333_v12 = vmax.f32 %v1269_v5, 0.0  ;;  %v1200_v14 = vmul.f32 %v1733_v9, %v2322_v18  ;;  %v1121_v10 = vpop.f32.mrb[31].mxu1  ;;  %v1300_v16 = vmax.f32 %v1236_v6, 0.0  ;;  %v1167_v20 = vmul.f32 %v2322_v18, %v961_v15 }
 0x156   : > { %v1332_v17 = vmax.f32 %v1268_v7, 0.0  ;;  %v1199_v21 = vmul.f32 %v2322_v18, %v1121_v10  ;;  %1366 = vst.msk [vmem:[%s2338_s30 + $0xe8] sm:$0xff] %vm1336_vm1, %v1301_v11  ;;  %v1239_v19 = vadd.f32 %v2327_v22, %v1168_v13 }
 0x157   : > { %1398 = vst.msk [vmem:[%s2338_s30 + $0x1e8] sm:$0xff] %vm1336_vm1, %v1333_v12  ;;  %v1271_v23 = vadd.f32 %v2327_v22, %v1200_v14  ;;  %1365 = vst.msk [vmem:[%s2338_s30 + $0xe0] sm:$0xff] %vm1336_vm1, %v1300_v16  ;;  %v1238_v24 = vadd.f32 %v2327_v22, %v1167_v20 }
 0x158   : > { %1397 = vst.msk [vmem:[%s2338_s30 + $0x1e0] sm:$0xff] %vm1336_vm1, %v1332_v17  ;;  %v1270_v25 = vadd.f32 %v2327_v22, %v1199_v21  ;;  %v1303_v26 = vmax.f32 %v1239_v19, 0.0 }
 0x159   : > { %v1335_v27 = vmax.f32 %v1271_v23, 0.0  ;;  %v1302_v18 = vmax.f32 %v1238_v24, 0.0 }
 0x15a   : > { %v1334_v28 = vmax.f32 %v1270_v25, 0.0  ;;  %1368 = vst.msk [vmem:[%s2338_s30 + $0xf8] sm:$0xff] %vm1336_vm1, %v1303_v26 }
 0x15b   : > { %1400 = vst.msk [vmem:[%s2338_s30 + $0x1f8] sm:$0xff] %vm1336_vm1, %v1335_v27  ;;  %1367 = vst.msk [vmem:[%s2338_s30 + $0xf0] sm:$0xff] %vm1336_vm1, %v1302_v18 }
 0x15c   : > { %1399 = vst.msk [vmem:[%s2338_s30 + $0x1f0] sm:$0xff] %vm1336_vm1, %v1334_v28 }
 0x15d PF: > { %p16_p8 = scmp.ge.s32.totalorder %s1923_s26, 4   ;;  %s2613_s21 = smov %s1855_s22 }
 0x15e   : > { %s2614_s22 = smov %s1859_s23  ;;  %s2615_s23 = smov %s1933_s29 }
 0x15f   : > { %s2616_s24 = smov %s1923_s26  ;;  %18 = sbr.rel (!%p16_p8) target bundleno = 3 (0x3), region = 84 }
 0x166   :  { %1423 = vsyncpa [#allocation3], 1 }
 0x167   :  { %1425 = vsyncpa [#allocation3 + $0x1], 1 }

// kernel: res_block_forward.3
= control target key start
LH: loop header
LB: loop body
LE: loop exit
PB: predicated region body
PF: predicated region fallthrough
CT: control target
= control target key end

     0   :  { %s6963_s24 = smov 0   ;;  %s6965_s25 = smov 0   ;;  %s7727_s0 = inlined_call_operand.vmem [shape: f32[2,10,102,16], index: 0, kind: input, shape index: {}, may-alias: {0,1,2}]   ;;  %s7728_s1 = inlined_call_operand.vmem [shape: f32[2,10,102,16], index: 1, kind: input, shape index: {}, may-alias: {0,1,2}]   ;;  %s7729_s2 = inlined_call_operand.vmem [shape: f32[2,10,102,16], index: 2, kind: input, shape index: {}, may-alias: {0,1,2}]   ;;  %s7730_s3 = inlined_call_operand.vmem [shape: f32[27,16,16], index: 3, kind: input, shape index: {}]   ;;  %s7731_s4 = inlined_call_operand.vmem [shape: f32[1,16], index: 4, kind: input, shape index: {}]   ;;  %s7732_s5 = inlined_call_operand.vmem [shape: f32[1,16], index: 5, kind: input, shape index: {}]   ;;  %s7733_s6 = inlined_call_operand.vmem [shape: f32[16,64], index: 6, kind: input, shape index: {}]   ;;  %s7734_s7 = inlined_call_operand.vmem [shape: f32[2,8,80,64], index: 7, kind: output, shape index: {}]  }
   0x1   :  { %s6967_s26 = smov 0   ;;  %s6969_s27 = smov 0  }
   0x2   :  { %s6971_s28 = smov 0  }
   0x3 LB: > { %s26_s29 = sadd.s32 1, %s6913_s26  ;;  %s29_s30 = sadd.s32 1, %s6917_s27  ;;  %s6921_s28 = sphi %s6971_s28, %s17_s28   ;;  %s6917_s27 = sphi %s6969_s27, %s7738_s27   ;;  %s6913_s26 = sphi %s6967_s26, %s7737_s26   ;;  %s6909_s25 = sphi %s6965_s25, %s7736_s25   ;;  %s6905_s24 = sphi %s6963_s24, %s7735_s24  }
   0x4   : > { %p27_p0 = scmp.ge.s32.totalorder %s26_s29, 8  ;;  %p5256_p1 = scmp.ge.s32.totalorder %s6921_s28, 1 }
   0x5   : > { %p297_p2 = scmp.lt.s32.totalorder %s6921_s28, 17 }
   0x6   : > { %s7740_s29 = smov (%p27_p0, %s26_s29), 0  ;;  %s7742_s30 = smov (!%p27_p0, %s29_s30), %s6917_s27 }
   0x7   : > { %p298_p3 = pnand %p5256_p1, %p297_p2  ;;  %p31_p4 = scmp.ge.s32.totalorder %s7742_s30, 2 }
   0x8   : > { %v5261_v0 = vld [vmem:[%s7730_s3 + $0x10] sm:$0xff] (!%p298_p3)  ;;  %v5262_v1 = vld [vmem:[%s7730_s3 + $0x18] sm:$0xff] (!%p298_p3)  ;;  %p357_p5 = scmp.lt.s32.totalorder (!%p298_p3), %s6909_s25, 1  ;;  %p359_p6 = scmp.lt.s32.totalorder (!%p298_p3), %s6905_s24, 9  ;;  %v5427_v5 = vld [vmem:[%s7730_s3 + $0xe0] sm:$0xff] (!%p298_p3)  ;;  %vm422_vm0 = vcmask (!%p298_p3), 130048  }
   0x9   : > { %s7744_s30 = smov (%p31_p4, %s7742_s30), 0  ;;  %301 = sbr.rel (%p298_p3) target bundleno = 740 (0x2e4), region = 48 }
   0xa   : > { %v5415_v2 = vld [vmem:[%s7730_s3 + $0xd0] sm:$0xff] (!%p298_p3)  ;;  %v6465_v3 = vpack.c.bf16 (!%p298_p3), %v5262_v1, %v5261_v0  ;;  %v5416_v4 = vld [vmem:[%s7730_s3 + $0xd8] sm:$0xff] (!%p298_p3)  ;;  %s366_s16 = sadd.s32 (!%p298_p3), 1, %s6905_s24  ;;  %v5428_v6 = vld [vmem:[%s7730_s3 + $0xe8] sm:$0xff] (!%p298_p3)  ;;  %s377_s13 = sadd.s32 (!%p298_p3), 2, %s6905_s24  ;;  %vm5104_vm1 = vcmask (!%p298_p3), 523264  }
   0xb   : > { %v6517_v7 = vpack.c.bf16 (!%p298_p3), %v5416_v4, %v5415_v2  ;;  %v6521_v8 = vpack.c.bf16 (!%p298_p3), %v5428_v6, %v5427_v5  ;;  %v407_v9 = vld [vmem:[%s7730_s3] sm:$0xff] (!%p298_p3)  ;;  %v408_v10 = vld [vmem:[%s7730_s3 + $0x8] sm:$0xff] (!%p298_p3)  ;;  %p369_p7 = scmp.lt.s32.totalorder (!%p298_p3), %s366_s16, 9  ;;  %v5439_v18 = vld [vmem:[%s7730_s3 + $0xf0] sm:$0xff] (!%p298_p3)  ;;  %p380_p8 = scmp.lt.s32.totalorder (!%p298_p3), %s377_s13, 9 }
   0xc   : > { %6466 = vmatprep.subr.bf16.mxu1 (!%p298_p3), %v6465_v3  ;;  %v6469_v11 = vpack.c.bf16 (!%p298_p3), %v408_v10, %v407_v9  ;;  %v5283_v12 = vld [vmem:[%s7730_s3 + $0x20] sm:$0xff] (!%p298_p3)  ;;  %v5284_v13 = vld [vmem:[%s7730_s3 + $0x28] sm:$0xff] (!%p298_p3)  ;;  %v5440_v19 = vld [vmem:[%s7730_s3 + $0xf8] sm:$0xff] (!%p298_p3)  ;;  %p390_p9 = scmp.lt.s32.totalorder (!%p298_p3), %s6905_s24, 7 }
   0xd   : > { %6518 = vmatprep.subr.bf16.mxu0 (!%p298_p3), %v6517_v7  ;;  %6468 = vmatpush3.bf16.msra.mxu1 (!%p298_p3), %v6465_v3  ;;  %v6473_v17 = vpack.c.bf16 (!%p298_p3), %v5284_v13, %v5283_v12  ;;  %v6525_v25 = vpack.c.bf16 (!%p298_p3), %v5440_v19, %v5439_v18  ;;  %v5295_v38 = vld [vmem:[%s7730_s3 + $0x30] sm:$0xff] (!%p298_p3)  ;;  %v5296_v39 = vld [vmem:[%s7730_s3 + $0x38] sm:$0xff] (!%p298_p3)  ;;  %v5451_v45 = vld [vmem:[%s7730_s3 + $0x100] sm:$0xff] (!%p298_p3) }
   0xe   : > { %6520 = vmatpush3.bf16.msra.mxu0 (!%p298_p3), %v6517_v7  ;;  %6470 = vmatprep.subr.bf16.mxu1 (!%p298_p3), %v6469_v11  ;;  %v6477_v44 = vpack.c.bf16 (!%p298_p3), %v5296_v39, %v5295_v38  ;;  %v5452_v46 = vld [vmem:[%s7730_s3 + $0x108] sm:$0xff] (!%p298_p3)  ;;  %v5307_v0 = vld [vmem:[%s7730_s3 + $0x40] sm:$0xff] (!%p298_p3)  ;;  %v5463_v6 = vld [vmem:[%s7730_s3 + $0x110] sm:$0xff] (!%p298_p3) }
   0xf   : > { %6522 = vmatprep.subr.bf16.mxu0 (!%p298_p3), %v6521_v8  ;;  %v6529_v51 = vpack.c.bf16 (!%p298_p3), %v5452_v46, %v5451_v45  ;;  %v5308_v1 = vld [vmem:[%s7730_s3 + $0x48] sm:$0xff] (!%p298_p3)  ;;  %v5464_v7 = vld [vmem:[%s7730_s3 + $0x118] sm:$0xff] (!%p298_p3) }
  0x10   : > { %s7746_s25 = smov (!%p357_p5, %s6909_s25), 1  ;;  %s7748_s16 = smov (!%p369_p7, %s366_s16), 9  ;;  %v6481_v5 = vpack.c.bf16 %v5308_v1, %v5307_v0  ;;  %v6533_v10 = vpack.c.bf16 %v5464_v7, %v5463_v6 }
  0x11   : > { %s360_s9 = scalar_select %p359_p6, %s6905_s24, 9 }
  0x12   : > { %s7025_s10 = smul.u32 130, %s7746_s25  ;;  %s7750_s13 = smov (!%p380_p8, %s377_s13), 9 }
  0x13   : > { %s6837_s11 = smul.u32 13, %s360_s9  ;;  %s7752_s24 = smov (!%p390_p9, %s6905_s24), 7 }
  0x14   : > { %s6839_s19 = smul.u32 13, %s7748_s16 }
  0x15   : > { %s363_s12 = sadd.s32 %s7025_s10, %s6837_s11  ;;  %s6840_s9 = smul.u32 13, %s7750_s13 }
  0x16   : > { %s5257_s18 = sshll.u32 %s363_s12, 3  ;;  %s373_s23 = sadd.s32 %s6839_s19, %s7025_s10 }
  0x17   : > { %s7037_s22 = scalar_lea.vmem %s7727_s0, %s5257_s18  ;;  %s5258_s8 = sshll.u32 %s373_s23, 3 }
  0x18   : > { %v409_v14 = vld [vmem:[%s7037_s22 + $0x1] sm:$0xff]  ;;  %v410_v15 = vld [vmem:[%s7037_s22 + $0x9] sm:$0xff]  ;;  %v411_v16 = vld [vmem:[%s7037_s22 + $0x11] sm:$0xff]  ;;  %s7054_s15 = scalar_lea.vmem %s7728_s1, %s5258_s8  ;;  %s384_s16 = sadd.s32 %s6840_s9, %s7025_s10 }
  0x19   : > { %5937 = vmatprep.mubr.msk.f32.mxu1 %vm422_vm0, %v409_v14  ;;  %v2561_v20 = vld [vmem:[%s7054_s15 + $0xb] sm:$0xff]  ;;  %v2562_v21 = vld [vmem:[%s7054_s15 + $0x13] sm:$0xff]  ;;  %v2563_v23 = vld [vmem:[%s7054_s15 + $0x1b] sm:$0xff]  ;;  %s5259_s11 = sshll.u32 %s384_s16, 3  ;;  %s6842_s20 = smul.u32 80, %s7746_s25 }
  0x1a   : > { %5938 = vmatmul.mubr.msk.f32.vlgmr.msra.gmra.mrb[0].mxu1 %vm422_vm0, %v410_v15  ;;  %v412_v22 = vld [vmem:[%s7037_s22 + $0x19] sm:$0xff]  ;;  %6184 = vmatprep.mubr.msk.f32.mxu0 %vm422_vm0, %v2561_v20  ;;  %v413_v24 = vld [vmem:[%s7037_s22 + $0x21] sm:$0xff]  ;;  %v414_v27 = vld [vmem:[%s7037_s22 + $0x29] sm:$0xff]  ;;  %s7285_s13 = scalar_lea.vmem %s7729_s2, %s5259_s11  ;;  %s6841_s21 = smul.u32 10, %s7752_s24 }
  0x1b   : > { %5940 = vmatprep.mubr.msk.f32.mxu1 %vm422_vm0, %v411_v16  ;;  %6472 = vmatpush3.bf16.msra.mxu1 %v6469_v11  ;;  %v2564_v26 = vld [vmem:[%s7054_s15 + $0x23] sm:$0xff]  ;;  %v2565_v28 = vld [vmem:[%s7054_s15 + $0x2b] sm:$0xff]  ;;  %v2566_v30 = vld [vmem:[%s7054_s15 + $0x33] sm:$0xff] }
  0x1c   : > { %6474 = vmatprep.subr.bf16.mxu1 %v6473_v17  ;;  %6185 = vmatmul.mubr.msk.f32.vlgmr.msra.gmra.mrb[0].mxu0 %vm422_vm0, %v2562_v21  ;;  %v415_v29 = vld [vmem:[%s7037_s22 + $0x31] sm:$0xff]  ;;  %v416_v31 = vld [vmem:[%s7037_s22 + $0x39] sm:$0xff]  ;;  %v417_v33 = vld [vmem:[%s7037_s22 + $0x41] sm:$0xff]  ;;  %s394_s23 = sadd.s32 %s6842_s20, %s6841_s21 }
  0x1d   : > { %6524 = vmatpush3.bf16.msra.mxu0 %v6521_v8  ;;  %6187 = vmatprep.mubr.msk.f32.mxu0 %vm422_vm0, %v2563_v23  ;;  %v2567_v32 = vld [vmem:[%s7054_s15 + $0x3b] sm:$0xff]  ;;  %v2568_v34 = vld [vmem:[%s7054_s15 + $0x43] sm:$0xff]  ;;  %v2569_v36 = vld [vmem:[%s7054_s15 + $0x4b] sm:$0xff]  ;;  %s5260_s8 = sshll.u32 %s394_s23, 3 }
  0x1e   : > { %5941 = vmatmul.mubr.msk.f32.gmra.mrb[2].mxu1 %vm422_vm0, %v412_v22  ;;  %6526 = vmatprep.subr.bf16.mxu0 %v6525_v25  ;;  %v418_v35 = vld [vmem:[%s7037_s22 + $0x49] sm:$0xff]  ;;  %v397_v37 = vld [vmem:[%s7037_s22] sm:$0xff]  ;;  %v2570_v40 = vld [vmem:[%s7054_s15 + $0x53] sm:$0xff] }
  0x1f   : > { %5943 = vmatprep.mubr.msk.f32.mxu1 %vm422_vm0, %v413_v24  ;;  %v398_v41 = vld [vmem:[%s7037_s22 + $0x8] sm:$0xff]  ;;  %v399_v43 = vld [vmem:[%s7037_s22 + $0x10] sm:$0xff]  ;;  %v400_v48 = vld [vmem:[%s7037_s22 + $0x18] sm:$0xff] }
  0x20   : > { %6188 = vmatmul.mubr.msk.f32.gmra.mrb[2].mxu0 %vm422_vm0, %v2564_v26  ;;  %v2729_v42 = vld [vmem:[%s7054_s15 + $0xc] sm:$0xff]  ;;  %v2730_v47 = vld [vmem:[%s7054_s15 + $0x14] sm:$0xff]  ;;  %v2731_v49 = vld [vmem:[%s7054_s15 + $0x1c] sm:$0xff] }
  0x21   : > { %6190 = vmatprep.mubr.msk.f32.mxu0 %vm422_vm0, %v2565_v28  ;;  %v401_v50 = vld [vmem:[%s7037_s22 + $0x20] sm:$0xff]  ;;  %v402_v53 = vld [vmem:[%s7037_s22 + $0x28] sm:$0xff]  ;;  %v403_v55 = vld [vmem:[%s7037_s22 + $0x30] sm:$0xff] }
  0x22   : > { %5944 = vmatmul.mubr.msk.f32.gmra.mrb[4].mxu1 %vm422_vm0, %v414_v27  ;;  %v2732_v52 = vld [vmem:[%s7054_s15 + $0x24] sm:$0xff]  ;;  %v2733_v54 = vld [vmem:[%s7054_s15 + $0x2c] sm:$0xff]  ;;  %v2734_v56 = vld [vmem:[%s7054_s15 + $0x34] sm:$0xff] }
  0x23   : > { %5946 = vmatprep.mubr.msk.f32.mxu1 %vm422_vm0, %v415_v29  ;;  %v404_v57 = vld [vmem:[%s7037_s22 + $0x38] sm:$0xff]  ;;  %v405_v59 = vld [vmem:[%s7037_s22 + $0x40] sm:$0xff]  ;;  %v406_v61 = vld [vmem:[%s7037_s22 + $0x48] sm:$0xff] }
  0x24   : > { %6191 = vmatmul.mubr.msk.f32.gmra.mrb[4].mxu0 %vm422_vm0, %v2566_v30  ;;  %v2735_v58 = vld [vmem:[%s7054_s15 + $0x3c] sm:$0xff]  ;;  %v2736_v60 = vld [vmem:[%s7054_s15 + $0x44] sm:$0xff]  ;;  %v2737_v62 = vld [vmem:[%s7054_s15 + $0x4c] sm:$0xff] }
  0x25   : > { %6193 = vmatprep.mubr.msk.f32.mxu0 %vm422_vm0, %v2567_v32  ;;  %v713_v63 = vld [vmem:[%s7037_s22 + $0x2] sm:$0xff]  ;;  %v2738_v2 = vld [vmem:[%s7054_s15 + $0x54] sm:$0xff]  ;;  %v714_v3 = vld [vmem:[%s7037_s22 + $0xa] sm:$0xff] }
  0x26   : > { %5947 = vmatmul.mubr.msk.f32.gmra.mrb[6].mxu1 %vm422_vm0, %v416_v31  ;;  %v715_v4 = vld [vmem:[%s7037_s22 + $0x12] sm:$0xff]  ;;  %v716_v8 = vld [vmem:[%s7037_s22 + $0x1a] sm:$0xff]  ;;  %v717_v9 = vld [vmem:[%s7037_s22 + $0x22] sm:$0xff] }
  0x27   : > { %5949 = vmatprep.mubr.msk.f32.mxu1 %vm422_vm0, %v417_v33  ;;  %v718_v11 = vld [vmem:[%s7037_s22 + $0x2a] sm:$0xff]  ;;  %v719_v12 = vld [vmem:[%s7037_s22 + $0x32] sm:$0xff]  ;;  %v720_v13 = vld [vmem:[%s7037_s22 + $0x3a] sm:$0xff] }
  0x28   : > { %6194 = vmatmul.mubr.msk.f32.gmra.mrb[6].mxu0 %vm422_vm0, %v2568_v34  ;;  %v721_v14 = vld [vmem:[%s7037_s22 + $0x42] sm:$0xff]  ;;  %v722_v15 = vld [vmem:[%s7037_s22 + $0x4a] sm:$0xff]  ;;  %v3065_v19 = vld [vmem:[%s7054_s15 + $0x15] sm:$0xff] }
  0x29   : > { %6196 = vmatprep.mubr.msk.f32.mxu0 %vm422_vm0, %v2569_v36  ;;  %v5319_v16 = vld [vmem:[%s7730_s3 + $0x50] sm:$0xff]  ;;  %v2906_v18 = vld [vmem:[%s7054_s15 + $0x5c] sm:$0xff]  ;;  %v5476_v22 = vld [vmem:[%s7730_s3 + $0x128] sm:$0xff] }
  0x2a   : > { %5950 = vmatmul.mubr.msk.f32.gmra.mrb[8].mxu1 %vm422_vm0, %v418_v35  ;;  %v5475_v21 = vld [vmem:[%s7730_s3 + $0x120] sm:$0xff]  ;;  %v3068_v26 = vld [vmem:[%s7054_s15 + $0x2d] sm:$0xff]  ;;  %v3069_v27 = vld [vmem:[%s7054_s15 + $0x35] sm:$0xff] }
  0x2b   : > { %5956 = vmatprep.mubr.msk.f32.mxu1 %vm422_vm0, %v397_v37  ;;  %v3066_v23 = vld [vmem:[%s7054_s15 + $0x1d] sm:$0xff]  ;;  %v3067_v24 = vld [vmem:[%s7054_s15 + $0x25] sm:$0xff]  ;;  %v3072_v30 = vld [vmem:[%s7054_s15 + $0x4d] sm:$0xff] }
  0x2c   : > { %6197 = vmatmul.mubr.msk.f32.gmra.mrb[8].mxu0 %vm422_vm0, %v2570_v40  ;;  %v3070_v28 = vld [vmem:[%s7054_s15 + $0x3d] sm:$0xff]  ;;  %v3071_v29 = vld [vmem:[%s7054_s15 + $0x45] sm:$0xff]  ;;  %v890_v31 = vld [vmem:[%s7037_s22 + $0x52] sm:$0xff] }
  0x2d   : > { %6203 = vmatprep.mubr.msk.f32.mxu0 %vm422_vm0, %v2729_v42  ;;  %v3073_v32 = vld [vmem:[%s7054_s15 + $0x55] sm:$0xff]  ;;  %v1049_v33 = vld [vmem:[%s7037_s22 + $0xb] sm:$0xff]  ;;  %v5331_v34 = vld [vmem:[%s7730_s3 + $0x60] sm:$0xff] }
  0x2e   : > { %5957 = vmatmul.mubr.msk.f32.vlgmr.msra.gmra.mrb[0].mxu1 %vm422_vm0, %v398_v41  ;;  %v5332_v35 = vld [vmem:[%s7730_s3 + $0x68] sm:$0xff]  ;;  %v3074_v36 = vld [vmem:[%s7054_s15 + $0x5d] sm:$0xff]  ;;  %v1050_v37 = vld [vmem:[%s7037_s22 + $0x13] sm:$0xff] }
  0x2f   : > { %5959 = vmatprep.mubr.msk.f32.mxu1 %vm422_vm0, %v399_v43  ;;  %6476 = vmatpush3.bf16.msra.mxu1 %v6473_v17  ;;  %v5320_v17 = vld [vmem:[%s7730_s3 + $0x58] sm:$0xff]  ;;  %v7240_v40 = vpack.c.bf16 %v5332_v35, %v5331_v34  ;;  %v5487_v41 = vld [vmem:[%s7730_s3 + $0x130] sm:$0xff]  ;;  %v3235_v45 = vld [vmem:[%s7054_s15 + $0x26] sm:$0xff] }
  0x30   : > { %6478 = vmatprep.subr.bf16.mxu1 %v6477_v44  ;;  %6204 = vmatmul.mubr.msk.f32.vlgmr.msra.gmra.mrb[0].mxu0 %vm422_vm0, %v2730_v47  ;;  %v6485_v20 = vpack.c.bf16 %v5320_v17, %v5319_v16  ;;  %v3233_v38 = vld [vmem:[%s7054_s15 + $0x16] sm:$0xff]  ;;  %v3234_v43 = vld [vmem:[%s7054_s15 + $0x1e] sm:$0xff]  ;;  %v1053_v46 = vld [vmem:[%s7037_s22 + $0x2b] sm:$0xff] }
  0x31   : > { %6528 = vmatpush3.bf16.msra.mxu0 %v6525_v25  ;;  %6206 = vmatprep.mubr.msk.f32.mxu0 %vm422_vm0, %v2731_v49  ;;  %v6537_v25 = vpack.c.bf16 %v5476_v22, %v5475_v21  ;;  %v1051_v39 = vld [vmem:[%s7037_s22 + $0x1b] sm:$0xff]  ;;  %v1220_v6 = vld [vmem:[%s7037_s22 + $0x24] sm:$0xff]  ;;  %v3403_v7 = vld [vmem:[%s7285_s13 + $0x10] sm:$0xff] }
  0x32   : > { %5960 = vmatmul.mubr.msk.f32.gmra.mrb[2].mxu1 %vm422_vm0, %v400_v48  ;;  %6530 = vmatprep.subr.bf16.mxu0 %v6529_v51  ;;  %v5488_v42 = vld [vmem:[%s7730_s3 + $0x138] sm:$0xff]  ;;  %v3236_v48 = vld [vmem:[%s7054_s15 + $0x2e] sm:$0xff]  ;;  %v3401_v0 = vld [vmem:[%s7285_s13] sm:$0xff] }
  0x33   : > { %5962 = vmatprep.mubr.msk.f32.mxu1 %vm422_vm0, %v401_v50  ;;  %v3237_v50 = vld [vmem:[%s7054_s15 + $0x36] sm:$0xff]  ;;  %v1225_v17 = vld [vmem:[%s7037_s22 + $0x4c] sm:$0xff]  ;;  %v5355_v21 = vld [vmem:[%s7730_s3 + $0x80] sm:$0xff] }
  0x34   : > { %6207 = vmatmul.mubr.msk.f32.gmra.mrb[2].mxu0 %vm422_vm0, %v2732_v52  ;;  %v1219_v1 = vld [vmem:[%s7037_s22 + $0x1c] sm:$0xff]  ;;  %v3407_v16 = vld [vmem:[%s7285_s13 + $0x30] sm:$0xff]  ;;  %v5356_v22 = vld [vmem:[%s7730_s3 + $0x88] sm:$0xff] }
  0x35   : > { %6209 = vmatprep.mubr.msk.f32.mxu0 %vm422_vm0, %v2733_v54  ;;  %v3575_v34 = vld [vmem:[%s7285_s13 + $0x31] sm:$0xff]  ;;  %v3576_v35 = vld [vmem:[%s7285_s13 + $0x39] sm:$0xff] }
  0x36   : > { %5963 = vmatmul.mubr.msk.f32.gmra.mrb[4].mxu1 %vm422_vm0, %v402_v53  ;;  %v1056_v53 = vld [vmem:[%s7037_s22 + $0x43] sm:$0xff] }
  0x37   : > { %5965 = vmatprep.mubr.msk.f32.mxu1 %vm422_vm0, %v403_v55  ;;  %v1057_v55 = vld [vmem:[%s7037_s22 + $0x4b] sm:$0xff] }
  0x38   : > { %6210 = vmatmul.mubr.msk.f32.gmra.mrb[4].mxu0 %vm422_vm0, %v2734_v56 }
  0x39   : > { %6212 = vmatprep.mubr.msk.f32.mxu0 %vm422_vm0, %v2735_v58 }
  0x3a   : > { %5966 = vmatmul.mubr.msk.f32.gmra.mrb[6].mxu1 %vm422_vm0, %v404_v57  ;;  %v1058_v57 = vld [vmem:[%s7037_s22 + $0x53] sm:$0xff] }
  0x3b   : > { %5968 = vmatprep.mubr.msk.f32.mxu1 %vm422_vm0, %v405_v59  ;;  %v1217_v59 = vld [vmem:[%s7037_s22 + $0xc] sm:$0xff] }
  0x3c   : > { %6213 = vmatmul.mubr.msk.f32.gmra.mrb[6].mxu0 %vm422_vm0, %v2736_v60 }
  0x3d   : > { %6215 = vmatprep.mubr.msk.f32.mxu0 %vm422_vm0, %v2737_v62 }
  0x3e   : > { %5969 = vmatmul.mubr.msk.f32.gmra.mrb[8].mxu1 %vm422_vm0, %v406_v61  ;;  %v5344_v61 = vld [vmem:[%s7730_s3 + $0x78] sm:$0xff] }
  0x3f   : > { %5975 = vmatprep.mubr.msk.f32.mxu1 %vm422_vm0, %v713_v63  ;;  %v1218_v63 = vld [vmem:[%s7037_s22 + $0x14] sm:$0xff] }
  0x40   : > { %6216 = vmatmul.mubr.msk.f32.gmra.mrb[8].mxu0 %vm422_vm0, %v2738_v2 }
  0x41   : > { %6222 = vmatprep.mubr.msk.f32.mxu0 %vm422_vm0, %v2730_v47  ;;  %v6541_v47 = vpack.c.bf16 %v5488_v42, %v5487_v41  ;;  %v3578_v41 = vld [vmem:[%s7285_s13 + $0x49] sm:$0xff]  ;;  %v1554_v42 = vld [vmem:[%s7037_s22 + $0x1d] sm:$0xff] }
  0x42   : > { %5976 = vmatmul.mubr.msk.f32.vlgmr.msra.gmra.mrb[0].mxu1 %vm422_vm0, %v714_v3 }
  0x43   : > { %5978 = vmatprep.mubr.msk.f32.mxu1 %vm422_vm0, %v715_v4  ;;  %6480 = vmatpush3.bf16.msra.mxu1 %v6477_v44  ;;  %v1052_v44 = vld [vmem:[%s7037_s22 + $0x23] sm:$0xff] }
  0x44   : > { %6482 = vmatprep.subr.bf16.mxu1 %v6481_v5  ;;  %6223 = vmatmul.mubr.msk.f32.vlgmr.msra.gmra.mrb[0].mxu0 %vm422_vm0, %v2731_v49  ;;  %v1054_v49 = vld [vmem:[%s7037_s22 + $0x33] sm:$0xff] }
  0x45   : > { %6532 = vmatpush3.bf16.msra.mxu0 %v6529_v51  ;;  %6225 = vmatprep.mubr.msk.f32.mxu0 %vm422_vm0, %v2732_v52  ;;  %v1055_v51 = vld [vmem:[%s7037_s22 + $0x3b] sm:$0xff] }
  0x46   : > { %5979 = vmatmul.mubr.msk.f32.gmra.mrb[2].mxu1 %vm422_vm0, %v716_v8  ;;  %6534 = vmatprep.subr.bf16.mxu0 %v6533_v10  ;;  %v3238_v52 = vld [vmem:[%s7054_s15 + $0x3e] sm:$0xff] }
  0x47   : > { %5981 = vmatprep.mubr.msk.f32.mxu1 %vm422_vm0, %v717_v9 }
  0x48   : > { %6226 = vmatmul.mubr.msk.f32.gmra.mrb[2].mxu0 %vm422_vm0, %v2733_v54  ;;  %v3239_v54 = vld [vmem:[%s7054_s15 + $0x46] sm:$0xff] }
  0x49   : > { %6228 = vmatprep.mubr.msk.f32.mxu0 %vm422_vm0, %v2734_v56  ;;  %v3240_v56 = vld [vmem:[%s7054_s15 + $0x4e] sm:$0xff] }
  0x4a   : > { %5982 = vmatmul.mubr.msk.f32.gmra.mrb[4].mxu1 %vm422_vm0, %v718_v11 }
  0x4b   : > { %5984 = vmatprep.mubr.msk.f32.mxu1 %vm422_vm0, %v719_v12 }
  0x4c   : > { %6229 = vmatmul.mubr.msk.f32.gmra.mrb[4].mxu0 %vm422_vm0, %v2735_v58  ;;  %v3241_v58 = vld [vmem:[%s7054_s15 + $0x56] sm:$0xff] }
  0x4d   : > { %6231 = vmatprep.mubr.msk.f32.mxu0 %vm422_vm0, %v2736_v60  ;;  %v5343_v60 = vld [vmem:[%s7730_s3 + $0x70] sm:$0xff] }
  0x4e   : > { %5985 = vmatmul.mubr.msk.f32.gmra.mrb[6].mxu1 %vm422_vm0, %v720_v13 }
  0x4f   : > { %5987 = vmatprep.mubr.msk.f32.mxu1 %vm422_vm0, %v721_v14 }
  0x50   : > { %6232 = vmatmul.mubr.msk.f32.gmra.mrb[6].mxu0 %vm422_vm0, %v2737_v62  ;;  %v3242_v62 = vld [vmem:[%s7054_s15 + $0x5e] sm:$0xff] }
  0x51   : > { %6234 = vmatprep.mubr.msk.f32.mxu0 %vm422_vm0, %v2738_v2  ;;  %v6493_v2 = vpack.c.bf16 %v5344_v61, %v5343_v60  ;;  %v1561_v60 = vld [vmem:[%s7037_s22 + $0x55] sm:$0xff] }
  0x52   : > { %5988 = vmatmul.mubr.msk.f32.gmra.mrb[8].mxu1 %vm422_vm0, %v722_v15  ;;  %v3744_v61 = vld [vmem:[%s7285_s13 + $0x3a] sm:$0xff] }
  0x53   : > { %5994 = vmatprep.mubr.msk.f32.mxu1 %vm422_vm0, %v714_v3  ;;  %v5499_v3 = vld [vmem:[%s7730_s3 + $0x140] sm:$0xff] }
  0x54   : > { %6235 = vmatmul.mubr.msk.f32.gmra.mrb[8].mxu0 %vm422_vm0, %v2906_v18  ;;  %v3408_v18 = vld [vmem:[%s7285_s13 + $0x38] sm:$0xff] }
  0x55   : > { %6241 = vmatprep.mubr.msk.f32.mxu0 %vm422_vm0, %v3065_v19  ;;  %v1226_v19 = vld [vmem:[%s7037_s22 + $0x54] sm:$0xff] }
  0x56   : > { %5995 = vmatmul.mubr.msk.f32.vlgmr.msra.gmra.mrb[0].mxu1 %vm422_vm0, %v715_v4  ;;  %v5500_v4 = vld [vmem:[%s7730_s3 + $0x148] sm:$0xff] }
  0x57   : > { %5997 = vmatprep.mubr.msk.f32.mxu1 %vm422_vm0, %v716_v8  ;;  %6484 = vmatpush3.bf16.msra.mxu1 %v6481_v5  ;;  %v3402_v5 = vld [vmem:[%s7285_s13 + $0x8] sm:$0xff] }
  0x58   : > { %6486 = vmatprep.subr.bf16.mxu1 %v6485_v20  ;;  %6242 = vmatmul.mubr.msk.f32.vlgmr.msra.gmra.mrb[0].mxu0 %vm422_vm0, %v3066_v23  ;;  %v1221_v8 = vld [vmem:[%s7037_s22 + $0x2c] sm:$0xff] }
  0x59   : > { %6536 = vmatpush3.bf16.msra.mxu0 %v6533_v10  ;;  %6244 = vmatprep.mubr.msk.f32.mxu0 %vm422_vm0, %v3067_v24  ;;  %v3404_v10 = vld [vmem:[%s7285_s13 + $0x18] sm:$0xff]  ;;  %v3410_v23 = vld [vmem:[%s7285_s13 + $0x48] sm:$0xff] }
  0x5a   : > { %5998 = vmatmul.mubr.msk.f32.gmra.mrb[2].mxu1 %vm422_vm0, %v717_v9  ;;  %6538 = vmatprep.subr.bf16.mxu0 %v6537_v25  ;;  %v6545_v9 = vpack.c.bf16 %v5500_v4, %v5499_v3  ;;  %v3569_v24 = vld [vmem:[%s7285_s13 + $0x1] sm:$0xff]  ;;  %v3746_v3 = vld [vmem:[%s7285_s13 + $0x4a] sm:$0xff] }
  0x5b   : > { %6000 = vmatprep.mubr.msk.f32.mxu1 %vm422_vm0, %v718_v11  ;;  %v1222_v11 = vld [vmem:[%s7037_s22 + $0x34] sm:$0xff]  ;;  %v1722_v4 = vld [vmem:[%s7037_s22 + $0x1e] sm:$0xff] }
  0x5c   : > { %6245 = vmatmul.mubr.msk.f32.gmra.mrb[2].mxu0 %vm422_vm0, %v3068_v26  ;;  %v5511_v26 = vld [vmem:[%s7730_s3 + $0x150] sm:$0xff] }
  0x5d   : > { %6247 = vmatprep.mubr.msk.f32.mxu0 %vm422_vm0, %v3069_v27  ;;  %v5512_v27 = vld [vmem:[%s7730_s3 + $0x158] sm:$0xff] }
  0x5e   : > { %6001 = vmatmul.mubr.msk.f32.gmra.mrb[4].mxu1 %vm422_vm0, %v719_v12  ;;  %v3405_v12 = vld [vmem:[%s7285_s13 + $0x20] sm:$0xff] }
  0x5f   : > { %6003 = vmatprep.mubr.msk.f32.mxu1 %vm422_vm0, %v720_v13  ;;  %v1223_v13 = vld [vmem:[%s7037_s22 + $0x3c] sm:$0xff] }
  0x60   : > { %6248 = vmatmul.mubr.msk.f32.gmra.mrb[4].mxu0 %vm422_vm0, %v3070_v28  ;;  %v3570_v28 = vld [vmem:[%s7285_s13 + $0x9] sm:$0xff] }
  0x61   : > { %6250 = vmatprep.mubr.msk.f32.mxu0 %vm422_vm0, %v3071_v29  ;;  %v3571_v29 = vld [vmem:[%s7285_s13 + $0x11] sm:$0xff] }
  0x62   : > { %6004 = vmatmul.mubr.msk.f32.gmra.mrb[6].mxu1 %vm422_vm0, %v721_v14  ;;  %v3406_v14 = vld [vmem:[%s7285_s13 + $0x28] sm:$0xff] }
  0x63   : > { %6006 = vmatprep.mubr.msk.f32.mxu1 %vm422_vm0, %v722_v15  ;;  %v1224_v15 = vld [vmem:[%s7037_s22 + $0x44] sm:$0xff] }
  0x64   : > { %6251 = vmatmul.mubr.msk.f32.gmra.mrb[6].mxu0 %vm422_vm0, %v3072_v30  ;;  %v6549_v30 = vpack.c.bf16 %v5512_v27, %v5511_v26  ;;  %v5548_v26 = vld [vmem:[%s7730_s3 + $0x188] sm:$0xff]  ;;  %v4074_v27 = vld [vmem:[%s7285_s13 + $0x13] sm:$0xff] }
  0x65   : > { %6253 = vmatprep.mubr.msk.f32.mxu0 %vm422_vm0, %v3073_v32  ;;  %v3573_v32 = vld [vmem:[%s7285_s13 + $0x21] sm:$0xff] }
  0x66   : > { %6007 = vmatmul.mubr.msk.f32.gmra.mrb[8].mxu1 %vm422_vm0, %v890_v31  ;;  %v3572_v31 = vld [vmem:[%s7285_s13 + $0x19] sm:$0xff] }
  0x67   : > { %6013 = vmatprep.mubr.msk.f32.mxu1 %vm422_vm0, %v1049_v33  ;;  %v3574_v33 = vld [vmem:[%s7285_s13 + $0x29] sm:$0xff] }
  0x68   : > { %6254 = vmatmul.mubr.msk.f32.gmra.mrb[8].mxu0 %vm422_vm0, %v3074_v36  ;;  %v1394_v36 = vld [vmem:[%s7037_s22 + $0x5c] sm:$0xff] }
  0x69   : > { %6260 = vmatprep.mubr.msk.f32.mxu0 %vm422_vm0, %v3233_v38  ;;  %v1553_v38 = vld [vmem:[%s7037_s22 + $0x15] sm:$0xff] }
  0x6a   : > { %6014 = vmatmul.mubr.msk.f32.vlgmr.msra.gmra.mrb[0].mxu1 %vm422_vm0, %v1050_v37  ;;  %v3577_v37 = vld [vmem:[%s7285_s13 + $0x41] sm:$0xff] }
  0x6b   : > { %6016 = vmatprep.mubr.msk.f32.mxu1 %vm422_vm0, %v1051_v39  ;;  %6488 = vmatpush3.bf16.msra.mxu1 %v6485_v20  ;;  %v3409_v20 = vld [vmem:[%s7285_s13 + $0x40] sm:$0xff]  ;;  %v5367_v39 = vld [vmem:[%s7730_s3 + $0x90] sm:$0xff] }
  0x6c   : > { %6490 = vmatprep.subr.bf16.mxu1 %v7240_v40  ;;  %6261 = vmatmul.mubr.msk.f32.vlgmr.msra.gmra.mrb[0].mxu0 %vm422_vm0, %v3234_v43  ;;  %v3737_v43 = vld [vmem:[%s7285_s13 + $0x2] sm:$0xff] }
  0x6d   : > { %6540 = vmatpush3.bf16.msra.mxu0 %v6537_v25  ;;  %6263 = vmatprep.mubr.msk.f32.mxu0 %vm422_vm0, %v3235_v45  ;;  %v6497_v25 = vpack.c.bf16 %v5356_v22, %v5355_v21  ;;  %v1890_v21 = vld [vmem:[%s7054_s15 + $0x8] sm:$0xff] }
  0x6e   : > { %6017 = vmatmul.mubr.msk.f32.gmra.mrb[2].mxu1 %vm422_vm0, %v1052_v44  ;;  %6542 = vmatprep.subr.bf16.mxu0 %v6541_v47  ;;  %v1555_v44 = vld [vmem:[%s7037_s22 + $0x25] sm:$0xff] }
  0x6f   : > { %6019 = vmatprep.mubr.msk.f32.mxu1 %vm422_vm0, %v1053_v46  ;;  %v5523_v46 = vld [vmem:[%s7730_s3 + $0x160] sm:$0xff]  ;;  %v4073_v22 = vld [vmem:[%s7285_s13 + $0xb] sm:$0xff] }
  0x70   : > { %6264 = vmatmul.mubr.msk.f32.gmra.mrb[2].mxu0 %vm422_vm0, %v3236_v48  ;;  %v3738_v48 = vld [vmem:[%s7285_s13 + $0xa] sm:$0xff] }
  0x71   : > { %6266 = vmatprep.mubr.msk.f32.mxu0 %vm422_vm0, %v3237_v50  ;;  %v3739_v50 = vld [vmem:[%s7285_s13 + $0x12] sm:$0xff] }
  0x72   : > { %6020 = vmatmul.mubr.msk.f32.gmra.mrb[4].mxu1 %vm422_vm0, %v1054_v49  ;;  %v1556_v49 = vld [vmem:[%s7037_s22 + $0x2d] sm:$0xff] }
  0x73   : > { %6022 = vmatprep.mubr.msk.f32.mxu1 %vm422_vm0, %v1055_v51  ;;  %v1557_v51 = vld [vmem:[%s7037_s22 + $0x35] sm:$0xff] }
  0x74   : > { %6267 = vmatmul.mubr.msk.f32.gmra.mrb[4].mxu0 %vm422_vm0, %v3238_v52 }
  0x75   : > { %6269 = vmatprep.mubr.msk.f32.mxu0 %vm422_vm0, %v3239_v54  ;;  %v1558_v54 = vld [vmem:[%s7037_s22 + $0x3d] sm:$0xff] }
  0x76   : > { %6023 = vmatmul.mubr.msk.f32.gmra.mrb[6].mxu1 %vm422_vm0, %v1056_v53  ;;  %v3740_v53 = vld [vmem:[%s7285_s13 + $0x1a] sm:$0xff] }
  0x77   : > { %6025 = vmatprep.mubr.msk.f32.mxu1 %vm422_vm0, %v1057_v55  ;;  %v3741_v55 = vld [vmem:[%s7285_s13 + $0x22] sm:$0xff] }
  0x78   : > { %6270 = vmatmul.mubr.msk.f32.gmra.mrb[6].mxu0 %vm422_vm0, %v3240_v56  ;;  %v1559_v56 = vld [vmem:[%s7037_s22 + $0x45] sm:$0xff] }
  0x79   : > { %6272 = vmatprep.mubr.msk.f32.mxu0 %vm422_vm0, %v3241_v58  ;;  %v1560_v58 = vld [vmem:[%s7037_s22 + $0x4d] sm:$0xff] }
  0x7a   : > { %6026 = vmatmul.mubr.msk.f32.gmra.mrb[8].mxu1 %vm422_vm0, %v1058_v57  ;;  %v3742_v57 = vld [vmem:[%s7285_s13 + $0x2a] sm:$0xff] }
  0x7b   : > { %6032 = vmatprep.mubr.msk.f32.mxu1 %vm422_vm0, %v1217_v59  ;;  %v3743_v59 = vld [vmem:[%s7285_s13 + $0x32] sm:$0xff] }
  0x7c   : > { %6273 = vmatmul.mubr.msk.f32.gmra.mrb[8].mxu0 %vm422_vm0, %v3242_v62  ;;  %v1562_v62 = vld [vmem:[%s7037_s22 + $0x5d] sm:$0xff] }
  0x7d   : > { %6279 = vmatprep.mubr.msk.f32.mxu0 %vm422_vm0, %v3401_v0  ;;  %v1721_v0 = vld [vmem:[%s7037_s22 + $0x16] sm:$0xff] }
  0x7e   : > { %6033 = vmatmul.mubr.msk.f32.vlgmr.msra.gmra.mrb[0].mxu1 %vm422_vm0, %v1218_v63 }
  0x7f   : > { %6035 = vmatprep.mubr.msk.f32.mxu1 %vm422_vm0, %v1219_v1  ;;  %6492 = vmatpush3.bf16.msra.mxu1 %v7240_v40  ;;  %v5368_v40 = vld [vmem:[%s7730_s3 + $0x98] sm:$0xff] }
  0x80   : > { %6494 = vmatprep.subr.bf16.mxu1 %v6493_v2  ;;  %6280 = vmatmul.mubr.msk.f32.vlgmr.msra.gmra.mrb[0].mxu0 %vm422_vm0, %v3402_v5  ;;  %v6501_v45 = vpack.c.bf16 %v5368_v40, %v5367_v39  ;;  %v1723_v5 = vld [vmem:[%s7037_s22 + $0x26] sm:$0xff] }
  0x81   : > { %6544 = vmatpush3.bf16.msra.mxu0 %v6541_v47  ;;  %6282 = vmatprep.mubr.msk.f32.mxu0 %vm422_vm0, %v3403_v7  ;;  %v5524_v47 = vld [vmem:[%s7730_s3 + $0x168] sm:$0xff]  ;;  %v5535_v7 = vld [vmem:[%s7730_s3 + $0x170] sm:$0xff]  ;;  %v1897_v39 = vld [vmem:[%s7054_s15 + $0x40] sm:$0xff] }
  0x82   : > { %6036 = vmatmul.mubr.msk.f32.gmra.mrb[2].mxu1 %vm422_vm0, %v1220_v6  ;;  %6546 = vmatprep.subr.bf16.mxu0 %v6545_v9  ;;  %v6553_v52 = vpack.c.bf16 %v5524_v47, %v5523_v46  ;;  %v4080_v40 = vld [vmem:[%s7285_s13 + $0x43] sm:$0xff]  ;;  %v4082_v46 = vld [vmem:[%s7285_s13 + $0x53] sm:$0xff] }
  0x83   : > { %6038 = vmatprep.mubr.msk.f32.mxu1 %vm422_vm0, %v1221_v8  ;;  %v2058_v47 = vld [vmem:[%s7054_s15 + $0x9] sm:$0xff] }
  0x84   : > { %6283 = vmatmul.mubr.msk.f32.gmra.mrb[2].mxu0 %vm422_vm0, %v3404_v10  ;;  %v1725_v10 = vld [vmem:[%s7037_s22 + $0x36] sm:$0xff] }
  0x85   : > { %6285 = vmatprep.mubr.msk.f32.mxu0 %vm422_vm0, %v3405_v12  ;;  %v1726_v12 = vld [vmem:[%s7037_s22 + $0x3e] sm:$0xff] }
  0x86   : > { %6039 = vmatmul.mubr.msk.f32.gmra.mrb[4].mxu1 %vm422_vm0, %v1222_v11 }
  0x87   : > { %6041 = vmatprep.mubr.msk.f32.mxu1 %vm422_vm0, %v1223_v13 }
  0x88   : > { %6286 = vmatmul.mubr.msk.f32.gmra.mrb[4].mxu0 %vm422_vm0, %v3406_v14  ;;  %v1728_v14 = vld [vmem:[%s7037_s22 + $0x4e] sm:$0xff] }
  0x89   : > { %6288 = vmatprep.mubr.msk.f32.mxu0 %vm422_vm0, %v3407_v16  ;;  %v1730_v16 = vld [vmem:[%s7037_s22 + $0x5e] sm:$0xff] }
  0x8a   : > { %6042 = vmatmul.mubr.msk.f32.gmra.mrb[6].mxu1 %vm422_vm0, %v1224_v15 }
  0x8b   : > { %6044 = vmatprep.mubr.msk.f32.mxu1 %vm422_vm0, %v1225_v17 }
  0x8c   : > { %6289 = vmatmul.mubr.msk.f32.gmra.mrb[6].mxu0 %vm422_vm0, %v3408_v18  ;;  %v5391_v18 = vld [vmem:[%s7730_s3 + $0xb0] sm:$0xff] }
  0x8d   : > { %6291 = vmatprep.mubr.msk.f32.mxu0 %vm422_vm0, %v3409_v20  ;;  %v3914_v20 = vld [vmem:[%s7285_s13 + $0x52] sm:$0xff] }
  0x8e   : > { %6045 = vmatmul.mubr.msk.f32.gmra.mrb[8].mxu1 %vm422_vm0, %v1226_v19 }
  0x8f   : > { %6051 = vmatprep.mubr.msk.f32.mxu1 %vm422_vm0, %v1218_v63  ;;  %v3745_v63 = vld [vmem:[%s7285_s13 + $0x42] sm:$0xff] }
  0x90   : > { %6292 = vmatmul.mubr.msk.f32.gmra.mrb[8].mxu0 %vm422_vm0, %v3410_v23  ;;  %v1891_v23 = vld [vmem:[%s7054_s15 + $0x10] sm:$0xff] }
  0x91   : > { %6298 = vmatprep.mubr.msk.f32.mxu0 %vm422_vm0, %v3569_v24 }
  0x92   : > { %6052 = vmatmul.mubr.msk.f32.vlgmr.msra.gmra.mrb[0].mxu1 %vm422_vm0, %v1219_v1  ;;  %v5379_v1 = vld [vmem:[%s7730_s3 + $0xa0] sm:$0xff] }
  0x93   : > { %6054 = vmatprep.mubr.msk.f32.mxu1 %vm422_vm0, %v1220_v6  ;;  %6496 = vmatpush3.bf16.msra.mxu1 %v6493_v2  ;;  %v5380_v2 = vld [vmem:[%s7730_s3 + $0xa8] sm:$0xff] }
  0x94   : > { %6498 = vmatprep.subr.bf16.mxu1 %v6497_v25  ;;  %6299 = vmatmul.mubr.msk.f32.vlgmr.msra.gmra.mrb[0].mxu0 %vm422_vm0, %v3570_v28  ;;  %v6505_v6 = vpack.c.bf16 %v5380_v2, %v5379_v1  ;;  %v1892_v28 = vld [vmem:[%s7054_s15 + $0x18] sm:$0xff]  ;;  %v2065_v1 = vld [vmem:[%s7054_s15 + $0x41] sm:$0xff] }
  0x95   : > { %6548 = vmatpush3.bf16.msra.mxu0 %v6545_v9  ;;  %6301 = vmatprep.mubr.msk.f32.mxu0 %vm422_vm0, %v3571_v29  ;;  %v1724_v9 = vld [vmem:[%s7037_s22 + $0x2e] sm:$0xff]  ;;  %v4075_v29 = vld [vmem:[%s7285_s13 + $0x1b] sm:$0xff]  ;;  %v4248_v2 = vld [vmem:[%s7285_s13 + $0x44] sm:$0xff] }
  0x96   : > { %6055 = vmatmul.mubr.msk.f32.gmra.mrb[2].mxu1 %vm422_vm0, %v1221_v8  ;;  %6550 = vmatprep.subr.bf16.mxu0 %v6549_v30  ;;  %v5536_v8 = vld [vmem:[%s7730_s3 + $0x178] sm:$0xff] }
  0x97   : > { %6057 = vmatprep.mubr.msk.f32.mxu1 %vm422_vm0, %v1222_v11  ;;  %v6557_v11 = vpack.c.bf16 %v5536_v8, %v5535_v7  ;;  %v2226_v7 = vld [vmem:[%s7054_s15 + $0xa] sm:$0xff]  ;;  %v2227_v8 = vld [vmem:[%s7054_s15 + $0x12] sm:$0xff] }
  0x98   : > { %6302 = vmatmul.mubr.msk.f32.gmra.mrb[2].mxu0 %vm422_vm0, %v3572_v31 }
  0x99   : > { %6304 = vmatprep.mubr.msk.f32.mxu0 %vm422_vm0, %v3573_v32  ;;  %v4076_v32 = vld [vmem:[%s7285_s13 + $0x23] sm:$0xff] }
  0x9a   : > { %6058 = vmatmul.mubr.msk.f32.gmra.mrb[4].mxu1 %vm422_vm0, %v1223_v13  ;;  %v1727_v13 = vld [vmem:[%s7037_s22 + $0x46] sm:$0xff] }
  0x9b   : > { %6060 = vmatprep.mubr.msk.f32.mxu1 %vm422_vm0, %v1224_v15  ;;  %v1729_v15 = vld [vmem:[%s7037_s22 + $0x56] sm:$0xff]  ;;  %s396_s22 = scalar_lea.vmem %s7734_s7, %s5260_s8 }
  0x9c   : > { %6305 = vmatmul.mubr.msk.f32.gmra.mrb[4].mxu0 %vm422_vm0, %v3574_v33  ;;  %v1894_v33 = vld [vmem:[%s7054_s15 + $0x28] sm:$0xff] }
  0x9d   : > { %6307 = vmatprep.mubr.msk.f32.mxu0 %vm422_vm0, %v3575_v34  ;;  %v4077_v34 = vld [vmem:[%s7285_s13 + $0x2b] sm:$0xff] }
  0x9e   : > { %6061 = vmatmul.mubr.msk.f32.gmra.mrb[6].mxu1 %vm422_vm0, %v1225_v17  ;;  %v1889_v17 = vld [vmem:[%s7054_s15] sm:$0xff] }
  0x9f   : > { %6063 = vmatprep.mubr.msk.f32.mxu1 %vm422_vm0, %v1226_v19  ;;  %v5392_v19 = vld [vmem:[%s7730_s3 + $0xb8] sm:$0xff] }
  0xa0   : > { %6308 = vmatmul.mubr.msk.f32.gmra.mrb[6].mxu0 %vm422_vm0, %v3576_v35  ;;  %v6509_v24 = vpack.c.bf16 %v5392_v19, %v5391_v18  ;;  %v1895_v35 = vld [vmem:[%s7054_s15 + $0x30] sm:$0xff]  ;;  %v4418_v19 = vld [vmem:[%s7285_s13 + $0x5c] sm:$0xff] }
  0xa1   : > { %6310 = vmatprep.mubr.msk.f32.mxu0 %vm422_vm0, %v3577_v37  ;;  %v1896_v37 = vld [vmem:[%s7054_s15 + $0x38] sm:$0xff]  ;;  %v2234_v18 = vld [vmem:[%s7054_s15 + $0x4a] sm:$0xff] }
  0xa2   : > { %6064 = vmatmul.mubr.msk.f32.gmra.mrb[8].mxu1 %vm422_vm0, %v1394_v36  ;;  %v4078_v36 = vld [vmem:[%s7285_s13 + $0x33] sm:$0xff] }
  0xa3   : > { %6070 = vmatprep.mubr.msk.f32.mxu1 %vm422_vm0, %v1553_v38  ;;  %v4079_v38 = vld [vmem:[%s7285_s13 + $0x3b] sm:$0xff] }
  0xa4   : > { %6311 = vmatmul.mubr.msk.f32.gmra.mrb[8].mxu0 %vm422_vm0, %v3578_v41  ;;  %v1898_v41 = vld [vmem:[%s7054_s15 + $0x48] sm:$0xff] }
  0xa5   : > { %6317 = vmatprep.mubr.msk.f32.mxu0 %vm422_vm0, %v3737_v43  ;;  %v2057_v43 = vld [vmem:[%s7054_s15 + $0x1] sm:$0xff] }
  0xa6   : > { %6071 = vmatmul.mubr.msk.f32.vlgmr.msra.gmra.mrb[0].mxu1 %vm422_vm0, %v1554_v42  ;;  %v4081_v42 = vld [vmem:[%s7285_s13 + $0x4b] sm:$0xff] }
  0xa7   : > { %6073 = vmatprep.mubr.msk.f32.mxu1 %vm422_vm0, %v1555_v44  ;;  %6500 = vmatpush3.bf16.msra.mxu1 %v6497_v25  ;;  %v5547_v25 = vld [vmem:[%s7730_s3 + $0x180] sm:$0xff] }
  0xa8   : > { %6502 = vmatprep.subr.bf16.mxu1 %v6501_v45  ;;  %6318 = vmatmul.mubr.msk.f32.vlgmr.msra.gmra.mrb[0].mxu0 %vm422_vm0, %v3738_v48  ;;  %v6561_v31 = vpack.c.bf16 %v5548_v26, %v5547_v25  ;;  %v5403_v44 = vld [vmem:[%s7730_s3 + $0xc0] sm:$0xff] }
  0xa9   : > { %6552 = vmatpush3.bf16.msra.mxu0 %v6549_v30  ;;  %6320 = vmatprep.mubr.msk.f32.mxu0 %vm422_vm0, %v3739_v50  ;;  %v1893_v30 = vld [vmem:[%s7054_s15 + $0x20] sm:$0xff] }
  0xaa   : > { %6074 = vmatmul.mubr.msk.f32.gmra.mrb[2].mxu1 %vm422_vm0, %v1556_v49  ;;  %6554 = vmatprep.subr.bf16.mxu0 %v6553_v52  ;;  %v2059_v49 = vld [vmem:[%s7054_s15 + $0x11] sm:$0xff]  ;;  %v4582_v25 = vld [vmem:[%s7285_s13 + $0x3d] sm:$0xff]  ;;  %v4583_v26 = vld [vmem:[%s7285_s13 + $0x45] sm:$0xff] }
  0xab   : > { %6076 = vmatprep.mubr.msk.f32.mxu1 %vm422_vm0, %v1557_v51  ;;  %v5559_v51 = vld [vmem:[%s7730_s3 + $0x190] sm:$0xff] }
  0xac   : > { %6321 = vmatmul.mubr.msk.f32.gmra.mrb[2].mxu0 %vm422_vm0, %v3740_v53 }
  0xad   : > { %6323 = vmatprep.mubr.msk.f32.mxu0 %vm422_vm0, %v3741_v55 }
  0xae   : > { %6077 = vmatmul.mubr.msk.f32.gmra.mrb[4].mxu1 %vm422_vm0, %v1558_v54  ;;  %v2060_v54 = vld [vmem:[%s7054_s15 + $0x19] sm:$0xff] }
  0xaf   : > { %6079 = vmatprep.mubr.msk.f32.mxu1 %vm422_vm0, %v1559_v56  ;;  %v2061_v56 = vld [vmem:[%s7054_s15 + $0x21] sm:$0xff] }
  0xb0   : > { %6324 = vmatmul.mubr.msk.f32.gmra.mrb[4].mxu0 %vm422_vm0, %v3742_v57 }
  0xb1   : > { %6326 = vmatprep.mubr.msk.f32.mxu0 %vm422_vm0, %v3743_v59 }
  0xb2   : > { %6080 = vmatmul.mubr.msk.f32.gmra.mrb[6].mxu1 %vm422_vm0, %v1560_v58  ;;  %v4244_v58 = vld [vmem:[%s7285_s13 + $0x24] sm:$0xff] }
  0xb3   : > { %6082 = vmatprep.mubr.msk.f32.mxu1 %vm422_vm0, %v1561_v60  ;;  %v4245_v60 = vld [vmem:[%s7285_s13 + $0x2c] sm:$0xff] }
  0xb4   : > { %6327 = vmatmul.mubr.msk.f32.gmra.mrb[6].mxu0 %vm422_vm0, %v3744_v61 }
  0xb5   : > { %6329 = vmatprep.mubr.msk.f32.mxu0 %vm422_vm0, %v3745_v63 }
  0xb6   : > { %6083 = vmatmul.mubr.msk.f32.gmra.mrb[8].mxu1 %vm422_vm0, %v1562_v62  ;;  %v4246_v62 = vld [vmem:[%s7285_s13 + $0x34] sm:$0xff] }
  0xb7   : > { %6089 = vmatprep.mubr.msk.f32.mxu1 %vm422_vm0, %v1721_v0  ;;  %v4247_v0 = vld [vmem:[%s7285_s13 + $0x3c] sm:$0xff] }
  0xb8   : > { %6330 = vmatmul.mubr.msk.f32.gmra.mrb[8].mxu0 %vm422_vm0, %v3746_v3 }
  0xb9   : > { %6336 = vmatprep.mubr.msk.f32.mxu0 %vm422_vm0, %v3738_v48  ;;  %v4241_v48 = vld [vmem:[%s7285_s13 + $0xc] sm:$0xff] }
  0xba   : > { %6090 = vmatmul.mubr.msk.f32.vlgmr.msra.gmra.mrb[0].mxu1 %vm422_vm0, %v1722_v4  ;;  %v4249_v4 = vld [vmem:[%s7285_s13 + $0x4c] sm:$0xff] }
  0xbb   : > { %6092 = vmatprep.mubr.msk.f32.mxu1 %vm422_vm0, %v1723_v5  ;;  %6504 = vmatpush3.bf16.msra.mxu1 %v6501_v45  ;;  %v5404_v45 = vld [vmem:[%s7730_s3 + $0xc8] sm:$0xff] }
  0xbc   : > { %6506 = vmatprep.subr.bf16.mxu1 %v6505_v6  ;;  %6337 = vmatmul.mubr.msk.f32.vlgmr.msra.gmra.mrb[0].mxu0 %vm422_vm0, %v3739_v50  ;;  %v6513_v50 = vpack.c.bf16 %v5404_v45, %v5403_v44  ;;  %v2225_v5 = vld [vmem:[%s7054_s15 + $0x2] sm:$0xff] }
  0xbd   : > { %6556 = vmatpush3.bf16.msra.mxu0 %v6553_v52  ;;  %6339 = vmatprep.mubr.msk.f32.mxu0 %vm422_vm0, %v3740_v53  ;;  %v5560_v52 = vld [vmem:[%s7730_s3 + $0x198] sm:$0xff] }
  0xbe   : > { %6093 = vmatmul.mubr.msk.f32.gmra.mrb[2].mxu1 %vm422_vm0, %v1724_v9  ;;  %6558 = vmatprep.subr.bf16.mxu0 %v6557_v11  ;;  %v4242_v53 = vld [vmem:[%s7285_s13 + $0x14] sm:$0xff]  ;;  %v5571_v9 = vld [vmem:[%s7730_s3 + $0x1a0] sm:$0xff] }
  0xbf   : > { %6095 = vmatprep.mubr.msk.f32.mxu1 %vm422_vm0, %v1725_v10  ;;  %v5572_v10 = vld [vmem:[%s7730_s3 + $0x1a8] sm:$0xff] }
  0xc0   : > { %6340 = vmatmul.mubr.msk.f32.gmra.mrb[2].mxu0 %vm422_vm0, %v3741_v55  ;;  %v4243_v55 = vld [vmem:[%s7285_s13 + $0x1c] sm:$0xff] }
  0xc1   : > { %6342 = vmatprep.mubr.msk.f32.mxu0 %vm422_vm0, %v3742_v57  ;;  %v6565_v57 = vpack.c.bf16 %v5560_v52, %v5559_v51 }
  0xc2   : > { %6096 = vmatmul.mubr.msk.f32.gmra.mrb[4].mxu1 %vm422_vm0, %v1726_v12  ;;  %v2229_v12 = vld [vmem:[%s7054_s15 + $0x22] sm:$0xff] }
  0xc3   : > { %6098 = vmatprep.mubr.msk.f32.mxu1 %vm422_vm0, %v1727_v13  ;;  %v6569_v13 = vpack.c.bf16 %v5572_v10, %v5571_v9 }
  0xc4   : > { %6343 = vmatmul.mubr.msk.f32.gmra.mrb[4].mxu0 %vm422_vm0, %v3743_v59  ;;  %v2062_v59 = vld [vmem:[%s7054_s15 + $0x29] sm:$0xff] }
  0xc5   : > { %6345 = vmatprep.mubr.msk.f32.mxu0 %vm422_vm0, %v3744_v61  ;;  %v2063_v61 = vld [vmem:[%s7054_s15 + $0x31] sm:$0xff] }
  0xc6   : > { %6099 = vmatmul.mubr.msk.f32.gmra.mrb[6].mxu1 %vm422_vm0, %v1728_v14  ;;  %v2230_v14 = vld [vmem:[%s7054_s15 + $0x2a] sm:$0xff] }
  0xc7   : > { %6101 = vmatprep.mubr.msk.f32.mxu1 %vm422_vm0, %v1729_v15  ;;  %v2231_v15 = vld [vmem:[%s7054_s15 + $0x32] sm:$0xff] }
  0xc8   : > { %6346 = vmatmul.mubr.msk.f32.gmra.mrb[6].mxu0 %vm422_vm0, %v3745_v63  ;;  %v2064_v63 = vld [vmem:[%s7054_s15 + $0x39] sm:$0xff] }
  0xc9   : > { %6348 = vmatprep.mubr.msk.f32.mxu0 %vm422_vm0, %v3746_v3  ;;  %v2066_v3 = vld [vmem:[%s7054_s15 + $0x49] sm:$0xff] }
  0xca   : > { %6102 = vmatmul.mubr.msk.f32.gmra.mrb[8].mxu1 %vm422_vm0, %v1730_v16  ;;  %v2232_v16 = vld [vmem:[%s7054_s15 + $0x3a] sm:$0xff] }
  0xcb   : > { %6108 = vmatprep.mubr.msk.f32.mxu1 %vm422_vm0, %v1889_v17  ;;  %v2233_v17 = vld [vmem:[%s7054_s15 + $0x42] sm:$0xff] }
  0xcc   : > { %6349 = vmatmul.mubr.msk.f32.gmra.mrb[8].mxu0 %vm422_vm0, %v3914_v20  ;;  %v4577_v20 = vld [vmem:[%s7285_s13 + $0x15] sm:$0xff] }
  0xcd   : > { %6355 = vmatprep.mubr.msk.f32.mxu0 %vm422_vm0, %v4073_v22  ;;  %v4579_v22 = vld [vmem:[%s7285_s13 + $0x25] sm:$0xff] }
  0xce   : > { %6109 = vmatmul.mubr.msk.f32.vlgmr.msra.gmra.mrb[0].mxu1 %vm422_vm0, %v1890_v21  ;;  %v4578_v21 = vld [vmem:[%s7285_s13 + $0x1d] sm:$0xff] }
  0xcf   : > { %6111 = vmatprep.mubr.msk.f32.mxu1 %vm422_vm0, %v1891_v23  ;;  %6508 = vmatpush3.bf16.msra.mxu1 %v6505_v6  ;;  %v4250_v6 = vld [vmem:[%s7285_s13 + $0x54] sm:$0xff] }
  0xd0   : > { %6510 = vmatprep.subr.bf16.mxu1 %v6509_v24  ;;  %6356 = vmatmul.mubr.msk.f32.vlgmr.msra.gmra.mrb[0].mxu0 %vm422_vm0, %v4074_v27  ;;  %v4580_v23 = vld [vmem:[%s7285_s13 + $0x2d] sm:$0xff] }
  0xd1   : > { %6560 = vmatpush3.bf16.msra.mxu0 %v6557_v11  ;;  %6358 = vmatprep.mubr.msk.f32.mxu0 %vm422_vm0, %v4075_v29  ;;  %v2228_v11 = vld [vmem:[%s7054_s15 + $0x1a] sm:$0xff]  ;;  %v4584_v27 = vld [vmem:[%s7285_s13 + $0x4d] sm:$0xff] }
  0xd2   : > { %6112 = vmatmul.mubr.msk.f32.gmra.mrb[2].mxu1 %vm422_vm0, %v1892_v28  ;;  %6562 = vmatprep.subr.bf16.mxu0 %v6561_v31  ;;  %v2402_v28 = vld [vmem:[%s7054_s15 + $0x52] sm:$0xff] }
  0xd3   : > { %6114 = vmatprep.mubr.msk.f32.mxu1 %vm422_vm0, %v1893_v30  ;;  %v4585_v29 = vld [vmem:[%s7285_s13 + $0x55] sm:$0xff]  ;;  %v4586_v30 = vld [vmem:[%s7285_s13 + $0x5d] sm:$0xff] }
  0xd4   : > { %6359 = vmatmul.mubr.msk.f32.gmra.mrb[2].mxu0 %vm422_vm0, %v4076_v32  ;;  %v4746_v32 = vld [vmem:[%s7285_s13 + $0x1e] sm:$0xff] }
  0xd5   : > { %6361 = vmatprep.mubr.msk.f32.mxu0 %vm422_vm0, %v4077_v34  ;;  %v4748_v34 = vld [vmem:[%s7285_s13 + $0x2e] sm:$0xff] }
  0xd6   : > { %6115 = vmatmul.mubr.msk.f32.gmra.mrb[4].mxu1 %vm422_vm0, %v1894_v33  ;;  %v4747_v33 = vld [vmem:[%s7285_s13 + $0x26] sm:$0xff] }
  0xd7   : > { %6117 = vmatprep.mubr.msk.f32.mxu1 %vm422_vm0, %v1895_v35  ;;  %v4749_v35 = vld [vmem:[%s7285_s13 + $0x36] sm:$0xff] }
  0xd8   : > { %6362 = vmatmul.mubr.msk.f32.gmra.mrb[4].mxu0 %vm422_vm0, %v4078_v36  ;;  %v4750_v36 = vld [vmem:[%s7285_s13 + $0x3e] sm:$0xff] }
  0xd9   : > { %6364 = vmatprep.mubr.msk.f32.mxu0 %vm422_vm0, %v4079_v38  ;;  %v4752_v38 = vld [vmem:[%s7285_s13 + $0x4e] sm:$0xff] }
  0xda   : > { %6118 = vmatmul.mubr.msk.f32.gmra.mrb[6].mxu1 %vm422_vm0, %v1896_v37  ;;  %v4751_v37 = vld [vmem:[%s7285_s13 + $0x46] sm:$0xff] }
  0xdb   : > { %6120 = vmatprep.mubr.msk.f32.mxu1 %vm422_vm0, %v1897_v39  ;;  %v4753_v39 = vld [vmem:[%s7285_s13 + $0x56] sm:$0xff] }
  0xdc   : > { %6365 = vmatmul.mubr.msk.f32.gmra.mrb[6].mxu0 %vm422_vm0, %v4080_v40  ;;  %v4754_v40 = vld [vmem:[%s7285_s13 + $0x5e] sm:$0xff] }
  0xdd   : > { %6367 = vmatprep.mubr.msk.f32.mxu0 %vm422_vm0, %v4081_v42  ;;  %v4958_v42 = vld [vmem:[%s7733_s6 + $0x8] sm:$0xff] }
  0xde   : > { %6121 = vmatmul.mubr.msk.f32.gmra.mrb[8].mxu1 %vm422_vm0, %v1898_v41  ;;  %v4957_v41 = vld [vmem:[%s7733_s6] sm:$0xff] }
  0xdf   : > { %6127 = vmatprep.mubr.msk.f32.mxu1 %vm422_vm0, %v2057_v43  ;;  %v6573_v43 = vpack.c.bf16 %v4958_v42, %v4957_v41 }
  0xe0   : > { %6368 = vmatmul.mubr.msk.f32.gmra.mrb[8].mxu0 %vm422_vm0, %v4082_v46 }
  0xe1   : > { %6374 = vmatprep.mubr.msk.f32.mxu0 %vm422_vm0, %v4241_v48 }
  0xe2   : > { %6128 = vmatmul.mubr.msk.f32.vlgmr.msra.gmra.mrb[0].mxu1 %vm422_vm0, %v2058_v47 }
  0xe3   : > { %6130 = vmatprep.mubr.msk.f32.mxu1 %vm422_vm0, %v2059_v49  ;;  %6512 = vmatpush3.bf16.msra.mxu1 %v6509_v24  ;;  %v4581_v24 = vld [vmem:[%s7285_s13 + $0x35] sm:$0xff] }
  0xe4   : > { %6514 = vmatprep.subr.bf16.mxu1 %v6513_v50  ;;  %6375 = vmatmul.mubr.msk.f32.vlgmr.msra.gmra.mrb[0].mxu0 %vm422_vm0, %v4242_v53 }
  0xe5   : > { %6564 = vmatpush3.bf16.msra.mxu0 %v6561_v31  ;;  %6377 = vmatprep.mubr.msk.f32.mxu0 %vm422_vm0, %v4243_v55  ;;  %v4745_v31 = vld [vmem:[%s7285_s13 + $0x16] sm:$0xff] }
  0xe6   : > { %6131 = vmatmul.mubr.msk.f32.gmra.mrb[2].mxu1 %vm422_vm0, %v2060_v54  ;;  %6566 = vmatprep.subr.bf16.mxu0 %v6565_v57 }
  0xe7   : > { %6133 = vmatprep.mubr.msk.f32.mxu1 %vm422_vm0, %v2061_v56 }
  0xe8   : > { %6378 = vmatmul.mubr.msk.f32.gmra.mrb[2].mxu0 %vm422_vm0, %v4244_v58 }
  0xe9   : > { %6380 = vmatprep.mubr.msk.f32.mxu0 %vm422_vm0, %v4245_v60 }
  0xea   : > { %6134 = vmatmul.mubr.msk.f32.gmra.mrb[4].mxu1 %vm422_vm0, %v2062_v59 }
  0xeb   : > { %6136 = vmatprep.mubr.msk.f32.mxu1 %vm422_vm0, %v2063_v61 }
  0xec   : > { %6381 = vmatmul.mubr.msk.f32.gmra.mrb[4].mxu0 %vm422_vm0, %v4246_v62 }
  0xed   : > { %6383 = vmatprep.mubr.msk.f32.mxu0 %vm422_vm0, %v4247_v0 }
  0xee   : > { %6137 = vmatmul.mubr.msk.f32.gmra.mrb[6].mxu1 %vm422_vm0, %v2064_v63 }
  0xef   : > { %6139 = vmatprep.mubr.msk.f32.mxu1 %vm422_vm0, %v2065_v1 }
  0xf0   : > { %6384 = vmatmul.mubr.msk.f32.gmra.mrb[6].mxu0 %vm422_vm0, %v4248_v2 }
  0xf1   : > { %6386 = vmatprep.mubr.msk.f32.mxu0 %vm422_vm0, %v4249_v4 }
  0xf2   : > { %6140 = vmatmul.mubr.msk.f32.gmra.mrb[8].mxu1 %vm422_vm0, %v2066_v3 }
  0xf3   : > { %6146 = vmatprep.mubr.msk.f32.mxu1 %vm422_vm0, %v2225_v5 }
  0xf4   : > { %6387 = vmatmul.mubr.msk.f32.gmra.mrb[8].mxu0 %vm422_vm0, %v4250_v6 }
  0xf5   : > { %6393 = vmatprep.mubr.msk.f32.mxu0 %vm422_vm0, %v4242_v53 }
  0xf6   : > { %6147 = vmatmul.mubr.msk.f32.vlgmr.msra.gmra.mrb[0].mxu1 %vm422_vm0, %v2226_v7 }
  0xf7   : > { %6149 = vmatprep.mubr.msk.f32.mxu1 %vm422_vm0, %v2227_v8  ;;  %6516 = vmatpush3.bf16.msra.mxu1 %v6513_v50 }
  0xf8   : > { %6394 = vmatmul.mubr.msk.f32.vlgmr.msra.gmra.mrb[0].mxu0 %vm422_vm0, %v4243_v55  ;;  %6574 = vmatprep.subr.bf16.mxu1 %v6573_v43  ;;  %v5583_v55 = vld [vmem:[%s7731_s4] ss:$0 sm:$0xff] }
  0xf9   : > { %6568 = vmatpush3.bf16.msra.mxu0 %v6565_v57  ;;  %6396 = vmatprep.mubr.msk.f32.mxu0 %vm422_vm0, %v4244_v58  ;;  %v5584_v58 = vld [vmem:[%s7732_s5] ss:$0 sm:$0xff] }
  0xfa   : > { %6150 = vmatmul.mubr.msk.f32.gmra.mrb[2].mxu1 %vm422_vm0, %v2228_v11  ;;  %6570 = vmatprep.subr.bf16.mxu0 %v6569_v13 }
  0xfb   : > { %6152 = vmatprep.mubr.msk.f32.mxu1 %vm422_vm0, %v2229_v12 }
  0xfc   : > { %6397 = vmatmul.mubr.msk.f32.gmra.mrb[2].mxu0 %vm422_vm0, %v4245_v60 }
  0xfd   : > { %6399 = vmatprep.mubr.msk.f32.mxu0 %vm422_vm0, %v4246_v62 }
  0xfe   : > { %6153 = vmatmul.mubr.msk.f32.gmra.mrb[4].mxu1 %vm422_vm0, %v2230_v14 }
  0xff   : > { %6155 = vmatprep.mubr.msk.f32.mxu1 %vm422_vm0, %v2231_v15 }
 0x100   : > { %6400 = vmatmul.mubr.msk.f32.gmra.mrb[4].mxu0 %vm422_vm0, %v4247_v0 }
 0x101   : > { %6402 = vmatprep.mubr.msk.f32.mxu0 %vm422_vm0, %v4248_v2 }
 0x102   : > { %6156 = vmatmul.mubr.msk.f32.gmra.mrb[6].mxu1 %vm422_vm0, %v2232_v16 }
 0x103   : > { %6158 = vmatprep.mubr.msk.f32.mxu1 %vm422_vm0, %v2233_v17 }
 0x104   : > { %6403 = vmatmul.mubr.msk.f32.gmra.mrb[6].mxu0 %vm422_vm0, %v4249_v4 }
 0x105   : > { %6405 = vmatprep.mubr.msk.f32.mxu0 %vm422_vm0, %v4250_v6 }
 0x106   : > { %6159 = vmatmul.mubr.msk.f32.gmra.mrb[8].mxu1 %vm422_vm0, %v2234_v18 }
 0x107   : > { %6165 = vmatprep.mubr.msk.f32.mxu1 %vm422_vm0, %v2226_v7 }
 0x108   : > { %6406 = vmatmul.mubr.msk.f32.gmra.mrb[8].mxu0 %vm422_vm0, %v4418_v19 }
 0x109   : > { %6412 = vmatprep.mubr.msk.f32.mxu0 %vm422_vm0, %v4577_v20 }
 0x10a   : > { %6166 = vmatmul.mubr.msk.f32.vlgmr.msra.gmra.mrb[0].mxu1 %vm422_vm0, %v2227_v8 }
 0x10b   : > { %6168 = vmatprep.mubr.msk.f32.mxu1 %vm422_vm0, %v2228_v11  ;;  %6576 = vmatpush3.bf16.msra.mxu1 %v6573_v43 }
 0x10c   : > { %6413 = vmatmul.mubr.msk.f32.vlgmr.msra.gmra.mrb[0].mxu0 %vm422_vm0, %v4578_v21 }
 0x10d   : > { %6572 = vmatpush3.bf16.msra.mxu0 %v6569_v13  ;;  %6415 = vmatprep.mubr.msk.f32.mxu0 %vm422_vm0, %v4579_v22 }
 0x10e   : > { %6169 = vmatmul.mubr.msk.f32.gmra.mrb[2].mxu1 %vm422_vm0, %v2229_v12 }
 0x10f   : > { %6171 = vmatprep.mubr.msk.f32.mxu1 %vm422_vm0, %v2230_v14 }
 0x110   : > { %6416 = vmatmul.mubr.msk.f32.gmra.mrb[2].mxu0 %vm422_vm0, %v4580_v23 }
 0x111   : > { %6418 = vmatprep.mubr.msk.f32.mxu0 %vm422_vm0, %v4581_v24 }
 0x112   : > { %6172 = vmatmul.mubr.msk.f32.gmra.mrb[4].mxu1 %vm422_vm0, %v2231_v15 }
 0x113   : > { %6174 = vmatprep.mubr.msk.f32.mxu1 %vm422_vm0, %v2232_v16 }
 0x114   : > { %6419 = vmatmul.mubr.msk.f32.gmra.mrb[4].mxu0 %vm422_vm0, %v4582_v25 }
 0x115   : > { %6421 = vmatprep.mubr.msk.f32.mxu0 %vm422_vm0, %v4583_v26 }
 0x116   : > { %6175 = vmatmul.mubr.msk.f32.gmra.mrb[6].mxu1 %vm422_vm0, %v2233_v17 }
 0x117   : > { %6177 = vmatprep.mubr.msk.f32.mxu1 %vm422_vm0, %v2234_v18 }
 0x118   : > { %6422 = vmatmul.mubr.msk.f32.gmra.mrb[6].mxu0 %vm422_vm0, %v4584_v27 }
 0x119   : > { %6424 = vmatprep.mubr.msk.f32.mxu0 %vm422_vm0, %v4585_v29 }
 0x11a   : > { %6178 = vmatmul.mubr.msk.f32.gmra.mrb[8].mxu1 %vm422_vm0, %v2402_v28 }
 0x11c   : > { %6425 = vmatmul.mubr.msk.f32.gmra.mrb[8].mxu0 %vm422_vm0, %v4586_v30 }
 0x11d   : > { %6431 = vmatprep.mubr.msk.f32.mxu0 %vm422_vm0, %v4745_v31 }
 0x120   : > { %6432 = vmatmul.mubr.msk.f32.vlgmr.msra.gmra.mrb[0].mxu0 %vm422_vm0, %v4746_v32 }
 0x121   : > { %6434 = vmatprep.mubr.msk.f32.mxu0 %vm422_vm0, %v4747_v33 }
 0x124   : > { %6435 = vmatmul.mubr.msk.f32.gmra.mrb[2].mxu0 %vm422_vm0, %v4748_v34 }
 0x125   : > { %6437 = vmatprep.mubr.msk.f32.mxu0 %vm422_vm0, %v4749_v35 }
 0x128   : > { %6438 = vmatmul.mubr.msk.f32.gmra.mrb[4].mxu0 %vm422_vm0, %v4750_v36 }
 0x129   : > { %6440 = vmatprep.mubr.msk.f32.mxu0 %vm422_vm0, %v4751_v37 }
 0x12c   : > { %6441 = vmatmul.mubr.msk.f32.gmra.mrb[6].mxu0 %vm422_vm0, %v4752_v38 }
 0x12d   : > { %6443 = vmatprep.mubr.msk.f32.mxu0 %vm422_vm0, %v4753_v39 }
 0x130   : > { %6444 = vmatmul.mubr.msk.f32.gmra.mrb[8].mxu0 %vm422_vm0, %v4754_v40 }
 0x1dd   : > { %v6167_v44 = vpop.f32.mrb[0].mxu1 }
 0x1de   : > { %v2502_v45 = vpop.f32.mrb[1].mxu1 }
 0x1e1   : > { %v6170_v46 = vpop.f32.mrb[2].mxu1 }
 0x1e2   : > { %v2512_v47 = vpop.f32.mrb[3].mxu1 }
 0x1e5   : > { %v6173_v48 = vpop.f32.mrb[4].mxu1 }
 0x1e6   : > { %v2522_v49 = vpop.f32.mrb[5].mxu1 }
 0x1e9   : > { %v6176_v50 = vpop.f32.mrb[6].mxu1 }
 0x1ea   : > { %v2532_v51 = vpop.f32.mrb[7].mxu1 }
 0x1ed   : > { %v6179_v52 = vpop.f32.mrb[8].mxu1 }
 0x1ee   : > { %v2542_v53 = vpop.f32.mrb[9].mxu1 }
 0x1f3   : > { %v6433_v54 = vpop.f32.mrb[0].mxu0 }
 0x1f4   : > { %v6577_v56 = vadd.f32 %v6433_v54, %v6167_v44  ;;  %v4854_v57 = vpop.f32.mrb[1].mxu0 }
 0x1f5   : > { %v6578_v59 = vadd.f32 %v4854_v57, %v2502_v45 }
 0x1f6   : > { %v4921_v60 = vmul.f32 %v6577_v56, %v5583_v55 }
 0x1f7   : > { %v4920_v61 = vmul.f32 %v6578_v59, %v5583_v55  ;;  %v6436_v62 = vpop.f32.mrb[2].mxu0 }
 0x1f8   : > { %v4938_v63 = vadd.f32 %v5584_v58, %v4921_v60  ;;  %v6579_v0 = vadd.f32 %v6436_v62, %v6170_v46  ;;  %v4864_v1 = vpop.f32.mrb[3].mxu0 }
 0x1f9   : > { %v4937_v2 = vadd.f32 %v5584_v58, %v4920_v61  ;;  %v6580_v3 = vadd.f32 %v4864_v1, %v2512_v47 }
 0x1fa   : > { %v4923_v4 = vmul.f32 %v6579_v0, %v5583_v55  ;;  %v4948_v8 = vmax.f32 %v4938_v63, 0.0 }
 0x1fb   : > { %v4947_v5 = vmax.f32 %v4937_v2, 0.0  ;;  %v4922_v6 = vmul.f32 %v6580_v3, %v5583_v55  ;;  %v6439_v7 = vpop.f32.mrb[4].mxu0 }
 0x1fc   : > { %v4940_v9 = vadd.f32 %v5584_v58, %v4923_v4  ;;  %v6581_v10 = vadd.f32 %v6439_v7, %v6173_v48  ;;  %v4874_v11 = vpop.f32.mrb[5].mxu0 }
 0x1fd   : > { %v4939_v12 = vadd.f32 %v5584_v58, %v4922_v6  ;;  %v6582_v13 = vadd.f32 %v4874_v11, %v2522_v49  ;;  %6450 = vmatprep.mubr.msk.f32.mxu1 %vm422_vm0, %v4947_v5 }
 0x1fe   : > { %v4925_v14 = vmul.f32 %v6581_v10, %v5583_v55  ;;  %6451 = vmatmul.mubr.msk.f32.vlgmr.msra.gmra.mrb[10].mxu1 %vm422_vm0, %v4948_v8  ;;  %v4950_v18 = vmax.f32 %v4940_v9, 0.0 }
 0x1ff   : > { %v4949_v15 = vmax.f32 %v4939_v12, 0.0  ;;  %v4924_v16 = vmul.f32 %v6582_v13, %v5583_v55  ;;  %v6442_v17 = vpop.f32.mrb[6].mxu0 }
 0x200   : > { %v4942_v19 = vadd.f32 %v5584_v58, %v4925_v14  ;;  %v6583_v20 = vadd.f32 %v6442_v17, %v6176_v50  ;;  %v4884_v21 = vpop.f32.mrb[7].mxu0 }
 0x201   : > { %v4941_v22 = vadd.f32 %v5584_v58, %v4924_v16  ;;  %v6584_v23 = vadd.f32 %v4884_v21, %v2532_v51  ;;  %6453 = vmatprep.mubr.msk.f32.mxu1 %vm422_vm0, %v4949_v15 }
 0x202   : > { %v4927_v24 = vmul.f32 %v6583_v20, %v5583_v55  ;;  %6454 = vmatmul.mubr.msk.f32.gmra.mrb[12].mxu1 %vm422_vm0, %v4950_v18  ;;  %v4952_v28 = vmax.f32 %v4942_v19, 0.0 }
 0x203   : > { %v4951_v25 = vmax.f32 %v4941_v22, 0.0  ;;  %v4926_v26 = vmul.f32 %v6584_v23, %v5583_v55  ;;  %v6445_v27 = vpop.f32.mrb[8].mxu0 }
 0x204   : > { %v4944_v29 = vadd.f32 %v5584_v58, %v4927_v24  ;;  %v6585_v30 = vadd.f32 %v6445_v27, %v6179_v52  ;;  %v4894_v31 = vpop.f32.mrb[9].mxu0 }
 0x205   : > { %v4943_v32 = vadd.f32 %v5584_v58, %v4926_v26  ;;  %v6586_v33 = vadd.f32 %v4894_v31, %v2542_v53  ;;  %6456 = vmatprep.mubr.msk.f32.mxu1 %vm422_vm0, %v4951_v25 }
 0x206   : > { %v4929_v34 = vmul.f32 %v6585_v30, %v5583_v55  ;;  %6457 = vmatmul.mubr.msk.f32.gmra.mrb[14].mxu1 %vm422_vm0, %v4952_v28  ;;  %v4954_v37 = vmax.f32 %v4944_v29, 0.0 }
 0x207   : > { %v4953_v35 = vmax.f32 %v4943_v32, 0.0  ;;  %v4928_v36 = vmul.f32 %v6586_v33, %v5583_v55 }
 0x208   : > { %v4946_v38 = vadd.f32 %v5584_v58, %v4929_v34 }
 0x209   : > { %v4945_v39 = vadd.f32 %v5584_v58, %v4928_v36  ;;  %6459 = vmatprep.mubr.msk.f32.mxu1 %vm422_vm0, %v4953_v35 }
 0x20a   : > { %6460 = vmatmul.mubr.msk.f32.gmra.mrb[16].mxu1 %vm422_vm0, %v4954_v37  ;;  %v4956_v41 = vmax.f32 %v4946_v38, 0.0 }
 0x20b   : > { %v4955_v40 = vmax.f32 %v4945_v39, 0.0 }
 0x20d   : > { %6462 = vmatprep.mubr.msk.f32.mxu1 %vm422_vm0, %v4955_v40 }
 0x20e   : > { %6463 = vmatmul.mubr.msk.f32.gmra.mrb[18].mxu1 %vm422_vm0, %v4956_v41 }
 0x2d1   : > { %v6452_v42 = vpop.f32.mrb[10].mxu1 }
 0x2d2   : > { %5106 = vst.msk [vmem:[%s396_s22 + $0x8] sm:$0xff] %vm5104_vm1, %v6452_v42  ;;  %v5055_v43 = vpop.f32.mrb[11].mxu1 }
 0x2d3   : > { %5105 = vst.msk [vmem:[%s396_s22] sm:$0xff] %vm5104_vm1, %v5055_v43 }
 0x2d5   : > { %v6455_v44 = vpop.f32.mrb[12].mxu1 }
 0x2d6   : > { %5108 = vst.msk [vmem:[%s396_s22 + $0x18] sm:$0xff] %vm5104_vm1, %v6455_v44  ;;  %v5065_v45 = vpop.f32.mrb[13].mxu1 }
 0x2d7   : > { %5107 = vst.msk [vmem:[%s396_s22 + $0x10] sm:$0xff] %vm5104_vm1, %v5065_v45 }
 0x2d9   : > { %v6458_v46 = vpop.f32.mrb[14].mxu1 }
 0x2da   : > { %5110 = vst.msk [vmem:[%s396_s22 + $0x28] sm:$0xff] %vm5104_vm1, %v6458_v46  ;;  %v5075_v47 = vpop.f32.mrb[15].mxu1 }
 0x2db   : > { %5109 = vst.msk [vmem:[%s396_s22 + $0x20] sm:$0xff] %vm5104_vm1, %v5075_v47 }
 0x2dd   : > { %v6461_v48 = vpop.f32.mrb[16].mxu1 }
 0x2de   : > { %5112 = vst.msk [vmem:[%s396_s22 + $0x38] sm:$0xff] %vm5104_vm1, %v6461_v48  ;;  %v5085_v49 = vpop.f32.mrb[17].mxu1 }
 0x2df   : > { %5111 = vst.msk [vmem:[%s396_s22 + $0x30] sm:$0xff] %vm5104_vm1, %v5085_v49 }
 0x2e1   : > { %v6464_v50 = vpop.f32.mrb[18].mxu1 }
 0x2e2   : > { %5114 = vst.msk [vmem:[%s396_s22 + $0x48] sm:$0xff] %vm5104_vm1, %v6464_v50  ;;  %v5095_v51 = vpop.f32.mrb[19].mxu1 }
 0x2e3   : > { %5113 = vst.msk [vmem:[%s396_s22 + $0x40] sm:$0xff] %vm5104_vm1, %v5095_v51 }
 0x2e4 PF: > { %s17_s28 = sadd.s32 1, %s6921_s28   ;;  %s7735_s24 = smov %s6913_s26 }
 0x2e5   : > { %p14_p10 = scmp.ge.s32.totalorder %s17_s28, 18   ;;  %s7736_s25 = smov %s6917_s27 }
 0x2e6   : > { %s7737_s26 = smov %s7740_s29  ;;  %s7738_s27 = smov %s7744_s30 }
 0x2e7   :  { %16 = sbr.rel (!%p14_p10) target bundleno = 3 (0x3), region = 110 }

</bundles_post_ra>
